<compile_context>
chip_gen: v6e
topology: v6e:2x2x1
jax: 0.10.0
libtpu: 0.0.40
codegen_flags: <defaults>
</compile_context>

<pallas_src>
import math

import jax
import jax.numpy as jnp
from jax import lax
from jax.experimental import pallas as pl
from jax.experimental.pallas import tpu as pltpu

# ---- model hyper-parameters (TransAm defaults scaled down) ----
T = 8            # sequence length
C = 8            # num_channel (input / output feature dim)
D = 32           # d_model
H = 4            # nhead
HD = D // H      # head dim
FF = 64          # dim_feedforward (PyTorch default 2048, scaled down)
LN_EPS = 1e-5

GB = 16          # batch elements per grid step
GM = T * GB      # 128 rows per block (hardware-shaped)

# ---- bf16 weight-slab row offsets (16-aligned for bf16 sublane packing) ----
W_UP, W_QKV, W_OW, W_FF1, W_FF2, W_DEC = 0, 16, 48, 80, 112, 176
W_ROWS = 208

# ---- f32 vector-slab row offsets (PE+up_b rows 0..GM-1, then one row each) ----
V_PE = 0
V_BQKV, V_OB, V_G1, V_BE1, V_FF1B, V_FF2B, V_G2, V_BE2, V_DECB = (
    GM, GM + 1, GM + 2, GM + 3, GM + 4, GM + 5, GM + 6, GM + 7, GM + 8)
V_ROWS = 144


def _transam_kernel(x_ref, w_ref, v_ref, m_ref, o_ref):
    f32, bf16 = jnp.float32, jnp.bfloat16

    # ---- static slices of the packed slabs (zero-cost views) ----
    up_w  = w_ref[W_UP:W_UP + C,    0:D]          # [C, D]   bf16
    wqkv  = w_ref[W_QKV:W_QKV + D,  0:3 * D]      # [D, 3D]  bf16 (q pre-scaled)
    ow    = w_ref[W_OW:W_OW + D,    0:D]          # [D, D]   bf16
    ff1w  = w_ref[W_FF1:W_FF1 + D,  0:FF]         # [D, FF]  bf16
    ff2w  = w_ref[W_FF2:W_FF2 + FF, 0:D]          # [FF, D]  bf16
    dec_w = w_ref[W_DEC:W_DEC + D,  0:C]          # [D, C]   bf16

    pe_b  = v_ref[V_PE:V_PE + GM,      0:D]       # PE + up_b, [GM, D] f32
    bqkv  = v_ref[V_BQKV:V_BQKV + 1,   0:3 * D]
    ob    = v_ref[V_OB:V_OB + 1,       0:D]
    g1    = v_ref[V_G1:V_G1 + 1,       0:D]
    be1   = v_ref[V_BE1:V_BE1 + 1,     0:D]
    ff1b  = v_ref[V_FF1B:V_FF1B + 1,   0:FF]
    ff2b  = v_ref[V_FF2B:V_FF2B + 1,   0:D]
    g2    = v_ref[V_G2:V_G2 + 1,       0:D]
    be2   = v_ref[V_BE2:V_BE2 + 1,     0:D]
    dec_b = v_ref[V_DECB:V_DECB + 1,   0:C]

    mask = m_ref[...]                              # [GM, GM] f32, precomputed

    # ---- up-projection (Linear C->D) + positional encoding (up bias folded) ----
    x = x_ref[...].astype(bf16)                    # [GM, C]
    h = jnp.dot(x, up_w, preferred_element_type=f32) + pe_b      # [GM, D] f32

    # ---- fused QKV projection (q already scaled by 1/sqrt(HD) at pack time) ----
    qkv = jnp.dot(h.astype(bf16), wqkv, preferred_element_type=f32) + bqkv
    q = qkv[:, 0:D].astype(bf16)
    k = qkv[:, D:2 * D].astype(bf16)
    v = qkv[:, 2 * D:3 * D].astype(bf16)

    # ---- multi-head attention: per-head softmax, single fused out-projection ----
    hv_parts = []
    for hi in range(H):                            # static unroll, H=4
        sl = slice(hi * HD, (hi + 1) * HD)
        s = lax.dot_general(q[:, sl], k[:, sl],
                            dimension_numbers=(((1,), (1,)), ((), ())),
                            preferred_element_type=f32) + mask   # [GM, GM] f32
        s = s - jnp.max(s, axis=-1, keepdims=True)
        p = jnp.exp(s)
        p = p * pl.reciprocal(jnp.sum(p, axis=-1, keepdims=True), approx=True)
        hv_parts.append(jnp.dot(p.astype(bf16), v[:, sl],
                                preferred_element_type=f32))     # [GM, HD]
    hv = jnp.concatenate(hv_parts, axis=-1)                      # [GM, D]
    attn = jnp.dot(hv.astype(bf16), ow, preferred_element_type=f32) + ob

    # ---- residual + LayerNorm 1 (post-norm, var = E[x^2] - E[x]^2) ----
    h = h + attn
    mu = jnp.mean(h, axis=-1, keepdims=True)
    ms = jnp.mean(h * h, axis=-1, keepdims=True)
    h = (h - mu) * lax.rsqrt(ms - mu * mu + LN_EPS) * g1 + be1

    # ---- feed-forward (ReLU) ----
    f = jnp.dot(h.astype(bf16), ff1w, preferred_element_type=f32) + ff1b
    f = jnp.maximum(f, 0.0)
    f = jnp.dot(f.astype(bf16), ff2w, preferred_element_type=f32) + ff2b

    # ---- residual + LayerNorm 2 ----
    h = h + f
    mu = jnp.mean(h, axis=-1, keepdims=True)
    ms = jnp.mean(h * h, axis=-1, keepdims=True)
    h = (h - mu) * lax.rsqrt(ms - mu * mu + LN_EPS) * g2 + be2

    # ---- decoder: Linear(D, C) ----
    out = jnp.dot(h.astype(bf16), dec_w, preferred_element_type=f32) + dec_b
    o_ref[...] = out.astype(o_ref.dtype)
    # TODO(synk): output last dim is C=8 (<128 lanes) -> one masked store per
    # block; a lane-dense relayout is not worth it at this size.


@jax.jit
def transam_forward(src, wslab, vslab, mask):
    """src: [T, B, C] float32  ->  [T, B, C] float32 (B must be a multiple of GB)."""
    t, b, c = src.shape
    assert t == T and c == C and b % GB == 0
    ng = b // GB
    # Regroup so each grid block holds GB whole sequences with rows ordered
    # r = t*GB + b_local (tiny one-time relayout, stays outside the kernel).
    x = src.reshape(t, ng, GB, c).transpose(1, 0, 2, 3).reshape(ng, GM, c)
    out = pl.pallas_call(
        _transam_kernel,
        out_shape=jax.ShapeDtypeStruct((ng, GM, c), jnp.float32),
        grid=(ng,),
        in_specs=[
            pl.BlockSpec((None, GM, C), lambda i: (i, 0, 0)),   # activations (pipelined)
            pl.BlockSpec((W_ROWS, 128), lambda i: (0, 0)),      # bf16 weights, VMEM-resident
            pl.BlockSpec((V_ROWS, 128), lambda i: (0, 0)),      # PE / biases / LN params
            pl.BlockSpec((GM, GM),      lambda i: (0, 0)),      # block-diagonal causal mask
        ],
        out_specs=pl.BlockSpec((None, GM, C), lambda i: (i, 0, 0)),
        compiler_params=pltpu.CompilerParams(
            dimension_semantics=("parallel",)),                 # use both TCs on v7x
    )(x, wslab, vslab, mask)
    return out.reshape(ng, t, GB, c).transpose(1, 0, 2, 3).reshape(t, b, c)


def make_positional_encoding(t, d_model):
    # Matches PositionalEncoding.__init__ (sin on even, cos on odd indices).
    position = jnp.arange(0, t, dtype=jnp.float32)[:, None]
    div_term = jnp.exp(jnp.arange(0, d_model, 2, dtype=jnp.float32)
                       * (-math.log(10000.0) / d_model))
    pe = jnp.zeros((t, d_model), dtype=jnp.float32)
    pe = pe.at[:, 0::2].set(jnp.sin(position * div_term))
    pe = pe.at[:, 1::2].set(jnp.cos(position * div_term))
    return pe


def make_block_mask(t, gb):
    """[t*gb, t*gb] mask: row r attends to col c iff same batch element and causal."""
    gm = t * gb
    r = jnp.arange(gm)[:, None]
    c = jnp.arange(gm)[None, :]
    allowed = ((r % gb) == (c % gb)) & ((c // gb) <= (r // gb))
    return jnp.where(allowed, 0.0, -jnp.inf).astype(jnp.float32)


def make_params(key):
    """Deterministic synthetic parameters (PyTorch semantics). Weight matrices
    are stored pre-transposed so the math is y = x @ W + b."""
    ks = jax.random.split(key, 12)
    s = 0.05

    pe = make_positional_encoding(T, D)

    up_w = jax.random.normal(ks[0], (C, D), jnp.float32) * s          # Linear(C -> D)
    up_b = jax.random.normal(ks[1], (1, D), jnp.float32) * s

    wq = jax.random.normal(ks[2], (D, D), jnp.float32) * s            # in_proj (split)
    wk = jax.random.normal(ks[3], (D, D), jnp.float32) * s
    wv = jax.random.normal(ks[4], (D, D), jnp.float32) * s
    bq = jnp.zeros((1, D), jnp.float32)
    bk = jnp.zeros((1, D), jnp.float32)
    bv = jnp.zeros((1, D), jnp.float32)

    ow = jax.random.normal(ks[5], (D, D), jnp.float32) * s            # attn out_proj
    ob = jnp.zeros((1, D), jnp.float32)

    g1 = jnp.ones((1, D), jnp.float32)                                # LayerNorm 1
    be1 = jnp.zeros((1, D), jnp.float32)

    ff1w = jax.random.normal(ks[6], (D, FF), jnp.float32) * s         # FFN
    ff1b = jnp.zeros((1, FF), jnp.float32)
    ff2w = jax.random.normal(ks[7], (FF, D), jnp.float32) * s
    ff2b = jnp.zeros((1, D), jnp.float32)

    g2 = jnp.ones((1, D), jnp.float32)                                # LayerNorm 2
    be2 = jnp.zeros((1, D), jnp.float32)

    dec_w = jax.random.uniform(ks[8], (D, C), jnp.float32, minval=-0.1, maxval=0.1)
    dec_b = jnp.zeros((1, C), jnp.float32)

    return (pe, up_w, up_b, wq, wk, wv, bq, bk, bv, ow, ob,
            g1, be1, ff1w, ff1b, ff2w, ff2b, g2, be2, dec_w, dec_b)


def pack_params(params):
    """Pack parameters into one bf16 weight slab + one f32 vector slab.
    Folds 1/sqrt(HD) into Q weights/bias and up_b into the PE rows."""
    (pe, up_w, up_b, wq, wk, wv, bq, bk, bv, ow, ob,
     g1, be1, ff1w, ff1b, ff2w, ff2b, g2, be2, dec_w, dec_b) = params

    scale = 1.0 / math.sqrt(HD)
    wqkv = jnp.concatenate([wq * scale, wk, wv], axis=1)              # [D, 3D]
    bqkv = jnp.concatenate([bq * scale, bk, bv], axis=1)              # [1, 3D]

    def put(slab, arr, r0):
        return slab.at[r0:r0 + arr.shape[0], 0:arr.shape[1]].set(arr.astype(slab.dtype))

    wslab = jnp.zeros((W_ROWS, 128), jnp.bfloat16)
    for arr, off in ((up_w, W_UP), (wqkv, W_QKV), (ow, W_OW),
                     (ff1w, W_FF1), (ff2w, W_FF2), (dec_w, W_DEC)):
        wslab = put(wslab, arr, off)

    # PE expanded over the block rows (row r = t*GB + b_local -> pe[t]), + up bias.
    pe_eff = jnp.repeat(pe[:T], GB, axis=0) + up_b                    # [GM, D]

    vslab = jnp.zeros((V_ROWS, 128), jnp.float32)
    for arr, off in ((pe_eff, V_PE), (bqkv, V_BQKV), (ob, V_OB), (g1, V_G1),
                     (be1, V_BE1), (ff1b, V_FF1B), (ff2b, V_FF2B),
                     (g2, V_G2), (be2, V_BE2), (dec_b, V_DECB)):
        vslab = put(vslab, arr, off)
    return wslab, vslab


def _layernorm_ref(h, g, b):
    mu = jnp.mean(h, axis=-1, keepdims=True)
    var = jnp.mean((h - mu) ** 2, axis=-1, keepdims=True)
    return (h - mu) / jnp.sqrt(var + LN_EPS) * g + b


def transam_reference(src, params):
    """Pure-JAX f32 reference of the PyTorch forward (inference, dropout off)."""
    (pe, up_w, up_b, wq, wk, wv, bq, bk, bv, ow, ob,
     g1, be1, ff1w, ff1b, ff2w, ff2b, g2, be2, dec_w, dec_b) = params
    t, b, _ = src.shape
    h = src @ up_w + up_b + pe[:t][:, None, :]                        # [T,B,D]
    q = (h @ wq + bq).reshape(t, b, H, HD)
    k = (h @ wk + bk).reshape(t, b, H, HD)
    v = (h @ wv + bv).reshape(t, b, H, HD)
    s = jnp.einsum('qbhd,kbhd->bhqk', q, k) / math.sqrt(HD)
    causal = jnp.tril(jnp.ones((t, t), dtype=bool))
    s = jnp.where(causal[None, None], s, -jnp.inf)
    p = jax.nn.softmax(s, axis=-1)
    o = jnp.einsum('bhqk,kbhd->qbhd', p, v).reshape(t, b, D)
    h = _layernorm_ref(h + (o @ ow + ob), g1, be1)
    f = jnp.maximum(h @ ff1w + ff1b, 0.0) @ ff2w + ff2b
    h = _layernorm_ref(h + f, g2, be2)
    return h @ dec_w + dec_b


if __name__ == "__main__":
    key = jax.random.PRNGKey(0)
    k_in, k_par = jax.random.split(key)

    B = 32                                            # 2 grid steps of GB=16 sequences
    src = jax.random.normal(k_in, (T, B, C), jnp.float32)   # [T, B, num_channel]

    params = make_params(k_par)
    wslab, vslab = pack_params(params)                # packing done once, off the hot path
    mask = make_block_mask(T, GB)

    out = transam_forward(src, wslab, vslab, mask)
    jax.block_until_ready(out)
    assert out.shape == (T, B, C)

    ref = transam_reference(src, params)
    err = float(jnp.max(jnp.abs(out - ref)))
    assert jnp.all(jnp.isfinite(out)) and err < 0.1, f"max abs error vs reference: {err}"
    # TODO(synk): dropout layers are identity (inference semantics); training-mode
    # stochastic dropout is not implemented in the kernel.
    print("KERNEL_OK")
</pallas_src>

<mosaic_0001>
module attributes {stable_mosaic.version = 11 : i64} {
  func.func @_transam_kernel(%arg0: i32, %arg1: memref<1x128x8xf32, #tpu.memory_space<vmem>>, %arg2: memref<208x128xbf16, #tpu.memory_space<vmem>>, %arg3: memref<144x128xf32, #tpu.memory_space<vmem>>, %arg4: memref<128x128xf32, #tpu.memory_space<vmem>>, %arg5: memref<1x128x8xf32, #tpu.memory_space<vmem>>) attributes {dimension_semantics = [#tpu.dimension_semantics<parallel>], iteration_bounds = array<i64: 2>, scalar_prefetch = 0 : i64, scratch_operands = 0 : i64, tpu.core_type = #tpu.core_type<tc>, window_params = [{transform_indices = @transform_0, window_bounds = array<i64: 1, 128, 8>}, {pipeline_mode = #tpu.pipeline_mode<synchronous>, transform_indices = @transform_1, window_bounds = array<i64: 208, 128>}, {pipeline_mode = #tpu.pipeline_mode<synchronous>, transform_indices = @transform_2, window_bounds = array<i64: 144, 128>}, {pipeline_mode = #tpu.pipeline_mode<synchronous>, transform_indices = @transform_3, window_bounds = array<i64: 128, 128>}, {transform_indices = @transform_4, window_bounds = array<i64: 1, 128, 8>}]} {
    %c0 = arith.constant 0 : index
    %c0_0 = arith.constant 0 : index
    %0 = vector.load %arg2[%c0, %c0_0] : memref<208x128xbf16, #tpu.memory_space<vmem>>, vector<8x32xbf16>
    %c16 = arith.constant 16 : index
    %c0_1 = arith.constant 0 : index
    %1 = vector.load %arg2[%c16, %c0_1] : memref<208x128xbf16, #tpu.memory_space<vmem>>, vector<32x96xbf16>
    %c48 = arith.constant 48 : index
    %c0_2 = arith.constant 0 : index
    %2 = vector.load %arg2[%c48, %c0_2] : memref<208x128xbf16, #tpu.memory_space<vmem>>, vector<32x32xbf16>
    %c80 = arith.constant 80 : index
    %c0_3 = arith.constant 0 : index
    %3 = vector.load %arg2[%c80, %c0_3] : memref<208x128xbf16, #tpu.memory_space<vmem>>, vector<32x64xbf16>
    %c112 = arith.constant 112 : index
    %c0_4 = arith.constant 0 : index
    %4 = vector.load %arg2[%c112, %c0_4] : memref<208x128xbf16, #tpu.memory_space<vmem>>, vector<64x32xbf16>
    %c176 = arith.constant 176 : index
    %c0_5 = arith.constant 0 : index
    %5 = vector.load %arg2[%c176, %c0_5] : memref<208x128xbf16, #tpu.memory_space<vmem>>, vector<32x8xbf16>
    %c0_6 = arith.constant 0 : index
    %c0_7 = arith.constant 0 : index
    %6 = vector.load %arg3[%c0_6, %c0_7] : memref<144x128xf32, #tpu.memory_space<vmem>>, vector<128x32xf32>
    %c128 = arith.constant 128 : index
    %c0_8 = arith.constant 0 : index
    %7 = vector.load %arg3[%c128, %c0_8] : memref<144x128xf32, #tpu.memory_space<vmem>>, vector<1x96xf32>
    %c129 = arith.constant 129 : index
    %c0_9 = arith.constant 0 : index
    %8 = vector.load %arg3[%c129, %c0_9] : memref<144x128xf32, #tpu.memory_space<vmem>>, vector<1x32xf32>
    %c130 = arith.constant 130 : index
    %c0_10 = arith.constant 0 : index
    %9 = vector.load %arg3[%c130, %c0_10] : memref<144x128xf32, #tpu.memory_space<vmem>>, vector<1x32xf32>
    %c131 = arith.constant 131 : index
    %c0_11 = arith.constant 0 : index
    %10 = vector.load %arg3[%c131, %c0_11] : memref<144x128xf32, #tpu.memory_space<vmem>>, vector<1x32xf32>
    %c132 = arith.constant 132 : index
    %c0_12 = arith.constant 0 : index
    %11 = vector.load %arg3[%c132, %c0_12] : memref<144x128xf32, #tpu.memory_space<vmem>>, vector<1x64xf32>
    %c133 = arith.constant 133 : index
    %c0_13 = arith.constant 0 : index
    %12 = vector.load %arg3[%c133, %c0_13] : memref<144x128xf32, #tpu.memory_space<vmem>>, vector<1x32xf32>
    %c134 = arith.constant 134 : index
    %c0_14 = arith.constant 0 : index
    %13 = vector.load %arg3[%c134, %c0_14] : memref<144x128xf32, #tpu.memory_space<vmem>>, vector<1x32xf32>
    %c135 = arith.constant 135 : index
    %c0_15 = arith.constant 0 : index
    %14 = vector.load %arg3[%c135, %c0_15] : memref<144x128xf32, #tpu.memory_space<vmem>>, vector<1x32xf32>
    %c136 = arith.constant 136 : index
    %c0_16 = arith.constant 0 : index
    %15 = vector.load %arg3[%c136, %c0_16] : memref<144x128xf32, #tpu.memory_space<vmem>>, vector<1x8xf32>
    %c0_17 = arith.constant 0 : index
    %c0_18 = arith.constant 0 : index
    %16 = vector.load %arg4[%c0_17, %c0_18] : memref<128x128xf32, #tpu.memory_space<vmem>>, vector<128x128xf32>
    %c0_19 = arith.constant 0 : index
    %c0_20 = arith.constant 0 : index
    %c0_21 = arith.constant 0 : index
    %17 = vector.load %arg1[%c0_19, %c0_20, %c0_21] : memref<1x128x8xf32, #tpu.memory_space<vmem>>, vector<1x128x8xf32>
    %18 = vector.shape_cast %17 : vector<1x128x8xf32> to vector<128x8xf32>
    %19 = arith.truncf %18 : vector<128x8xf32> to vector<128x8xbf16>
    %cst = arith.constant dense<0.000000e+00> : vector<128x32xf32>
    %20 = tpu.matmul %19, %0, %cst {dimension_numbers = #tpu.dot_dimension_numbers<[1], [0], [0], [1], [0, 0, 1, 1], [], []>} : vector<128x8xbf16>, vector<8x32xbf16>, vector<128x32xf32> -> vector<128x32xf32>
    %21 = arith.addf %20, %6 : vector<128x32xf32>
    %22 = arith.truncf %21 : vector<128x32xf32> to vector<128x32xbf16>
    %cst_22 = arith.constant dense<0.000000e+00> : vector<128x96xf32>
    %23 = tpu.matmul %22, %1, %cst_22 {dimension_numbers = #tpu.dot_dimension_numbers<[1], [0], [0], [1], [0, 0, 1, 1], [], []>} : vector<128x32xbf16>, vector<32x96xbf16>, vector<128x96xf32> -> vector<128x96xf32>
    %24 = vector.broadcast %7 : vector<1x96xf32> to vector<128x96xf32>
    %25 = arith.addf %23, %24 : vector<128x96xf32>
    %26 = vector.extract_strided_slice %25 {offsets = [0, 0], sizes = [128, 32], strides = [1, 1]} : vector<128x96xf32> to vector<128x32xf32>
    %27 = arith.truncf %26 : vector<128x32xf32> to vector<128x32xbf16>
    %28 = vector.extract_strided_slice %25 {offsets = [0, 32], sizes = [128, 32], strides = [1, 1]} : vector<128x96xf32> to vector<128x32xf32>
    %29 = arith.truncf %28 : vector<128x32xf32> to vector<128x32xbf16>
    %30 = vector.extract_strided_slice %25 {offsets = [0, 64], sizes = [128, 32], strides = [1, 1]} : vector<128x96xf32> to vector<128x32xf32>
    %31 = arith.truncf %30 : vector<128x32xf32> to vector<128x32xbf16>
    %32 = vector.extract_strided_slice %27 {offsets = [0, 0], sizes = [128, 8], strides = [1, 1]} : vector<128x32xbf16> to vector<128x8xbf16>
    %33 = vector.extract_strided_slice %29 {offsets = [0, 0], sizes = [128, 8], strides = [1, 1]} : vector<128x32xbf16> to vector<128x8xbf16>
    %cst_23 = arith.constant dense<0.000000e+00> : vector<128x128xf32>
    %34 = tpu.matmul %32, %33, %cst_23 {dimension_numbers = #tpu.dot_dimension_numbers<[1], [1], [0], [0], [0, 0, 1, 0], [], []>} : vector<128x8xbf16>, vector<128x8xbf16>, vector<128x128xf32> -> vector<128x128xf32>
    %35 = arith.addf %34, %16 : vector<128x128xf32>
    %cst_24 = arith.constant dense<0xFF800000> : vector<128xf32>
    %36 = vector.multi_reduction <maximumf>, %35, %cst_24 [1] : vector<128x128xf32> to vector<128xf32>
    %37 = vector.shape_cast %36 : vector<128xf32> to vector<128x1xf32>
    %38 = vector.broadcast %37 : vector<128x1xf32> to vector<128x128xf32>
    %39 = arith.subf %35, %38 : vector<128x128xf32>
    %40 = math.exp %39 : vector<128x128xf32>
    %cst_25 = arith.constant dense<0.000000e+00> : vector<128xf32>
    %41 = vector.multi_reduction <add>, %40, %cst_25 [1] : vector<128x128xf32> to vector<128xf32>
    %42 = vector.shape_cast %41 : vector<128xf32> to vector<128x1xf32>
    %43 = tpu.reciprocal %42 {approx = true} : vector<128x1xf32> -> vector<128x1xf32>
    %44 = vector.broadcast %43 : vector<128x1xf32> to vector<128x128xf32>
    %45 = arith.mulf %40, %44 : vector<128x128xf32>
    %46 = arith.truncf %45 : vector<128x128xf32> to vector<128x128xbf16>
    %47 = vector.extract_strided_slice %31 {offsets = [0, 0], sizes = [128, 8], strides = [1, 1]} : vector<128x32xbf16> to vector<128x8xbf16>
    %cst_26 = arith.constant dense<0.000000e+00> : vector<128x8xf32>
    %48 = tpu.matmul %46, %47, %cst_26 {dimension_numbers = #tpu.dot_dimension_numbers<[1], [0], [0], [1], [0, 0, 1, 1], [], []>} : vector<128x128xbf16>, vector<128x8xbf16>, vector<128x8xf32> -> vector<128x8xf32>
    %49 = vector.extract_strided_slice %27 {offsets = [0, 8], sizes = [128, 8], strides = [1, 1]} : vector<128x32xbf16> to vector<128x8xbf16>
    %50 = vector.extract_strided_slice %29 {offsets = [0, 8], sizes = [128, 8], strides = [1, 1]} : vector<128x32xbf16> to vector<128x8xbf16>
    %cst_27 = arith.constant dense<0.000000e+00> : vector<128x128xf32>
    %51 = tpu.matmul %49, %50, %cst_27 {dimension_numbers = #tpu.dot_dimension_numbers<[1], [1], [0], [0], [0, 0, 1, 0], [], []>} : vector<128x8xbf16>, vector<128x8xbf16>, vector<128x128xf32> -> vector<128x128xf32>
    %52 = arith.addf %51, %16 : vector<128x128xf32>
    %cst_28 = arith.constant dense<0xFF800000> : vector<128xf32>
    %53 = vector.multi_reduction <maximumf>, %52, %cst_28 [1] : vector<128x128xf32> to vector<128xf32>
    %54 = vector.shape_cast %53 : vector<128xf32> to vector<128x1xf32>
    %55 = vector.broadcast %54 : vector<128x1xf32> to vector<128x128xf32>
    %56 = arith.subf %52, %55 : vector<128x128xf32>
    %57 = math.exp %56 : vector<128x128xf32>
    %cst_29 = arith.constant dense<0.000000e+00> : vector<128xf32>
    %58 = vector.multi_reduction <add>, %57, %cst_29 [1] : vector<128x128xf32> to vector<128xf32>
    %59 = vector.shape_cast %58 : vector<128xf32> to vector<128x1xf32>
    %60 = tpu.reciprocal %59 {approx = true} : vector<128x1xf32> -> vector<128x1xf32>
    %61 = vector.broadcast %60 : vector<128x1xf32> to vector<128x128xf32>
    %62 = arith.mulf %57, %61 : vector<128x128xf32>
    %63 = arith.truncf %62 : vector<128x128xf32> to vector<128x128xbf16>
    %64 = vector.extract_strided_slice %31 {offsets = [0, 8], sizes = [128, 8], strides = [1, 1]} : vector<128x32xbf16> to vector<128x8xbf16>
    %cst_30 = arith.constant dense<0.000000e+00> : vector<128x8xf32>
    %65 = tpu.matmul %63, %64, %cst_30 {dimension_numbers = #tpu.dot_dimension_numbers<[1], [0], [0], [1], [0, 0, 1, 1], [], []>} : vector<128x128xbf16>, vector<128x8xbf16>, vector<128x8xf32> -> vector<128x8xf32>
    %66 = vector.extract_strided_slice %27 {offsets = [0, 16], sizes = [128, 8], strides = [1, 1]} : vector<128x32xbf16> to vector<128x8xbf16>
    %67 = vector.extract_strided_slice %29 {offsets = [0, 16], sizes = [128, 8], strides = [1, 1]} : vector<128x32xbf16> to vector<128x8xbf16>
    %cst_31 = arith.constant dense<0.000000e+00> : vector<128x128xf32>
    %68 = tpu.matmul %66, %67, %cst_31 {dimension_numbers = #tpu.dot_dimension_numbers<[1], [1], [0], [0], [0, 0, 1, 0], [], []>} : vector<128x8xbf16>, vector<128x8xbf16>, vector<128x128xf32> -> vector<128x128xf32>
    %69 = arith.addf %68, %16 : vector<128x128xf32>
    %cst_32 = arith.constant dense<0xFF800000> : vector<128xf32>
    %70 = vector.multi_reduction <maximumf>, %69, %cst_32 [1] : vector<128x128xf32> to vector<128xf32>
    %71 = vector.shape_cast %70 : vector<128xf32> to vector<128x1xf32>
    %72 = vector.broadcast %71 : vector<128x1xf32> to vector<128x128xf32>
    %73 = arith.subf %69, %72 : vector<128x128xf32>
    %74 = math.exp %73 : vector<128x128xf32>
    %cst_33 = arith.constant dense<0.000000e+00> : vector<128xf32>
    %75 = vector.multi_reduction <add>, %74, %cst_33 [1] : vector<128x128xf32> to vector<128xf32>
    %76 = vector.shape_cast %75 : vector<128xf32> to vector<128x1xf32>
    %77 = tpu.reciprocal %76 {approx = true} : vector<128x1xf32> -> vector<128x1xf32>
    %78 = vector.broadcast %77 : vector<128x1xf32> to vector<128x128xf32>
    %79 = arith.mulf %74, %78 : vector<128x128xf32>
    %80 = arith.truncf %79 : vector<128x128xf32> to vector<128x128xbf16>
    %81 = vector.extract_strided_slice %31 {offsets = [0, 16], sizes = [128, 8], strides = [1, 1]} : vector<128x32xbf16> to vector<128x8xbf16>
    %cst_34 = arith.constant dense<0.000000e+00> : vector<128x8xf32>
    %82 = tpu.matmul %80, %81, %cst_34 {dimension_numbers = #tpu.dot_dimension_numbers<[1], [0], [0], [1], [0, 0, 1, 1], [], []>} : vector<128x128xbf16>, vector<128x8xbf16>, vector<128x8xf32> -> vector<128x8xf32>
    %83 = vector.extract_strided_slice %27 {offsets = [0, 24], sizes = [128, 8], strides = [1, 1]} : vector<128x32xbf16> to vector<128x8xbf16>
    %84 = vector.extract_strided_slice %29 {offsets = [0, 24], sizes = [128, 8], strides = [1, 1]} : vector<128x32xbf16> to vector<128x8xbf16>
    %cst_35 = arith.constant dense<0.000000e+00> : vector<128x128xf32>
    %85 = tpu.matmul %83, %84, %cst_35 {dimension_numbers = #tpu.dot_dimension_numbers<[1], [1], [0], [0], [0, 0, 1, 0], [], []>} : vector<128x8xbf16>, vector<128x8xbf16>, vector<128x128xf32> -> vector<128x128xf32>
    %86 = arith.addf %85, %16 : vector<128x128xf32>
    %cst_36 = arith.constant dense<0xFF800000> : vector<128xf32>
    %87 = vector.multi_reduction <maximumf>, %86, %cst_36 [1] : vector<128x128xf32> to vector<128xf32>
    %88 = vector.shape_cast %87 : vector<128xf32> to vector<128x1xf32>
    %89 = vector.broadcast %88 : vector<128x1xf32> to vector<128x128xf32>
    %90 = arith.subf %86, %89 : vector<128x128xf32>
    %91 = math.exp %90 : vector<128x128xf32>
    %cst_37 = arith.constant dense<0.000000e+00> : vector<128xf32>
    %92 = vector.multi_reduction <add>, %91, %cst_37 [1] : vector<128x128xf32> to vector<128xf32>
    %93 = vector.shape_cast %92 : vector<128xf32> to vector<128x1xf32>
    %94 = tpu.reciprocal %93 {approx = true} : vector<128x1xf32> -> vector<128x1xf32>
    %95 = vector.broadcast %94 : vector<128x1xf32> to vector<128x128xf32>
    %96 = arith.mulf %91, %95 : vector<128x128xf32>
    %97 = arith.truncf %96 : vector<128x128xf32> to vector<128x128xbf16>
    %98 = vector.extract_strided_slice %31 {offsets = [0, 24], sizes = [128, 8], strides = [1, 1]} : vector<128x32xbf16> to vector<128x8xbf16>
    %cst_38 = arith.constant dense<0.000000e+00> : vector<128x8xf32>
    %99 = tpu.matmul %97, %98, %cst_38 {dimension_numbers = #tpu.dot_dimension_numbers<[1], [0], [0], [1], [0, 0, 1, 1], [], []>} : vector<128x128xbf16>, vector<128x8xbf16>, vector<128x8xf32> -> vector<128x8xf32>
    %100 = tpu.concatenate %48, %65, %82, %99 in 1 : vector<128x8xf32>, vector<128x8xf32>, vector<128x8xf32>, vector<128x8xf32> -> vector<128x32xf32>
    %101 = arith.truncf %100 : vector<128x32xf32> to vector<128x32xbf16>
    %cst_39 = arith.constant dense<0.000000e+00> : vector<128x32xf32>
    %102 = tpu.matmul %101, %2, %cst_39 {dimension_numbers = #tpu.dot_dimension_numbers<[1], [0], [0], [1], [0, 0, 1, 1], [], []>} : vector<128x32xbf16>, vector<32x32xbf16>, vector<128x32xf32> -> vector<128x32xf32>
    %103 = vector.broadcast %8 : vector<1x32xf32> to vector<128x32xf32>
    %104 = arith.addf %102, %103 : vector<128x32xf32>
    %105 = arith.addf %21, %104 : vector<128x32xf32>
    %cst_40 = arith.constant dense<0.000000e+00> : vector<128xf32>
    %106 = vector.multi_reduction <add>, %105, %cst_40 [1] : vector<128x32xf32> to vector<128xf32>
    %107 = vector.shape_cast %106 : vector<128xf32> to vector<128x1xf32>
    %cst_41 = arith.constant 3.200000e+01 : f32
    %108 = vector.broadcast %cst_41 : f32 to vector<128x1xf32>
    %109 = arith.divf %107, %108 : vector<128x1xf32>
    %110 = arith.mulf %105, %105 : vector<128x32xf32>
    %cst_42 = arith.constant dense<0.000000e+00> : vector<128xf32>
    %111 = vector.multi_reduction <add>, %110, %cst_42 [1] : vector<128x32xf32> to vector<128xf32>
    %112 = vector.shape_cast %111 : vector<128xf32> to vector<128x1xf32>
    %cst_43 = arith.constant 3.200000e+01 : f32
    %113 = vector.broadcast %cst_43 : f32 to vector<128x1xf32>
    %114 = arith.divf %112, %113 : vector<128x1xf32>
    %115 = vector.broadcast %109 : vector<128x1xf32> to vector<128x32xf32>
    %116 = arith.subf %105, %115 : vector<128x32xf32>
    %117 = arith.mulf %109, %109 : vector<128x1xf32>
    %118 = arith.subf %114, %117 : vector<128x1xf32>
    %cst_44 = arith.constant 9.99999974E-6 : f32
    %119 = vector.broadcast %cst_44 : f32 to vector<128x1xf32>
    %120 = arith.addf %118, %119 : vector<128x1xf32>
    %121 = math.rsqrt %120 : vector<128x1xf32>
    %122 = vector.broadcast %121 : vector<128x1xf32> to vector<128x32xf32>
    %123 = arith.mulf %116, %122 : vector<128x32xf32>
    %124 = vector.broadcast %9 : vector<1x32xf32> to vector<128x32xf32>
    %125 = arith.mulf %123, %124 : vector<128x32xf32>
    %126 = vector.broadcast %10 : vector<1x32xf32> to vector<128x32xf32>
    %127 = arith.addf %125, %126 : vector<128x32xf32>
    %128 = arith.truncf %127 : vector<128x32xf32> to vector<128x32xbf16>
    %cst_45 = arith.constant dense<0.000000e+00> : vector<128x64xf32>
    %129 = tpu.matmul %128, %3, %cst_45 {dimension_numbers = #tpu.dot_dimension_numbers<[1], [0], [0], [1], [0, 0, 1, 1], [], []>} : vector<128x32xbf16>, vector<32x64xbf16>, vector<128x64xf32> -> vector<128x64xf32>
    %130 = vector.broadcast %11 : vector<1x64xf32> to vector<128x64xf32>
    %131 = arith.addf %129, %130 : vector<128x64xf32>
    %cst_46 = arith.constant 0.000000e+00 : f32
    %132 = vector.broadcast %cst_46 : f32 to vector<128x64xf32>
    %133 = arith.maximumf %131, %132 : vector<128x64xf32>
    %134 = arith.truncf %133 : vector<128x64xf32> to vector<128x64xbf16>
    %cst_47 = arith.constant dense<0.000000e+00> : vector<128x32xf32>
    %135 = tpu.matmul %134, %4, %cst_47 {dimension_numbers = #tpu.dot_dimension_numbers<[1], [0], [0], [1], [0, 0, 1, 1], [], []>} : vector<128x64xbf16>, vector<64x32xbf16>, vector<128x32xf32> -> vector<128x32xf32>
    %136 = vector.broadcast %12 : vector<1x32xf32> to vector<128x32xf32>
    %137 = arith.addf %135, %136 : vector<128x32xf32>
    %138 = arith.addf %127, %137 : vector<128x32xf32>
    %cst_48 = arith.constant dense<0.000000e+00> : vector<128xf32>
    %139 = vector.multi_reduction <add>, %138, %cst_48 [1] : vector<128x32xf32> to vector<128xf32>
    %140 = vector.shape_cast %139 : vector<128xf32> to vector<128x1xf32>
    %cst_49 = arith.constant 3.200000e+01 : f32
    %141 = vector.broadcast %cst_49 : f32 to vector<128x1xf32>
    %142 = arith.divf %140, %141 : vector<128x1xf32>
    %143 = arith.mulf %138, %138 : vector<128x32xf32>
    %cst_50 = arith.constant dense<0.000000e+00> : vector<128xf32>
    %144 = vector.multi_reduction <add>, %143, %cst_50 [1] : vector<128x32xf32> to vector<128xf32>
    %145 = vector.shape_cast %144 : vector<128xf32> to vector<128x1xf32>
    %cst_51 = arith.constant 3.200000e+01 : f32
    %146 = vector.broadcast %cst_51 : f32 to vector<128x1xf32>
    %147 = arith.divf %145, %146 : vector<128x1xf32>
    %148 = vector.broadcast %142 : vector<128x1xf32> to vector<128x32xf32>
    %149 = arith.subf %138, %148 : vector<128x32xf32>
    %150 = arith.mulf %142, %142 : vector<128x1xf32>
    %151 = arith.subf %147, %150 : vector<128x1xf32>
    %cst_52 = arith.constant 9.99999974E-6 : f32
    %152 = vector.broadcast %cst_52 : f32 to vector<128x1xf32>
    %153 = arith.addf %151, %152 : vector<128x1xf32>
    %154 = math.rsqrt %153 : vector<128x1xf32>
    %155 = vector.broadcast %154 : vector<128x1xf32> to vector<128x32xf32>
    %156 = arith.mulf %149, %155 : vector<128x32xf32>
    %157 = vector.broadcast %13 : vector<1x32xf32> to vector<128x32xf32>
    %158 = arith.mulf %156, %157 : vector<128x32xf32>
    %159 = vector.broadcast %14 : vector<1x32xf32> to vector<128x32xf32>
    %160 = arith.addf %158, %159 : vector<128x32xf32>
    %161 = arith.truncf %160 : vector<128x32xf32> to vector<128x32xbf16>
    %cst_53 = arith.constant dense<0.000000e+00> : vector<128x8xf32>
    %162 = tpu.matmul %161, %5, %cst_53 {dimension_numbers = #tpu.dot_dimension_numbers<[1], [0], [0], [1], [0, 0, 1, 1], [], []>} : vector<128x32xbf16>, vector<32x8xbf16>, vector<128x8xf32> -> vector<128x8xf32>
    %163 = vector.broadcast %15 : vector<1x8xf32> to vector<128x8xf32>
    %164 = arith.addf %162, %163 : vector<128x8xf32>
    %c0_54 = arith.constant 0 : index
    %c0_55 = arith.constant 0 : index
    %c0_56 = arith.constant 0 : index
    %165 = vector.load %arg5[%c0_54, %c0_55, %c0_56] : memref<1x128x8xf32, #tpu.memory_space<vmem>>, vector<1x128x8xf32>
    %166 = vector.shape_cast %165 : vector<1x128x8xf32> to vector<128x8xf32>
    %167 = vector.shape_cast %164 : vector<128x8xf32> to vector<1x128x8xf32>
    tpu.vector_store %arg5[%c0_54, %c0_55, %c0_56], %167 {strides = array<i32>} : memref<1x128x8xf32, #tpu.memory_space<vmem>>, vector<1x128x8xf32>,
    return
  }
  func.func @transform_0(%arg0: i32) -> (i32, i32, i32) {
    %c0_i32 = arith.constant 0 : i32
    %c0_i32_0 = arith.constant 0 : i32
    %c0_i32_1 = arith.constant 0 : i32
    return %arg0, %c0_i32, %c0_i32_0 : i32, i32, i32
  }
  func.func @transform_1(%arg0: i32) -> (i32, i32) {
    %c0_i32 = arith.constant 0 : i32
    %c0_i32_0 = arith.constant 0 : i32
    %c0_i32_1 = arith.constant 0 : i32
    return %c0_i32, %c0_i32_0 : i32, i32
  }
  func.func @transform_2(%arg0: i32) -> (i32, i32) {
    %c0_i32 = arith.constant 0 : i32
    %c0_i32_0 = arith.constant 0 : i32
    %c0_i32_1 = arith.constant 0 : i32
    return %c0_i32, %c0_i32_0 : i32, i32
  }
  func.func @transform_3(%arg0: i32) -> (i32, i32) {
    %c0_i32 = arith.constant 0 : i32
    %c0_i32_0 = arith.constant 0 : i32
    %c0_i32_1 = arith.constant 0 : i32
    return %c0_i32, %c0_i32_0 : i32, i32
  }
  func.func @transform_4(%arg0: i32) -> (i32, i32, i32) {
    %c0_i32 = arith.constant 0 : i32
    %c0_i32_0 = arith.constant 0 : i32
    %c0_i32_1 = arith.constant 0 : i32
    return %arg0, %c0_i32, %c0_i32_0 : i32, i32, i32
  }
}

</mosaic_0001>

<bundles_post_ra>
// kernel: transam_forward.1
= control target key start
LH: loop header
LB: loop body
LE: loop exit
PB: predicated region body
PF: predicated region fallthrough
CT: control target
= control target key end

     0   :  { %s5127_s15 = smov 0   ;;  %s7205_s0 = inlined_call_operand.vmem [shape: f32[2,128,8], index: 0, kind: input, shape index: {}]   ;;  %s7206_s1 = inlined_call_operand.vmem [shape: bf16[208,128], index: 1, kind: input, shape index: {}]   ;;  %s7207_s2 = inlined_call_operand.vmem [shape: f32[144,128], index: 2, kind: input, shape index: {}]   ;;  %s7208_s3 = inlined_call_operand.vmem [shape: f32[128,128], index: 3, kind: input, shape index: {}]   ;;  %s7209_s4 = inlined_call_operand.vmem [shape: f32[2,128,8], index: 4, kind: output, shape index: {}]  }
   0x1 LB: > { %s3876_s16 = sadd.s32 4294967295, %s5086_s15   ;;  %p3880_p0 = scmp.ge.s32.totalorder %s5086_s15, 1  ;;  %s5086_s15 = sphi %s5127_s15, %s14_s15  }
   0x2   : > { %p162_p1 = scmp.lt.s32.totalorder %s5086_s15, 3 }
   0x4   : > { %p163_p2 = pnand %p3880_p0, %p162_p1 }
   0x6   : > { %166 = sbr.rel (%p163_p2) target bundleno = 4663 (0x1237), region = 36 }
   0xb   : > { %v199_v0 = vld [vmem:[%s7206_s1] sm:$0xf]  ;;  %vm314_vm0 = vcmask 1043456   ;;  %p188_p3 = scmp.lt.s32.totalorder %s3876_s16, 1  ;;  %vm289_vm1 = vcmask 64512   ;;  %v4732_v26 = vld [vmem:[%s7206_s1 + $0x10] sm:$0xff]  }
   0xc   : > { %4557 = vmatprep.subr.msk.bf16.mxu0 %vm314_vm0, %v199_v0  ;;  %v316_v1 = vsel %vm314_vm0, %v199_v0, 0  ;;  %4197 = vmatprep.subr.bf16.mxu1 %v4732_v26  ;;  %v4733_v27 = vld [vmem:[%s7206_s1 + $0x8] sm:$0xff]   ;;  %v227_v30 = vld [vmem:[%s7207_s2 + $0x18] sm:$0xff]  ;;  %v224_v31 = vld [vmem:[%s7207_s2] sm:$0xff]  ;;  %vm439_vm2 = vcmask 261120   ;;  %s5088_s12 = smov 96  }
   0xd   : > { %4180 = vmatpush3.bf16.msra.mxu0 %v316_v1  ;;  %s7323_s16 = smov (!%p188_p3, %s3876_s16), 1  ;;  %4198 = vmatpush3.bf16.msra.mxu1 %v4732_v26  ;;  %v225_v33 = vld [vmem:[%s7207_s2 + $0x8] sm:$0xff]  ;;  %v226_v34 = vld [vmem:[%s7207_s2 + $0x10] sm:$0xff]  ;;  %v231_v44 = vld [vmem:[%s7207_s2 + $0x38] sm:$0xff]  ;;  %s5089_s13 = smov 64   ;;  %vm2569_vm3 = vcmask 130048  }
   0xe   : > { %s3988_s19 = sshll.u32 %s7323_s16, 7  ;;  %4199 = vmatprep.subr.bf16.mxu1 %v4733_v27  ;;  %v228_v45 = vld [vmem:[%s7207_s2 + $0x20] sm:$0xff]  ;;  %v229_v47 = vld [vmem:[%s7207_s2 + $0x28] sm:$0xff]  ;;  %v230_v48 = vld [vmem:[%s7207_s2 + $0x30] sm:$0xff]  ;;  %s5090_s25 = smov 88   ;;  %vm2586_vm4 = vcmask 195584  }
   0xf   : > { %s5146_s22 = scalar_lea.vmem %s7205_s0, %s3988_s19  ;;  %v235_v58 = vld [vmem:[%s7207_s2 + $0x58] sm:$0xff]  ;;  %v232_v59 = vld [vmem:[%s7207_s2 + $0x40] sm:$0xff]  ;;  %v233_v61 = vld [vmem:[%s7207_s2 + $0x48] sm:$0xff]  ;;  %s5091_s28 = smov 120   ;;  %vm3242_vm5 = vcmask 523264  }
  0x10   : > { %v265_v2 = vld [vmem:[%s5146_s22] sm:$0xff]  ;;  %v266_v3 = vld [vmem:[%s5146_s22 + $0x8] sm:$0xff]  ;;  %v267_v4 = vld [vmem:[%s5146_s22 + $0x10] sm:$0xff]  ;;  %s5092_s29 = smov 56   ;;  %s5094_s30 = smov 112  }
  0x11   : > { %v281_v5 = vpack.c.bf16 %v266_v3, %v265_v2  ;;  %v268_v6 = vld [vmem:[%s5146_s22 + $0x18] sm:$0xff]  ;;  %v269_v7 = vld [vmem:[%s5146_s22 + $0x20] sm:$0xff]  ;;  %v270_v8 = vld [vmem:[%s5146_s22 + $0x28] sm:$0xff]  ;;  %4200 = vmatpush3.bf16.msra.mxu1 %v4733_v27  ;;  %s5095_s5 = smov 48   ;;  %s5097_s18 = smov 104  }
  0x12   : > { %v282_v9 = vpack.c.bf16 %v268_v6, %v267_v4  ;;  %v283_v10 = vpack.c.bf16 %v270_v8, %v269_v7  ;;  %v271_v11 = vld [vmem:[%s5146_s22 + $0x30] sm:$0xff]  ;;  %v272_v12 = vld [vmem:[%s5146_s22 + $0x38] sm:$0xff]  ;;  %v273_v13 = vld [vmem:[%s5146_s22 + $0x40] sm:$0xff]  ;;  %s5098_s20 = smov 40   ;;  %s5099_s21 = smov 8  }
  0x13   : > { %4181 = vmatprep.mubr.msk.bf16.mxu0 %vm289_vm1, %v281_v5  ;;  %v274_v14 = vld [vmem:[%s5146_s22 + $0x48] sm:$0xff]  ;;  %v284_v15 = vpack.c.bf16 %v272_v12, %v271_v11  ;;  %v275_v17 = vld [vmem:[%s5146_s22 + $0x50] sm:$0xff]  ;;  %v276_v18 = vld [vmem:[%s5146_s22 + $0x58] sm:$0xff]  ;;  %s7168_s14 = scalar_lea.vmem %s7209_s4, %s3988_s19 }
  0x14   : > { %4182 = vmatmul.mubr.msk.bf16.vlgmr.msra.gmra.mxu0 %vm289_vm1, %v282_v9  ;;  %v285_v16 = vpack.c.bf16 %v274_v14, %v273_v13  ;;  %v277_v19 = vld [vmem:[%s5146_s22 + $0x60] sm:$0xff]  ;;  %v278_v20 = vld [vmem:[%s5146_s22 + $0x68] sm:$0xff]  ;;  %v286_v21 = vpack.c.bf16 %v276_v18, %v275_v17  ;;  %v279_v23 = vld [vmem:[%s5146_s22 + $0x70] sm:$0xff] }
  0x15   : > { %4185 = vmatprep.mubr.msk.bf16.mxu0 %vm289_vm1, %v283_v10  ;;  %v287_v22 = vpack.c.bf16 %v278_v20, %v277_v19  ;;  %v280_v24 = vld [vmem:[%s5146_s22 + $0x78] sm:$0xff]  ;;  %v234_v62 = vld [vmem:[%s7207_s2 + $0x50] sm:$0xff]  ;;  %v236_v9 = vld [vmem:[%s7207_s2 + $0x60] sm:$0xff]  ;;  %s5100_s22 = smov 16  }
  0x16   : > { %v288_v25 = vpack.c.bf16 %v280_v24, %v279_v23  ;;  %v239_v8 = vld [vmem:[%s7207_s2 + $0x78] sm:$0xff]  ;;  %v237_v11 = vld [vmem:[%s7207_s2 + $0x68] sm:$0xff]  ;;  %v238_v12 = vld [vmem:[%s7207_s2 + $0x70] sm:$0xff] }
  0x17   : > { %v3893_v23 = vld [vmem:[%s7207_s2 + $0x80] ss:$0 sm:$0xff] }
  0x1c   : > { %4186 = vmatmul.mubr.msk.bf16.gmra.mxu0 %vm289_vm1, %v284_v15 }
  0x1d   : > { %4189 = vmatprep.mubr.msk.bf16.mxu0 %vm289_vm1, %v285_v16 }
  0x24   : > { %4190 = vmatmul.mubr.msk.bf16.gmra.mxu0 %vm289_vm1, %v286_v21 }
  0x25   : > { %4193 = vmatprep.mubr.msk.bf16.mxu0 %vm289_vm1, %v287_v22 }
  0x2c   : > { %4194 = vmatmul.mubr.msk.bf16.gmra.mxu0 %vm289_vm1, %v288_v25 }
  0xd4   : > { %v4183_v28 = vpop.f32.mrf.mxu0 }
  0xd5   : > { %v5196_v39 = vadd.f32 %v4183_v28, %v226_v34 }
  0xd6   : > { %v352_v29 = vpop.f32.mrf.mxu0 }
  0xd7   : > { %v5192_v37 = vadd.f32 %v352_v29, %v224_v31  ;;  %7236 = vst [vmem:[#allocation5_spill] sm:$0xff] %v5196_v39 }
  0xd8   : > { %v4184_v32 = vpop.f32.mrf.mxu0 }
  0xd9   : > { %v5190_v35 = vadd.f32 %v4184_v32, %v227_v30  ;;  %7234 = vst [vmem:[#allocation3_spill] sm:$0xff] %v5192_v37 }
  0xda   : > { %v355_v36 = vpop.f32.mrf.mxu0 }
  0xdb   : > { %7233 = vst [vmem:[#allocation2_spill] sm:$0xff] %v5190_v35  ;;  %v5194_v38 = vadd.f32 %v355_v36, %v225_v33  ;;  %v416_v42 = vpack.c.bf16 %v5190_v35, %v5196_v39  ;;  %v6006_v35 = vld [vmem:[%s7208_s3 + $0x50] sm:$0xff] }
  0xdc   : > { %v4187_v40 = vpop.f32.mrf.mxu0 }
  0xdd   : > { %7235 = vst [vmem:[#allocation4_spill] sm:$0xff] %v5194_v38  ;;  %v415_v41 = vpack.c.bf16 %v5194_v38, %v5192_v37  ;;  %v5222_v53 = vadd.f32 %v4187_v40, %v230_v48  ;;  %v6014_v37 = vld [vmem:[%s7208_s3 + $0x58] sm:$0xff] }
  0xde   : > { %v368_v43 = vpop.f32.mrf.mxu0 }
  0xdf   : > { %4201 = vmatprep.mubr.msk.bf16.mxu1 %vm439_vm2, %v415_v41  ;;  %v5218_v51 = vadd.f32 %v368_v43, %v228_v45  ;;  %7240 = vst [vmem:[#allocation9_spill] sm:$0xff] %v5222_v53 }
  0xe0   : > { %v4188_v46 = vpop.f32.mrf.mxu0  ;;  %4202 = vmatmul.mubr.msk.bf16.vlgmr.msra.gmra.mxu1 %vm439_vm2, %v416_v42 }
  0xe1   : > { %v5216_v49 = vadd.f32 %v4188_v46, %v231_v44  ;;  %7238 = vst [vmem:[#allocation7_spill] sm:$0xff] %v5218_v51 }
  0xe2   : > { %v371_v50 = vpop.f32.mrf.mxu0 }
  0xe3   : > { %7237 = vst [vmem:[#allocation6_spill] sm:$0xff] %v5216_v49  ;;  %v5220_v52 = vadd.f32 %v371_v50, %v229_v47  ;;  %v418_v56 = vpack.c.bf16 %v5216_v49, %v5222_v53  ;;  %v5996_v53 = vld [vmem:[%s7208_s3 + $0x28] sm:$0xff] }
  0xe4   : > { %v4191_v54 = vpop.f32.mrf.mxu0 }
  0xe5   : > { %7239 = vst [vmem:[#allocation8_spill] sm:$0xff] %v5220_v52  ;;  %v417_v55 = vpack.c.bf16 %v5220_v52, %v5218_v51  ;;  %v5248_v3 = vadd.f32 %v4191_v54, %v234_v62 }
  0xe6   : > { %v384_v57 = vpop.f32.mrf.mxu0 }
  0xe7   : > { %4205 = vmatprep.mubr.msk.bf16.mxu1 %vm439_vm2, %v417_v55  ;;  %v5244_v1 = vadd.f32 %v384_v57, %v232_v59  ;;  %7244 = vst [vmem:[#allocation13_spill] sm:$0xff] %v5248_v3 }
  0xe8   : > { %v4192_v60 = vpop.f32.mrf.mxu0  ;;  %4206 = vmatmul.mubr.msk.bf16.gmra.mxu1 %vm439_vm2, %v418_v56 }
  0xe9   : > { %v5242_v63 = vadd.f32 %v4192_v60, %v235_v58  ;;  %7242 = vst [vmem:[#allocation11_spill] sm:$0xff] %v5244_v1 }
  0xea   : > { %v387_v0 = vpop.f32.mrf.mxu0 }
  0xeb   : > { %7241 = vst [vmem:[#allocation10_spill] sm:$0xff] %v5242_v63  ;;  %v5246_v2 = vadd.f32 %v387_v0, %v233_v61  ;;  %v420_v6 = vpack.c.bf16 %v5242_v63, %v5248_v3 }
  0xec   : > { %v4195_v4 = vpop.f32.mrf.mxu0 }
  0xed   : > { %7243 = vst [vmem:[#allocation12_spill] sm:$0xff] %v5246_v2  ;;  %v419_v5 = vpack.c.bf16 %v5246_v2, %v5244_v1  ;;  %v5274_v17 = vadd.f32 %v4195_v4, %v238_v12 }
  0xee   : > { %v400_v7 = vpop.f32.mrf.mxu0 }
  0xef   : > { %4209 = vmatprep.mubr.msk.bf16.mxu1 %vm439_vm2, %v419_v5  ;;  %v5270_v15 = vadd.f32 %v400_v7, %v236_v9  ;;  %7248 = vst [vmem:[#allocation17_spill] sm:$0xff] %v5274_v17 }
  0xf0   : > { %v4196_v10 = vpop.f32.mrf.mxu0  ;;  %4210 = vmatmul.mubr.msk.bf16.gmra.mxu1 %vm439_vm2, %v420_v6 }
  0xf1   : > { %v5268_v13 = vadd.f32 %v4196_v10, %v239_v8  ;;  %7246 = vst [vmem:[#allocation15_spill] sm:$0xff] %v5270_v15 }
  0xf2   : > { %v403_v14 = vpop.f32.mrf.mxu0 }
  0xf3   : > { %7245 = vst [vmem:[#allocation14_spill] sm:$0xff] %v5268_v13  ;;  %v5272_v16 = vadd.f32 %v403_v14, %v237_v11  ;;  %v422_v19 = vpack.c.bf16 %v5268_v13, %v5274_v17 }
  0xf5   : > { %7247 = vst [vmem:[#allocation16_spill] sm:$0xff] %v5272_v16  ;;  %v421_v18 = vpack.c.bf16 %v5272_v16, %v5270_v15 }
  0xf7   : > { %4213 = vmatprep.mubr.msk.bf16.mxu1 %vm439_vm2, %v421_v18 }
  0xf8   : > { %4214 = vmatmul.mubr.msk.bf16.gmra.mxu1 %vm439_vm2, %v422_v19 }
 0x1a0   : > { %v4203_v20 = vpop.f32.mrf.mxu1 }
 0x1a1   : > { %v507_v7 = vadd.f32 %v4203_v20, %v3893_v23 }
 0x1a2   : > { %v498_v21 = vpop.f32.mrf.mxu1 }
 0x1a3   : > { %v499_v25 = vadd.f32 %v3893_v23, %v498_v21 }
 0x1a4   : > { %v4204_v22 = vpop.f32.mrf.mxu1 }
 0x1a5   : > { %v510_v5 = vadd.f32 %v4204_v22, %v3893_v23 }
 0x1a6   : > { %v501_v24 = vpop.f32.mrf.mxu1 }
 0x1a7   : > { %v502_v26 = vadd.f32 %v3893_v23, %v501_v24  ;;  %v5309_v8 = vpack.c.bf16 %v510_v5, %v507_v7 }
 0x1a8   : > { %v4207_v27 = vpop.f32.mrf.mxu1 }
 0x1a9   : > { %v5285_v28 = vpack.c.bf16 %v502_v26, %v499_v25  ;;  %v523_v4 = vadd.f32 %v4207_v27, %v3893_v23 }
 0x1aa   : > { %v514_v29 = vpop.f32.mrf.mxu1 }
 0x1ab   : > { %4233 = vmatprep.mubr.msk.bf16.mxu0 %vm289_vm1, %v5285_v28  ;;  %v515_v54 = vadd.f32 %v3893_v23, %v514_v29 }
 0x1ac   : > { %v4208_v30 = vpop.f32.mrf.mxu1 }
 0x1ad   : > { %v526_v62 = vadd.f32 %v4208_v30, %v3893_v23 }
 0x1ae   : > { %v517_v31 = vpop.f32.mrf.mxu1 }
 0x1af   : > { %v518_v47 = vadd.f32 %v3893_v23, %v517_v31  ;;  %v5305_v6 = vpack.c.bf16 %v526_v62, %v523_v4 }
 0x1b0   : > { %v4211_v32 = vpop.f32.mrf.mxu1 }
 0x1b1   : > { %v539_v36 = vadd.f32 %v4211_v32, %v3893_v23  ;;  %v5295_v58 = vpack.c.bf16 %v518_v47, %v515_v54  ;;  %v5360_v47 = vld [vmem:[%s7208_s3] sm:$0xff]  ;;  %v5366_v54 = vld [vmem:[%s7208_s3 + $0x8] sm:$0xff] }
 0x1b2   : > { %v530_v33 = vpop.f32.mrf.mxu1 }
 0x1b3   : > { %v531_v45 = vadd.f32 %v3893_v23, %v530_v33 }
 0x1b4   : > { %v4212_v34 = vpop.f32.mrf.mxu1 }
 0x1b5   : > { %v542_v40 = vadd.f32 %v4212_v34, %v3893_v23 }
 0x1b6   : > { %v533_v41 = vpop.f32.mrf.mxu1 }
 0x1b7   : > { %v5289_v42 = vpack.c.bf16 %v542_v40, %v539_v36  ;;  %v534_v43 = vadd.f32 %v3893_v23, %v533_v41 }
 0x1b8   : > { %v4215_v44 = vpop.f32.mrf.mxu1 }
 0x1b9   : > { %587 = vrot.lane.b32.xlu1 %v5289_v42, %s5088_s12  ;;  %v5292_v48 = vpack.c.bf16 %v534_v43, %v531_v45  ;;  %v555_v55 = vadd.f32 %v4215_v44, %v3893_v23  ;;  %v5352_v43 = vld [vmem:[%s7208_s3 + $0x10] sm:$0xff] }
 0x1ba   : > { %v546_v46 = vpop.f32.mrf.mxu1 }
 0x1bb   : > { %v547_v61 = vadd.f32 %v3893_v23, %v546_v46 }
 0x1bc   : > { %v4216_v50 = vpop.f32.mrf.mxu1 }
 0x1bd   : > { %v558_v56 = vadd.f32 %v4216_v50, %v3893_v23  ;;  %585 = vrot.lane.b32.xlu1 %v5292_v48, %s5088_s12 }
 0x1be   : > { %v549_v57 = vpop.f32.mrf.mxu1 }
 0x1bf   : > { %v5297_v59 = vpack.c.bf16 %v558_v56, %v555_v55  ;;  %v550_v60 = vadd.f32 %v3893_v23, %v549_v57  ;;  %v5374_v56 = vld [vmem:[%s7208_s3 + $0x18] sm:$0xff] }
 0x1c1   : > { %591 = vrot.lane.b32.xlu0 %v5297_v59, %s5088_s12  ;;  %581 = vrot.lane.b32.xlu1 %v5295_v58, %s5088_s12  ;;  %v5301_v0 = vpack.c.bf16 %v550_v60, %v547_v61 }
 0x1c5   : > { %589 = vrot.lane.b32.xlu0 %v5301_v0, %s5088_s12  ;;  %577 = vrot.lane.b32.xlu1 %v5285_v28, %s5088_s12 }
 0x1c9   : > { %583 = vrot.lane.b32.xlu0 %v5305_v6, %s5088_s12  ;;  %904 = vrot.lane.b32.xlu1 %v5297_v59, %s5089_s13 }
 0x1cd   : > { %579 = vrot.lane.b32.xlu0 %v5309_v8, %s5088_s12  ;;  %898 = vrot.lane.b32.xlu1 %v5292_v48, %s5089_s13  ;;  %s5096_s12 = smov 72  }
 0x1d1   : > { %900 = vrot.lane.b32.xlu0 %v5289_v42, %s5089_s13  ;;  %896 = vrot.lane.b32.xlu1 %v5305_v6, %s5089_s13 }
 0x1d5   : > { %894 = vrot.lane.b32.xlu1 %v5295_v58, %s5089_s13 }
 0x1d9   : > { %892 = vrot.lane.b32.xlu1 %v5309_v8, %s5089_s13 }
 0x1dd   : > { %890 = vrot.lane.b32.xlu1 %v5285_v28, %s5089_s13 }
 0x1e1   : > { %902 = vrot.lane.b32.xlu1 %v5301_v0, %s5089_s13 }
 0x22b   : > { %v588_v9 = vpop.permute.xlu1 %587 }
 0x22c   : > { %v633_v24 = vsel %vm289_vm1, %v588_v9, 0 }
 0x22f   : > { %v586_v10 = vpop.permute.xlu1 %585 }
 0x230   : > { %v630_v29 = vsel %vm289_vm1, %v586_v10, 0 }
 0x233   : > { %v592_v11 = vpop.permute.xlu0 %591  ;;  %v582_v12 = vpop.permute.xlu1 %581 }
 0x234   : > { %4558 = vmatprep.subr.msk.bf16.mxu0 %vm289_vm1, %v592_v11  ;;  %v639_v14 = vsel %vm289_vm1, %v592_v11, 0  ;;  %v624_v36 = vsel %vm289_vm1, %v582_v12, 0  ;;  %v5392_v11 = vld [vmem:[%s7208_s3 + $0x30] sm:$0xff] }
 0x235   : > { %4218 = vmatpush3.bf16.xpose.msra.mxu0 %v639_v14 }
 0x237   : > { %v590_v18 = vpop.permute.xlu0 %589  ;;  %v578_v19 = vpop.permute.xlu1 %577 }
 0x238   : > { %4559 = vmatprep.subr.msk.bf16.mxu0 %vm289_vm1, %v590_v18  ;;  %v636_v21 = vsel %vm289_vm1, %v590_v18, 0  ;;  %v618_v41 = vsel %vm289_vm1, %v578_v19, 0 }
 0x23b   : > { %v905_v20 = vpop.permute.xlu1 %904  ;;  %v584_v26 = vpop.permute.xlu0 %583 }
 0x23c   : > { %4249 = vmatprep.subr.bf16.mxu1 %v905_v20  ;;  %v627_v33 = vsel %vm289_vm1, %v584_v26, 0 }
 0x23d   : > { %4220 = vmatpush3.bf16.xpose.msra.mxu0 %v636_v21  ;;  %4250 = vmatpush3.bf16.msra.mxu1 %v905_v20  ;;  %v5414_v21 = vld [vmem:[%s7208_s3 + $0x28] sm:$0xff] }
 0x23e   : > { %4560 = vmatprep.subr.msk.bf16.mxu0 %vm289_vm1, %v588_v9 }
 0x23f   : > { %v899_v22 = vpop.permute.xlu1 %898  ;;  %v580_v30 = vpop.permute.xlu0 %579 }
 0x240   : > { %v621_v40 = vsel %vm289_vm1, %v580_v30, 0 }
 0x243   : > { %v897_v23 = vpop.permute.xlu1 %896  ;;  %v901_v34 = vpop.permute.xlu0 %900 }
 0x245   : > { %4222 = vmatpush3.bf16.xpose.msra.mxu0 %v633_v24  ;;  %v5423_v24 = vld [vmem:[%s7208_s3 + $0x50] sm:$0xff] }
 0x246   : > { %4561 = vmatprep.subr.msk.bf16.mxu0 %vm289_vm1, %v586_v10 }
 0x247   : > { %v895_v25 = vpop.permute.xlu1 %894 }
 0x24b   : > { %v893_v27 = vpop.permute.xlu1 %892 }
 0x24d   : > { %4224 = vmatpush3.bf16.xpose.msra.mxu0 %v630_v29 }
 0x24e   : > { %4562 = vmatprep.subr.msk.bf16.mxu0 %vm289_vm1, %v584_v26  ;;  %v5432_v26 = vld [vmem:[%s7208_s3 + $0x58] sm:$0xff] }
 0x24f   : > { %v891_v31 = vpop.permute.xlu1 %890 }
 0x253   : > { %v903_v32 = vpop.permute.xlu1 %902 }
 0x254   : > { %4251 = vmatprep.subr.bf16.mxu1 %v903_v32 }
 0x255   : > { %4226 = vmatpush3.bf16.xpose.msra.mxu0 %v627_v33  ;;  %4252 = vmatpush3.bf16.msra.mxu1 %v903_v32  ;;  %v5450_v32 = vld [vmem:[%s7208_s3 + $0x48] sm:$0xff] }
 0x256   : > { %4563 = vmatprep.subr.msk.bf16.mxu0 %vm289_vm1, %v582_v12  ;;  %4253 = vmatprep.subr.bf16.mxu1 %v901_v34  ;;  %v5397_v12 = vld [vmem:[%s7208_s3 + $0x38] sm:$0xff] }
 0x259   : > { %4254 = vmatpush3.bf16.msra.mxu1 %v901_v34 }
 0x25a   : > { %4255 = vmatprep.subr.bf16.mxu1 %v899_v22 }
 0x25d   : > { %4228 = vmatpush3.bf16.xpose.msra.mxu0 %v624_v36  ;;  %4256 = vmatpush3.bf16.msra.mxu1 %v899_v22  ;;  %v5459_v36 = vld [vmem:[%s7208_s3 + $0x70] sm:$0xff] }
 0x25e   : > { %4564 = vmatprep.subr.msk.bf16.mxu0 %vm289_vm1, %v580_v30  ;;  %4257 = vmatprep.subr.bf16.mxu1 %v897_v23  ;;  %v5441_v30 = vld [vmem:[%s7208_s3 + $0x40] sm:$0xff] }
 0x261   : > { %4258 = vmatpush3.bf16.msra.mxu1 %v897_v23 }
 0x262   : > { %4259 = vmatprep.subr.bf16.mxu1 %v895_v25 }
 0x265   : > { %4230 = vmatpush3.bf16.xpose.msra.mxu0 %v621_v40  ;;  %4260 = vmatpush3.bf16.msra.mxu1 %v895_v25 }
 0x266   : > { %4565 = vmatprep.subr.msk.bf16.mxu0 %vm289_vm1, %v578_v19  ;;  %4261 = vmatprep.subr.bf16.mxu1 %v893_v27  ;;  %v5405_v19 = vld [vmem:[%s7208_s3 + $0x20] sm:$0xff] }
 0x269   : > { %4262 = vmatpush3.bf16.msra.mxu1 %v893_v27 }
 0x26a   : > { %4263 = vmatprep.subr.bf16.mxu1 %v891_v31 }
 0x26d   : > { %4232 = vmatpush3.bf16.xpose.msra.mxu0 %v618_v41  ;;  %4264 = vmatpush3.bf16.msra.mxu1 %v891_v31  ;;  %v5468_v41 = vld [vmem:[%s7208_s3 + $0x78] sm:$0xff] }
 0x274   : > { %4234 = vmatmul.mubr.msk.bf16.vlgmr.msra.gmra.mxu0 %vm289_vm1, %v5309_v8 }
 0x275   : > { %4237 = vmatprep.mubr.msk.bf16.mxu0 %vm289_vm1, %v5295_v58 }
 0x27c   : > { %4238 = vmatmul.mubr.msk.bf16.gmra.mxu0 %vm289_vm1, %v5305_v6 }
 0x27d   : > { %4241 = vmatprep.mubr.msk.bf16.mxu0 %vm289_vm1, %v5292_v48 }
 0x284   : > { %4242 = vmatmul.mubr.msk.bf16.gmra.mxu0 %vm289_vm1, %v5289_v42 }
 0x285   : > { %4245 = vmatprep.mubr.msk.bf16.mxu0 %vm289_vm1, %v5301_v0 }
 0x28c   : > { %4246 = vmatmul.mubr.msk.bf16.gmra.mxu0 %vm289_vm1, %v5297_v59 }
 0x334   : > { %v4235_v44 = vpop.f32.mrf.mxu0 }
 0x335   : > { %v5355_v45 = vadd.f32 %v4235_v44, %v5352_v43 }
 0x336   : > { %v675_v46 = vpop.f32.mrf.mxu0 }
 0x337   : > { %742 = vmax.xlane.f32.xlu0 %v5355_v45  ;;  %v5369_v55 = vadd.f32 %v675_v46, %v5360_v47 }
 0x338   : > { %v4236_v50 = vpop.f32.mrf.mxu0 }
 0x339   : > { %v5381_v61 = vadd.f32 %v4236_v50, %v5374_v56  ;;  %v5477_v50 = vld [vmem:[%s7208_s3 + $0x60] sm:$0xff] }
 0x33a   : > { %v678_v57 = vpop.f32.mrf.mxu0 }
 0x33b   : > { %v5377_v60 = vadd.f32 %v678_v57, %v5366_v54  ;;  %738 = vmax.xlane.f32.xlu0 %v5369_v55 }
 0x33c   : > { %v4239_v62 = vpop.f32.mrf.mxu0 }
 0x33d   : > { %740 = vmax.xlane.f32.xlu1 %v5377_v60  ;;  %v5400_v18 = vadd.f32 %v4239_v62, %v5392_v11 }
 0x33e   : > { %v691_v4 = vpop.f32.mrf.mxu0 }
 0x33f   : > { %744 = vmax.xlane.f32.xlu0 %v5381_v61  ;;  %v5417_v23 = vadd.f32 %v691_v4, %v5405_v19  ;;  %v5486_v4 = vld [vmem:[%s7208_s3 + $0x68] sm:$0xff] }
 0x340   : > { %v4240_v5 = vpop.f32.mrf.mxu0 }
 0x341   : > { %v5408_v20 = vadd.f32 %v4240_v5, %v5397_v12 }
 0x342   : > { %v694_v7 = vpop.f32.mrf.mxu0 }
 0x343   : > { %v5426_v25 = vadd.f32 %v694_v7, %v5414_v21 }
 0x344   : > { %v4243_v9 = vpop.f32.mrf.mxu0 }
 0x345   : > { %v5435_v29 = vadd.f32 %v4243_v9, %v5423_v24 }
 0x346   : > { %v707_v10 = vpop.f32.mrf.mxu0 }
 0x347   : > { %v5453_v34 = vadd.f32 %v707_v10, %v5441_v30 }
 0x348   : > { %v4244_v14 = vpop.f32.mrf.mxu0 }
 0x349   : > { %v5444_v31 = vadd.f32 %v4244_v14, %v5432_v26 }
 0x34a   : > { %v710_v22 = vpop.f32.mrf.mxu0 }
 0x34b   : > { %v5462_v40 = vadd.f32 %v710_v22, %v5450_v32 }
 0x34c   : > { %v4247_v27 = vpop.f32.mrf.mxu0 }
 0x34d   : > { %v5471_v46 = vadd.f32 %v4247_v27, %v5459_v36 }
 0x34e   : > { %1039 = vrot.lane.b32.xlu1 %v5301_v0, %s5090_s25  ;;  %v723_v33 = vpop.f32.mrf.mxu0 }
 0x34f   : > { %v5489_v5 = vadd.f32 %v723_v33, %v5477_v50 }
 0x350   : > { %v4248_v44 = vpop.f32.mrf.mxu0 }
 0x351   : > { %v5480_v57 = vadd.f32 %v4248_v44, %v5468_v41 }
 0x352   : > { %v726_v62 = vpop.f32.mrf.mxu0 }
 0x353   : > { %v5493_v7 = vadd.f32 %v726_v62, %v5486_v4 }
 0x355   : > { %1041 = vrot.lane.b32.xlu0 %v5297_v59, %s5090_s25 }
 0x372   : > { %750 = vmax.xlane.f32.xlu1 %v5400_v18 }
 0x374   : > { %752 = vmax.xlane.f32.xlu0 %v5408_v20 }
 0x376   : > { %746 = vmax.xlane.f32.xlu1 %v5417_v23 }
 0x378   : > { %748 = vmax.xlane.f32.xlu0 %v5426_v25 }
 0x37a   : > { %758 = vmax.xlane.f32.xlu1 %v5435_v29 }
 0x37c   : > { %760 = vmax.xlane.f32.xlu0 %v5444_v31 }
 0x37e   : > { %754 = vmax.xlane.f32.xlu1 %v5453_v34 }
 0x380   : > { %756 = vmax.xlane.f32.xlu0 %v5462_v40 }
 0x382   : > { %766 = vmax.xlane.f32.xlu1 %v5471_v46 }
 0x384   : > { %768 = vmax.xlane.f32.xlu0 %v5480_v57 }
 0x386   : > { %762 = vmax.xlane.f32.xlu1 %v5489_v5 }
 0x388   : > { %764 = vmax.xlane.f32.xlu0 %v5493_v7 }
 0x397   : > { %1037 = vrot.lane.b32.xlu1 %v5289_v42, %s5090_s25 }
 0x3c0   : > { %v743_v9 = vpop.xlane.xlu0 %742 }
 0x3c1   : > { %v772_v10 = vsub.f32 %v5355_v45, %v743_v9 }
 0x3c3   : > { %v790_v14 = vmul.f32 1.442695, %v772_v10 }
 0x3c4   : > { %v739_v22 = vpop.xlane.xlu0 %738 }
 0x3c5   : > { %4744 = vpow2.f32 %v790_v14  ;;  %v770_v27 = vsub.f32 %v5369_v55, %v739_v22 }
 0x3c6   : > { %v741_v33 = vpop.xlane.xlu1 %740 }
 0x3c7   : > { %v786_v44 = vmul.f32 1.442695, %v770_v27  ;;  %v771_v62 = vsub.f32 %v5377_v60, %v741_v33 }
 0x3c8   : > { %v745_v16 = vpop.xlane.xlu0 %744 }
 0x3c9   : > { %4746 = vpow2.f32 %v786_v44  ;;  %v773_v13 = vsub.f32 %v5381_v61, %v745_v16  ;;  %v788_v2 = vmul.f32 1.442695, %v771_v62 }
 0x3cb   : > { %v792_v15 = vmul.f32 1.442695, %v773_v13 }
 0x3cc   : > { %v5503_v17 = vpop.permute.xlu0 %1041 }
 0x3cd   : > { %4748 = vpow2.f32 %v792_v15  ;;  %4566 = vmatprep.subr.msk.bf16.mxu1 %vm289_vm1, %v5503_v17  ;;  %v5519_v15 = vpop.permute.xlu1 %1039 }
 0x3ce   : > { %4750 = vpow2.f32 %v788_v2 }
 0x3d2   : > { %v5507_v45 = vpop.eup %4744 }
 0x3d3   : > { %822 = vadd.xlane.f32.xlu0 %v5507_v45 }
 0x3d6   : > { %v5510_v55 = vpop.eup %4746 }
 0x3d7   : > { %818 = vadd.xlane.f32.xlu0 %v5510_v55 }
 0x3da   : > { %v5513_v60 = vpop.eup %4748 }
 0x3db   : > { %824 = vadd.xlane.f32.xlu0 %v5513_v60  ;;  %v5516_v13 = vpop.eup %4750 }
 0x3df   : > { %820 = vadd.xlane.f32.xlu0 %v5516_v13 }
 0x3fb   : > { %v751_v16 = vpop.xlane.xlu1 %750 }
 0x3fc   : > { %v776_v2 = vsub.f32 %v5400_v18, %v751_v16 }
 0x3fd   : > { %v753_v61 = vpop.xlane.xlu0 %752 }
 0x3fe   : > { %v798_v9 = vmul.f32 1.442695, %v776_v2  ;;  %v777_v14 = vsub.f32 %v5408_v20, %v753_v61 }
 0x3ff   : > { %v747_v10 = vpop.xlane.xlu1 %746 }
 0x400   : > { %4752 = vpow2.f32 %v798_v9  ;;  %v774_v22 = vsub.f32 %v5417_v23, %v747_v10  ;;  %v800_v62 = vmul.f32 1.442695, %v777_v14 }
 0x401   : > { %v749_v27 = vpop.xlane.xlu0 %748 }
 0x402   : > { %v794_v33 = vmul.f32 1.442695, %v774_v22  ;;  %v775_v44 = vsub.f32 %v5426_v25, %v749_v27 }
 0x403   : > { %v759_v9 = vpop.xlane.xlu1 %758 }
 0x404   : > { %4754 = vpow2.f32 %v794_v33  ;;  %v796_v1 = vmul.f32 1.442695, %v775_v44  ;;  %v780_v14 = vsub.f32 %v5435_v29, %v759_v9 }
 0x405   : > { %v761_v25 = vpop.xlane.xlu0 %760 }
 0x406   : > { %4756 = vpow2.f32 %v796_v1  ;;  %v806_v27 = vmul.f32 1.442695, %v780_v14  ;;  %v781_v44 = vsub.f32 %v5444_v31, %v761_v25 }
 0x407   : > { %4758 = vpow2.f32 %v800_v62  ;;  %v755_v22 = vpop.xlane.xlu1 %754 }
 0x408   : > { %v778_v33 = vsub.f32 %v5453_v34, %v755_v22  ;;  %v808_v52 = vmul.f32 1.442695, %v781_v44 }
 0x409   : > { %v757_v16 = vpop.xlane.xlu0 %756 }
 0x40a   : > { %v802_v62 = vmul.f32 1.442695, %v778_v33  ;;  %v779_v51 = vsub.f32 %v5462_v40, %v757_v16 }
 0x40b   : > { %v767_v3 = vpop.xlane.xlu1 %766 }
 0x40c   : > { %v784_v29 = vsub.f32 %v5471_v46, %v767_v3 }
 0x40d   : > { %v5525_v63 = vpop.eup %4752  ;;  %v769_v1 = vpop.xlane.xlu0 %768 }
 0x40e   : > { %830 = vadd.xlane.f32.xlu0 %v5525_v63  ;;  %v814_v34 = vmul.f32 1.442695, %v784_v29  ;;  %v785_v40 = vsub.f32 %v5480_v57, %v769_v1 }
 0x411   : > { %v5528_v18 = vpop.eup %4754  ;;  %v765_v2 = vpop.xlane.xlu0 %764 }
 0x412   : > { %826 = vadd.xlane.f32.xlu0 %v5528_v18  ;;  %v783_v61 = vsub.f32 %v5493_v7, %v765_v2  ;;  %v804_v7 = vmul.f32 1.442695, %v779_v51  ;;  %v763_v2 = vpop.xlane.xlu1 %762  ;;  %v816_v51 = vmul.f32 1.442695, %v785_v40  ;;  %v1089_v40 = vsel %vm289_vm1, %v5503_v17, 0 }
 0x413   : > { %v5531_v20 = vpop.eup %4756 }
 0x414   : > { %828 = vadd.xlane.f32.xlu1 %v5531_v20  ;;  %v5534_v23 = vpop.eup %4758  ;;  %v812_v10 = vmul.f32 1.442695, %v783_v61  ;;  %v782_v61 = vsub.f32 %v5489_v5, %v763_v2 }
 0x416   : > { %832 = vadd.xlane.f32.xlu0 %v5534_v23  ;;  %4760 = vpow2.f32 %v812_v10  ;;  %v810_v25 = vmul.f32 1.442695, %v782_v61 }
 0x417   : > { %4762 = vpow2.f32 %v806_v27 }
 0x418   : > { %4764 = vpow2.f32 %v802_v62 }
 0x419   : > { %4766 = vpow2.f32 %v808_v52 }
 0x41a   : > { %4768 = vpow2.f32 %v804_v7 }
 0x41b   : > { %4770 = vpow2.f32 %v814_v34 }
 0x41c   : > { %4772 = vpow2.f32 %v810_v25 }
 0x41d   : > { %4774 = vpow2.f32 %v816_v51 }
 0x423   : > { %v5548_v49 = vpop.eup %4760 }
 0x424   : > { %v5553_v31 = vpop.eup %4762 }
 0x425   : > { %1035 = vrot.lane.b32.xlu1 %v5292_v48, %s5090_s25  ;;  %v5557_v16 = vpop.eup %4764 }
 0x426   : > { %v5560_v52 = vpop.eup %4766 }
 0x427   : > { %v5563_v3 = vpop.eup %4768 }
 0x428   : > { %v5568_v57 = vpop.eup %4770 }
 0x429   : > { %v5573_v1 = vpop.eup %4772 }
 0x42a   : > { %v5578_v10 = vpop.eup %4774 }
 0x42c   : > { %1033 = vrot.lane.b32.xlu0 %v5305_v6, %s5090_s25 }
 0x430   : > { %1031 = vrot.lane.b32.xlu0 %v5295_v58, %s5090_s25 }
 0x449   : > { %844 = vadd.xlane.f32.xlu1 %v5548_v49 }
 0x44f   : > { %838 = vadd.xlane.f32.xlu0 %v5553_v31 }
 0x453   : > { %834 = vadd.xlane.f32.xlu0 %v5557_v16 }
 0x457   : > { %840 = vadd.xlane.f32.xlu0 %v5560_v52 }
 0x45a   : > { %1027 = vrot.lane.b32.xlu1 %v5285_v28, %s5090_s25 }
 0x45b   : > { %836 = vadd.xlane.f32.xlu0 %v5563_v3 }
 0x45c   : > { %v823_v46 = vpop.xlane.xlu0 %822 }
 0x45e   : > { %1019 = vrot.lane.b32.xlu1 %v5292_v48, %s5091_s28 }
 0x45f   : > { %846 = vadd.xlane.f32.xlu0 %v5568_v57 }
 0x460   : > { %v819_v5 = vpop.xlane.xlu0 %818 }
 0x462   : > { %1023 = vrot.lane.b32.xlu1 %v5301_v0, %s5091_s28 }
 0x463   : > { %842 = vadd.xlane.f32.xlu0 %v5573_v1 }
 0x464   : > { %v825_v9 = vpop.xlane.xlu0 %824 }
 0x465   : > { %4776 = vrcp.f32 %v825_v9 }
 0x466   : > { %1352 = vrot.lane.b32.xlu1 %v5301_v0, %s5092_s29  ;;  %4778 = vrcp.f32 %v819_v5 }
 0x467   : > { %848 = vadd.xlane.f32.xlu0 %v5578_v10  ;;  %4780 = vrcp.f32 %v823_v46 }
 0x468   : > { %v821_v14 = vpop.xlane.xlu0 %820 }
 0x469   : > { %4782 = vrcp.f32 %v821_v14 }
 0x472   : > { %v4777_v22 = vpop.eup %4776 }
 0x473   : > { %v4779_v27 = vpop.eup %4778  ;;  %v869_v62 = vmul.f32 %v4777_v22, %v5513_v60 }
 0x474   : > { %v4781_v33 = vpop.eup %4780  ;;  %v866_v7 = vmul.f32 %v4779_v27, %v5510_v55  ;;  %v1038_v55 = vpop.permute.xlu1 %1037 }
 0x475   : > { %v868_v2 = vmul.f32 %v4781_v33, %v5507_v45  ;;  %v1086_v45 = vsel %vm289_vm1, %v5519_v15, 0  ;;  %v1083_v17 = vsel %vm289_vm1, %v1038_v55, 0 }
 0x476   : > { %v4783_v44 = vpop.eup %4782 }
 0x477   : > { %v867_v29 = vmul.f32 %v4783_v44, %v5516_v13  ;;  %v883_v61 = vpack.c.bf16 %v869_v62, %v868_v2 }
 0x479   : > { %v882_v34 = vpack.c.bf16 %v867_v29, %v866_v7 }
 0x47b   : > { %4265 = vmatprep.mubr.bf16.mxu1 %v882_v34 }
 0x47c   : > { %4266 = vmatmul.mubr.bf16.vlgmr.msra.gmra.mxu1 %v883_v61 }
 0x47d   : > { %4282 = vmatpush3.bf16.xpose.msra.mxu1 %v1089_v40  ;;  %1029 = vrot.lane.b32.xlu0 %v5309_v8, %s5090_s25  ;;  %s5093_s25 = smov 80  }
 0x47e   : > { %4567 = vmatprep.subr.msk.bf16.mxu1 %vm289_vm1, %v5519_v15 }
 0x481   : > { %1011 = vrot.lane.b32.xlu0 %v5285_v28, %s5091_s28 }
 0x485   : > { %4284 = vmatpush3.bf16.xpose.msra.mxu1 %v1086_v45  ;;  %1013 = vrot.lane.b32.xlu0 %v5309_v8, %s5091_s28 }
 0x486   : > { %4568 = vmatprep.subr.msk.bf16.mxu1 %vm289_vm1, %v1038_v55 }
 0x489   : > { %1015 = vrot.lane.b32.xlu0 %v5295_v58, %s5091_s28 }
 0x48d   : > { %4286 = vmatpush3.bf16.xpose.msra.mxu1 %v1083_v17  ;;  %1017 = vrot.lane.b32.xlu0 %v5305_v6, %s5091_s28 }
 0x491   : > { %1021 = vrot.lane.b32.xlu0 %v5289_v42, %s5091_s28 }
 0x495   : > { %1025 = vrot.lane.b32.xlu0 %v5297_v59, %s5091_s28  ;;  %s5101_s28 = smov 24  }
 0x497   : > { %v831_v60 = vpop.xlane.xlu0 %830 }
 0x499   : > { %1354 = vrot.lane.b32.xlu0 %v5297_v59, %s5092_s29 }
 0x49b   : > { %v827_v13 = vpop.xlane.xlu0 %826 }
 0x49c   : > { %4784 = vrcp.f32 %v827_v13 }
 0x49d   : > { %4786 = vrcp.f32 %v831_v60  ;;  %v829_v15 = vpop.xlane.xlu1 %828  ;;  %1350 = vrot.lane.b32.xlu0 %v5289_v42, %s5092_s29 }
 0x49e   : > { %4788 = vrcp.f32 %v829_v15 }
 0x49f   : > { %v833_v25 = vpop.xlane.xlu0 %832 }
 0x4a0   : > { %4790 = vrcp.f32 %v833_v25 }
 0x4a1   : > { %v1036_v51 = vpop.permute.xlu1 %1035  ;;  %1348 = vrot.lane.b32.xlu0 %v5292_v48, %s5092_s29 }
 0x4a2   : > { %4569 = vmatprep.subr.msk.bf16.mxu1 %vm289_vm1, %v1036_v51  ;;  %v1080_v46 = vsel %vm289_vm1, %v1036_v51, 0 }
 0x4a3   : > { %4288 = vmatpush3.bf16.xpose.msra.mxu1 %v1080_v46  ;;  %v1034_v5 = vpop.permute.xlu0 %1033 }
 0x4a4   : > { %4570 = vmatprep.subr.msk.bf16.mxu1 %vm289_vm1, %v1034_v5  ;;  %v1077_v22 = vsel %vm289_vm1, %v1034_v5, 0 }
 0x4a5   : > { %1346 = vrot.lane.b32.xlu0 %v5305_v6, %s5092_s29 }
 0x4a7   : > { %v1032_v33 = vpop.permute.xlu0 %1031 }
 0x4a8   : > { %v1074_v40 = vsel %vm289_vm1, %v1032_v33, 0 }
 0x4a9   : > { %v4785_v9 = vpop.eup %4784 }
 0x4aa   : > { %v4787_v14 = vpop.eup %4786  ;;  %v870_v44 = vmul.f32 %v4785_v9, %v5528_v18 }
 0x4ab   : > { %v4789_v27 = vpop.eup %4788  ;;  %4290 = vmatpush3.bf16.xpose.msra.mxu1 %v1077_v22  ;;  %v872_v2 = vmul.f32 %v4787_v14, %v5525_v63 }
 0x4ac   : > { %4571 = vmatprep.subr.msk.bf16.mxu1 %vm289_vm1, %v1032_v33  ;;  %v871_v62 = vmul.f32 %v4789_v27, %v5531_v20 }
 0x4ad   : > { %v4791_v7 = vpop.eup %4790 }
 0x4ae   : > { %v884_v29 = vpack.c.bf16 %v871_v62, %v870_v44  ;;  %v873_v34 = vmul.f32 %v4791_v7, %v5534_v23 }
 0x4b0   : > { %4269 = vmatprep.mubr.bf16.mxu1 %v884_v29  ;;  %v885_v61 = vpack.c.bf16 %v873_v34, %v872_v2 }
 0x4b2   : > { %4270 = vmatmul.mubr.bf16.gmra.mxu1 %v885_v61 }
 0x4b3   : > { %4292 = vmatpush3.bf16.xpose.msra.mxu1 %v1074_v40 }
 0x4d2   : > { %v845_v20 = vpop.xlane.xlu1 %844 }
 0x4d6   : > { %v1028_v44 = vpop.permute.xlu1 %1027 }
 0x4d7   : > { %v1068_v34 = vsel %vm289_vm1, %v1028_v44, 0 }
 0x4d8   : > { %v839_v45 = vpop.xlane.xlu0 %838 }
 0x4dc   : > { %v835_v55 = vpop.xlane.xlu0 %834 }
 0x4e0   : > { %v841_v17 = vpop.xlane.xlu0 %840 }
 0x4e1   : > { %4792 = vrcp.f32 %v841_v17 }
 0x4e2   : > { %4794 = vrcp.f32 %v835_v55 }
 0x4e3   : > { %4796 = vrcp.f32 %v839_v45 }
 0x4e4   : > { %v837_v18 = vpop.xlane.xlu0 %836 }
 0x4e5   : > { %4798 = vrcp.f32 %v837_v18 }
 0x4e6   : > { %4800 = vrcp.f32 %v845_v20  ;;  %v1020_v20 = vpop.permute.xlu1 %1019 }
 0x4e8   : > { %v847_v60 = vpop.xlane.xlu0 %846 }
 0x4ec   : > { %v843_v63 = vpop.xlane.xlu0 %842 }
 0x4ed   : > { %4802 = vrcp.f32 %v843_v63 }
 0x4ee   : > { %v4793_v23 = vpop.eup %4792  ;;  %4804 = vrcp.f32 %v847_v60  ;;  %v1024_v60 = vpop.permute.xlu1 %1023 }
 0x4ef   : > { %v4795_v13 = vpop.eup %4794  ;;  %v877_v46 = vmul.f32 %v4793_v23, %v5560_v52 }
 0x4f0   : > { %v849_v15 = vpop.xlane.xlu0 %848  ;;  %v4797_v25 = vpop.eup %4796  ;;  %v874_v5 = vmul.f32 %v4795_v13, %v5557_v16 }
 0x4f1   : > { %4806 = vrcp.f32 %v849_v15  ;;  %v876_v22 = vmul.f32 %v4797_v25, %v5553_v31 }
 0x4f2   : > { %v4799_v51 = vpop.eup %4798  ;;  %v1353_v13 = vpop.permute.xlu1 %1352 }
 0x4f3   : > { %v875_v9 = vmul.f32 %v4799_v51, %v5563_v3  ;;  %v887_v62 = vpack.c.bf16 %v877_v46, %v876_v22  ;;  %v4801_v7 = vpop.eup %4800 }
 0x4f4   : > { %v1030_v14 = vpop.permute.xlu0 %1029  ;;  %v879_v29 = vmul.f32 %v4801_v7, %v5548_v49 }
 0x4f5   : > { %4572 = vmatprep.subr.msk.bf16.mxu1 %vm289_vm1, %v1030_v14  ;;  %v1071_v27 = vsel %vm289_vm1, %v1030_v14, 0  ;;  %v886_v33 = vpack.c.bf16 %v875_v9, %v874_v5 }
 0x4f6   : > { %4294 = vmatpush3.bf16.xpose.msra.mxu1 %v1071_v27 }
 0x4f7   : > { %4273 = vmatprep.mubr.bf16.mxu1 %v886_v33  ;;  %4573 = vmatprep.subr.msk.bf16.mxu1 %vm289_vm1, %v1028_v44 }
 0x4f8   : > { %4274 = vmatmul.mubr.bf16.gmra.mxu1 %v887_v62  ;;  %v1012_v52 = vpop.permute.xlu0 %1011 }
 0x4fa   : > { %v4803_v16 = vpop.eup %4802 }
 0x4fb   : > { %v878_v3 = vmul.f32 %v4803_v16, %v5573_v1  ;;  %v4805_v31 = vpop.eup %4804 }
 0x4fc   : > { %v1014_v2 = vpop.permute.xlu0 %1013  ;;  %v880_v45 = vmul.f32 %v4805_v31, %v5568_v57 }
 0x4fd   : > { %v888_v61 = vpack.c.bf16 %v879_v29, %v878_v3 }
 0x4fe   : > { %v4807_v40 = vpop.eup %4806  ;;  %4296 = vmatpush3.bf16.xpose.msra.mxu1 %v1068_v34 }
 0x4ff   : > { %4277 = vmatprep.mubr.bf16.mxu1 %v888_v61  ;;  %v881_v55 = vmul.f32 %v4807_v40, %v5578_v10 }
 0x500   : > { %v1016_v17 = vpop.permute.xlu0 %1015 }
 0x501   : > { %v889_v18 = vpack.c.bf16 %v881_v55, %v880_v45 }
 0x503   : > { %4278 = vmatmul.mubr.bf16.gmra.mxu1 %v889_v18 }
 0x504   : > { %4297 = vmatprep.mubr.msk.bf16.mxu1 %vm289_vm1, %v1012_v52  ;;  %v1018_v1 = vpop.permute.xlu0 %1017 }
 0x508   : > { %v1022_v49 = vpop.permute.xlu0 %1021 }
 0x50b   : > { %4298 = vmatmul.mubr.msk.bf16.vlgmr.msra.gmra.mxu1 %vm289_vm1, %v1014_v2 }
 0x50c   : > { %4301 = vmatprep.mubr.msk.bf16.mxu1 %vm289_vm1, %v1016_v17  ;;  %v1026_v63 = vpop.permute.xlu0 %1025 }
 0x510   : > { %v1355_v23 = vpop.permute.xlu0 %1354 }
 0x511   : > { %4313 = vmatprep.subr.bf16.mxu0 %v1355_v23 }
 0x512   : > { %4314 = vmatpush3.bf16.msra.mxu0 %v1355_v23 }
 0x513   : > { %4302 = vmatmul.mubr.msk.bf16.gmra.mxu1 %vm289_vm1, %v1018_v1  ;;  %4315 = vmatprep.subr.bf16.mxu0 %v1353_v13 }
 0x514   : > { %4305 = vmatprep.mubr.msk.bf16.mxu1 %vm289_vm1, %v1020_v20  ;;  %v1351_v57 = vpop.permute.xlu0 %1350 }
 0x516   : > { %4316 = vmatpush3.bf16.msra.mxu0 %v1353_v13 }
 0x517   : > { %4317 = vmatprep.subr.bf16.mxu0 %v1351_v57 }
 0x518   : > { %v1349_v10 = vpop.permute.xlu0 %1348 }
 0x51a   : > { %4318 = vmatpush3.bf16.msra.mxu0 %v1351_v57 }
 0x51b   : > { %4306 = vmatmul.mubr.msk.bf16.gmra.mxu1 %vm289_vm1, %v1022_v49  ;;  %4319 = vmatprep.subr.bf16.mxu0 %v1349_v10 }
 0x51c   : > { %4309 = vmatprep.mubr.msk.bf16.mxu1 %vm289_vm1, %v1024_v60  ;;  %v1347_v15 = vpop.permute.xlu0 %1346 }
 0x51e   : > { %4320 = vmatpush3.bf16.msra.mxu0 %v1349_v10 }
 0x51f   : > { %4321 = vmatprep.subr.bf16.mxu0 %v1347_v15 }
 0x522   : > { %4322 = vmatpush3.bf16.msra.mxu0 %v1347_v15 }
 0x523   : > { %4310 = vmatmul.mubr.msk.bf16.gmra.mxu1 %vm289_vm1, %v1026_v63 }
 0x53c   : > { %v5647_v25 = vpop.f32.mrf.mxu1 }
 0x53d   : > { %7249 = vst [vmem:[#allocation18_spill] sm:$0xff] %v5647_v25 }
 0x53e   : > { %v5649_v51 = vpop.f32.mrf.mxu1 }
 0x53f   : > { %7250 = vst [vmem:[#allocation19_spill] sm:$0xff] %v5649_v51 }
 0x540   : > { %v5651_v46 = vpop.f32.mrf.mxu1 }
 0x541   : > { %7251 = vst [vmem:[#allocation20_spill] sm:$0xff] %v5651_v46 }
 0x542   : > { %v5653_v5 = vpop.f32.mrf.mxu1 }
 0x543   : > { %7252 = vst [vmem:[#allocation21_spill] sm:$0xff] %v5653_v5 }
 0x572   : > { %v5655_v9 = vpop.f32.mrf.mxu1 }
 0x573   : > { %7253 = vst [vmem:[#allocation22_spill] sm:$0xff] %v5655_v9  ;;  %v6079_v9 = vld [vmem:[%s7208_s3 + $0x68] sm:$0xff] }
 0x574   : > { %v5657_v14 = vpop.f32.mrf.mxu1 }
 0x575   : > { %7254 = vst [vmem:[#allocation23_spill] sm:$0xff] %v5657_v14 }
 0x576   : > { %v5659_v22 = vpop.f32.mrf.mxu1 }
 0x577   : > { %7255 = vst [vmem:[#allocation24_spill] sm:$0xff] %v5659_v22 }
 0x578   : > { %v5661_v27 = vpop.f32.mrf.mxu1 }
 0x579   : > { %7256 = vst [vmem:[#allocation25_spill] sm:$0xff] %v5661_v27 }
 0x5b8   : > { %v5663_v33 = vpop.f32.mrf.mxu1 }
 0x5b9   : > { %7257 = vst [vmem:[#allocation26_spill] sm:$0xff] %v5663_v33 }
 0x5ba   : > { %v5665_v44 = vpop.f32.mrf.mxu1 }
 0x5bb   : > { %7258 = vst [vmem:[#allocation27_spill] sm:$0xff] %v5665_v44 }
 0x5bc   : > { %v5667_v62 = vpop.f32.mrf.mxu1 }
 0x5bd   : > { %7259 = vst [vmem:[#allocation28_spill] sm:$0xff] %v5667_v62 }
 0x5be   : > { %v5669_v7 = vpop.f32.mrf.mxu1 }
 0x5bf   : > { %7260 = vst [vmem:[#allocation29_spill] sm:$0xff] %v5669_v7 }
 0x5c3   : > { %v5671_v52 = vpop.f32.mrf.mxu1 }
 0x5c4   : > { %7261 = vst [vmem:[#allocation30_spill] sm:$0xff] %v5671_v52 }
 0x5c5   : > { %v5673_v16 = vpop.f32.mrf.mxu1 }
 0x5c6   : > { %7262 = vst [vmem:[#allocation31_spill] sm:$0xff] %v5673_v16  ;;  %v6024_v16 = vld [vmem:[%s7208_s3 + $0x40] sm:$0xff] }
 0x5c7   : > { %v5675_v3 = vpop.f32.mrf.mxu1 }
 0x5c8   : > { %7263 = vst [vmem:[#allocation32_spill] sm:$0xff] %v5675_v3  ;;  %v6042_v3 = vld [vmem:[%s7208_s3 + $0x70] sm:$0xff] }
 0x5c9   : > { %v5677_v29 = vpop.f32.mrf.mxu1 }
 0x5ca   : > { %7264 = vst [vmem:[#allocation33_spill] sm:$0xff] %v5677_v29  ;;  %v6032_v29 = vld [vmem:[%s7208_s3 + $0x48] sm:$0xff] }
 0x5cb   : > { %v4299_v31 = vpop.f32.mrf.mxu1 }
 0x5cc   : > { %v1134_v2 = vadd.f32 %v4299_v31, %v5352_v43 }
 0x5cd   : > { %v1125_v34 = vpop.f32.mrf.mxu1 }
 0x5ce   : > { %v1126_v61 = vadd.f32 %v1125_v34, %v5360_v47  ;;  %1192 = vmax.xlane.f32.xlu0 %v1134_v2 }
 0x5cf   : > { %v4300_v40 = vpop.f32.mrf.mxu1 }
 0x5d0   : > { %1188 = vmax.xlane.f32.xlu1 %v1126_v61  ;;  %v1137_v55 = vadd.f32 %v4300_v40, %v5374_v56 }
 0x5d1   : > { %v1128_v45 = vpop.f32.mrf.mxu1 }
 0x5d2   : > { %v5683_v17 = vadd.f32 %v1128_v45, %v5366_v54 }
 0x5d3   : > { %v4303_v43 = vpop.f32.mrf.mxu1 }
 0x5d4   : > { %1190 = vmax.xlane.f32.xlu0 %v5683_v17  ;;  %1194 = vmax.xlane.f32.xlu1 %v1137_v55  ;;  %v5691_v49 = vadd.f32 %v4303_v43, %v5392_v11 }
 0x5d5   : > { %v1141_v47 = vpop.f32.mrf.mxu1 }
 0x5d6   : > { %v5699_v60 = vadd.f32 %v1141_v47, %v5405_v19 }
 0x5d7   : > { %v4304_v18 = vpop.f32.mrf.mxu1 }
 0x5d8   : > { %v5694_v54 = vadd.f32 %v4304_v18, %v5397_v12 }
 0x5d9   : > { %v1144_v1 = vpop.f32.mrf.mxu1 }
 0x5da   : > { %v5702_v63 = vadd.f32 %v1144_v1, %v5414_v21 }
 0x5db   : > { %v4307_v20 = vpop.f32.mrf.mxu1 }
 0x5dc   : > { %v5707_v11 = vadd.f32 %v4307_v20, %v5423_v24 }
 0x5dd   : > { %v1157_v56 = vpop.f32.mrf.mxu1 }
 0x5de   : > { %v5715_v19 = vadd.f32 %v1157_v56, %v5441_v30 }
 0x5df   : > { %v4308_v23 = vpop.f32.mrf.mxu1 }
 0x5e0   : > { %v5710_v12 = vadd.f32 %v4308_v23, %v5432_v26 }
 0x5e1   : > { %v1160_v13 = vpop.f32.mrf.mxu1 }
 0x5e2   : > { %v5718_v21 = vadd.f32 %v1160_v13, %v5450_v32 }
 0x5e3   : > { %v4311_v57 = vpop.f32.mrf.mxu1 }
 0x5e4   : > { %v5723_v24 = vadd.f32 %v4311_v57, %v5459_v36 }
 0x5e5   : > { %1342 = vrot.lane.b32.xlu1 %v5309_v8, %s5092_s29  ;;  %v1173_v26 = vpop.f32.mrf.mxu1 }
 0x5e6   : > { %v5727_v10 = vadd.f32 %v1173_v26, %v5477_v50 }
 0x5e7   : > { %v4312_v30 = vpop.f32.mrf.mxu1 }
 0x5e8   : > { %v5741_v32 = vadd.f32 %v4312_v30, %v5468_v41 }
 0x5e9   : > { %v1176_v36 = vpop.f32.mrf.mxu1 }
 0x5ea   : > { %1344 = vrot.lane.b32.xlu0 %v5295_v58, %s5092_s29  ;;  %v5745_v50 = vadd.f32 %v1176_v36, %v5486_v4 }
 0x609   : > { %1200 = vmax.xlane.f32.xlu0 %v5691_v49  ;;  %1202 = vmax.xlane.f32.xlu1 %v5694_v54 }
 0x60d   : > { %1198 = vmax.xlane.f32.xlu1 %v5702_v63  ;;  %1196 = vmax.xlane.f32.xlu0 %v5699_v60 }
 0x611   : > { %1208 = vmax.xlane.f32.xlu0 %v5707_v11  ;;  %1210 = vmax.xlane.f32.xlu1 %v5710_v12 }
 0x615   : > { %1206 = vmax.xlane.f32.xlu1 %v5718_v21  ;;  %1204 = vmax.xlane.f32.xlu0 %v5715_v19 }
 0x619   : > { %1216 = vmax.xlane.f32.xlu0 %v5723_v24 }
 0x61d   : > { %1212 = vmax.xlane.f32.xlu0 %v5727_v10 }
 0x626   : > { %1491 = vrot.lane.b32.xlu1 %v5297_v59, %s5093_s25 }
 0x633   : > { %1340 = vrot.lane.b32.xlu0 %v5285_v28, %s5092_s29 }
 0x637   : > { %1489 = vrot.lane.b32.xlu0 %v5301_v0, %s5093_s25 }
 0x63b   : > { %1487 = vrot.lane.b32.xlu0 %v5289_v42, %s5093_s25 }
 0x63f   : > { %1483 = vrot.lane.b32.xlu0 %v5305_v6, %s5093_s25 }
 0x64a   : > { %1218 = vmax.xlane.f32.xlu1 %v5741_v32 }
 0x64e   : > { %1214 = vmax.xlane.f32.xlu1 %v5745_v50 }
 0x657   : > { %v1193_v15 = vpop.xlane.xlu0 %1192 }
 0x658   : > { %v1222_v31 = vsub.f32 %v1134_v2, %v1193_v15 }
 0x659   : > { %v1189_v34 = vpop.xlane.xlu1 %1188 }
 0x65a   : > { %v1240_v40 = vmul.f32 1.442695, %v1222_v31  ;;  %v1220_v45 = vsub.f32 %v1126_v61, %v1189_v34 }
 0x65c   : > { %4808 = vpow2.f32 %v1240_v40  ;;  %v1236_v43 = vmul.f32 1.442695, %v1220_v45 }
 0x65d   : > { %v1195_v47 = vpop.xlane.xlu1 %1194  ;;  %v1191_v18 = vpop.xlane.xlu0 %1190 }
 0x65e   : > { %v1223_v1 = vsub.f32 %v1137_v55, %v1195_v47  ;;  %4810 = vpow2.f32 %v1236_v43  ;;  %v1221_v20 = vsub.f32 %v5683_v17, %v1191_v18 }
 0x660   : > { %v1242_v41 = vmul.f32 1.442695, %v1223_v1  ;;  %v1238_v23 = vmul.f32 1.442695, %v1221_v20 }
 0x661   : > { %v1345_v56 = vpop.permute.xlu0 %1344  ;;  %v1343_v4 = vpop.permute.xlu1 %1342 }
 0x662   : > { %4323 = vmatprep.subr.bf16.mxu0 %v1345_v56  ;;  %4812 = vpow2.f32 %v1242_v41 }
 0x663   : > { %4324 = vmatpush3.bf16.msra.mxu0 %v1345_v56  ;;  %4814 = vpow2.f32 %v1238_v23 }
 0x664   : > { %4325 = vmatprep.subr.bf16.mxu0 %v1343_v4 }
 0x667   : > { %4326 = vmatpush3.bf16.msra.mxu0 %v1343_v4 }
 0x669   : > { %v5749_v2 = vpop.eup %4808 }
 0x66a   : > { %1272 = vadd.xlane.f32.xlu1 %v5749_v2 }
 0x66b   : > { %v5752_v61 = vpop.eup %4810 }
 0x66e   : > { %1268 = vadd.xlane.f32.xlu1 %v5752_v61 }
 0x66f   : > { %v5755_v55 = vpop.eup %4812 }
 0x670   : > { %v5758_v17 = vpop.eup %4814 }
 0x672   : > { %1274 = vadd.xlane.f32.xlu1 %v5755_v55 }
 0x676   : > { %1270 = vadd.xlane.f32.xlu1 %v5758_v17 }
 0x687   : > { %1485 = vrot.lane.b32.xlu1 %v5292_v48, %s5093_s25 }
 0x692   : > { %v1203_v13 = vpop.xlane.xlu1 %1202  ;;  %v1201_v57 = vpop.xlane.xlu0 %1200 }
 0x693   : > { %v1226_v26 = vsub.f32 %v5691_v49, %v1201_v57  ;;  %v1227_v40 = vsub.f32 %v5694_v54, %v1203_v13 }
 0x695   : > { %v1248_v30 = vmul.f32 1.442695, %v1226_v26  ;;  %v1250_v18 = vmul.f32 1.442695, %v1227_v40 }
 0x696   : > { %v1199_v36 = vpop.xlane.xlu1 %1198  ;;  %v1197_v15 = vpop.xlane.xlu0 %1196 }
 0x697   : > { %v1225_v31 = vsub.f32 %v5702_v63, %v1199_v36  ;;  %v1224_v34 = vsub.f32 %v5699_v60, %v1197_v15  ;;  %4816 = vpow2.f32 %v1248_v30 }
 0x699   : > { %v1246_v45 = vmul.f32 1.442695, %v1225_v31  ;;  %v1244_v43 = vmul.f32 1.442695, %v1224_v34 }
 0x69a   : > { %v1209_v47 = vpop.xlane.xlu0 %1208  ;;  %v1211_v49 = vpop.xlane.xlu1 %1210 }
 0x69b   : > { %4818 = vpow2.f32 %v1246_v45  ;;  %v1230_v1 = vsub.f32 %v5707_v11, %v1209_v47  ;;  %v1231_v54 = vsub.f32 %v5710_v12, %v1211_v49 }
 0x69c   : > { %4820 = vpow2.f32 %v1244_v43 }
 0x69d   : > { %4822 = vpow2.f32 %v1250_v18  ;;  %v1256_v20 = vmul.f32 1.442695, %v1230_v1 }
 0x69e   : > { %v1205_v41 = vpop.xlane.xlu0 %1204  ;;  %v1207_v57 = vpop.xlane.xlu1 %1206 }
 0x69f   : > { %v1228_v56 = vsub.f32 %v5715_v19, %v1205_v41  ;;  %4824 = vpow2.f32 %v1256_v20  ;;  %v1258_v19 = vmul.f32 1.442695, %v1231_v54  ;;  %v1229_v36 = vsub.f32 %v5718_v21, %v1207_v57 }
 0x6a1   : > { %v1252_v23 = vmul.f32 1.442695, %v1228_v56 }
 0x6a2   : > { %v1217_v63 = vpop.xlane.xlu0 %1216  ;;  %v5782_v31 = vpop.permute.xlu1 %1491 }
 0x6a3   : > { %v1234_v60 = vsub.f32 %v5723_v24, %v1217_v63 }
 0x6a4   : > { %v5770_v4 = vpop.eup %4816 }
 0x6a5   : > { %v1264_v13 = vmul.f32 1.442695, %v1234_v60  ;;  %1280 = vadd.xlane.f32.xlu0 %v5770_v4 }
 0x6a6   : > { %v1213_v11 = vpop.xlane.xlu0 %1212 }
 0x6a7   : > { %4826 = vpow2.f32 %v1264_v13  ;;  %v1232_v26 = vsub.f32 %v5727_v10, %v1213_v11  ;;  %v1254_v10 = vmul.f32 1.442695, %v1229_v36 }
 0x6a8   : > { %v5775_v30 = vpop.eup %4818  ;;  %4828 = vpow2.f32 %v1252_v23 }
 0x6a9   : > { %v1260_v24 = vmul.f32 1.442695, %v1232_v26  ;;  %v5778_v15 = vpop.eup %4820  ;;  %1278 = vadd.xlane.f32.xlu0 %v5775_v30 }
 0x6aa   : > { %v1341_v12 = vpop.permute.xlu0 %1340  ;;  %v5786_v21 = vpop.eup %4822 }
 0x6ab   : > { %4830 = vpow2.f32 %v1260_v24  ;;  %1276 = vadd.xlane.f32.xlu1 %v5778_v15  ;;  %4327 = vmatprep.subr.bf16.mxu0 %v1341_v12 }
 0x6ac   : > { %4328 = vmatpush3.bf16.msra.mxu0 %v1341_v12  ;;  %4832 = vpow2.f32 %v1258_v19  ;;  %v5789_v34 = vpop.eup %4824 }
 0x6ad   : > { %4574 = vmatprep.subr.msk.bf16.mxu0 %vm289_vm1, %v5782_v31  ;;  %4834 = vpow2.f32 %v1254_v10 }
 0x6af   : > { %1282 = vadd.xlane.f32.xlu1 %v5786_v21 }
 0x6b3   : > { %1288 = vadd.xlane.f32.xlu1 %v5789_v34 }
 0x6b4   : > { %v5792_v40 = vpop.eup %4826 }
 0x6b5   : > { %1296 = vadd.xlane.f32.xlu0 %v5792_v40  ;;  %v5795_v45 = vpop.eup %4828 }
 0x6b7   : > { %1284 = vadd.xlane.f32.xlu1 %v5795_v45 }
 0x6b8   : > { %v5798_v43 = vpop.eup %4830 }
 0x6b9   : > { %1292 = vadd.xlane.f32.xlu0 %v5798_v43  ;;  %v5801_v47 = vpop.eup %4832 }
 0x6ba   : > { %v5804_v18 = vpop.eup %4834 }
 0x6bb   : > { %1290 = vadd.xlane.f32.xlu1 %v5801_v47 }
 0x6bf   : > { %1286 = vadd.xlane.f32.xlu1 %v5804_v18 }
 0x6d3   : > { %v1219_v1 = vpop.xlane.xlu1 %1218 }
 0x6d4   : > { %v1235_v41 = vsub.f32 %v5741_v32, %v1219_v1 }
 0x6d6   : > { %v1266_v49 = vmul.f32 1.442695, %v1235_v41 }
 0x6d7   : > { %v1215_v20 = vpop.xlane.xlu1 %1214 }
 0x6d8   : > { %4836 = vpow2.f32 %v1266_v49  ;;  %v1233_v56 = vsub.f32 %v5745_v50, %v1215_v20  ;;  %v1539_v49 = vsel %vm289_vm1, %v5782_v31, 0 }
 0x6da   : > { %v1262_v63 = vmul.f32 1.442695, %v1233_v56 }
 0x6dc   : > { %4838 = vpow2.f32 %v1262_v63 }
 0x6e5   : > { %v5809_v60 = vpop.eup %4836 }
 0x6e6   : > { %1298 = vadd.xlane.f32.xlu0 %v5809_v60 }
 0x6e9   : > { %v5812_v54 = vpop.eup %4838 }
 0x6ea   : > { %1294 = vadd.xlane.f32.xlu1 %v5812_v54 }
 0x6f3   : > { %v1273_v23 = vpop.xlane.xlu1 %1272 }
 0x6f7   : > { %v1269_v13 = vpop.xlane.xlu1 %1268 }
 0x6fb   : > { %v1275_v57 = vpop.xlane.xlu1 %1274  ;;  %1481 = vrot.lane.b32.xlu1 %v5295_v58, %s5093_s25 }
 0x6fc   : > { %1479 = vrot.lane.b32.xlu0 %v5309_v8, %s5093_s25  ;;  %4840 = vrcp.f32 %v1275_v57 }
 0x6fd   : > { %4842 = vrcp.f32 %v1269_v13 }
 0x6fe   : > { %4844 = vrcp.f32 %v1273_v23 }
 0x6ff   : > { %v1271_v32 = vpop.xlane.xlu1 %1270  ;;  %1461 = vrot.lane.b32.xlu1 %v5285_v28, %s5094_s30 }
 0x700   : > { %4846 = vrcp.f32 %v1271_v32  ;;  %1477 = vrot.lane.b32.xlu0 %v5285_v28, %s5093_s25 }
 0x703   : > { %1465 = vrot.lane.b32.xlu1 %v5295_v58, %s5094_s30  ;;  %v1486_v31 = vpop.permute.xlu1 %1485 }
 0x704   : > { %1463 = vrot.lane.b32.xlu0 %v5309_v8, %s5094_s30  ;;  %v1530_v56 = vsel %vm289_vm1, %v1486_v31, 0 }
 0x707   : > { %1469 = vrot.lane.b32.xlu1 %v5292_v48, %s5094_s30 }
 0x708   : > { %1467 = vrot.lane.b32.xlu0 %v5305_v6, %s5094_s30 }
 0x709   : > { %v4841_v50 = vpop.eup %4840 }
 0x70a   : > { %v4843_v11 = vpop.eup %4842  ;;  %v1319_v36 = vmul.f32 %v4841_v50, %v5755_v55  ;;  %v1490_v55 = vpop.permute.xlu0 %1489 }
 0x70b   : > { %1473 = vrot.lane.b32.xlu1 %v5301_v0, %s5094_s30  ;;  %v4845_v26 = vpop.eup %4844  ;;  %v1316_v24 = vmul.f32 %v4843_v11, %v5752_v61 }
 0x70c   : > { %1471 = vrot.lane.b32.xlu0 %v5289_v42, %s5094_s30  ;;  %v1318_v10 = vmul.f32 %v4845_v26, %v5749_v2  ;;  %v1536_v2 = vsel %vm289_vm1, %v1490_v55, 0 }
 0x70d   : > { %v4847_v19 = vpop.eup %4846 }
 0x70e   : > { %v1317_v12 = vmul.f32 %v4847_v19, %v5758_v17  ;;  %v1333_v41 = vpack.c.bf16 %v1319_v36, %v1318_v10  ;;  %v1488_v61 = vpop.permute.xlu0 %1487 }
 0x70f   : > { %1802 = vrot.lane.b32.xlu1 %v5301_v0, %s5095_s5  ;;  %v1533_v17 = vsel %vm289_vm1, %v1488_v61, 0 }
 0x710   : > { %1475 = vrot.lane.b32.xlu0 %v5297_v59, %s5094_s30  ;;  %v1332_v1 = vpack.c.bf16 %v1317_v12, %v1316_v24 }
 0x712   : > { %4329 = vmatprep.mubr.bf16.mxu0 %v1332_v1  ;;  %v1484_v20 = vpop.permute.xlu0 %1483 }
 0x713   : > { %4330 = vmatmul.mubr.bf16.vlgmr.msra.gmra.mxu0 %v1333_v41  ;;  %v1527_v13 = vsel %vm289_vm1, %v1484_v20, 0 }
 0x714   : > { %4346 = vmatpush3.bf16.xpose.msra.mxu0 %v1539_v49  ;;  %1804 = vrot.lane.b32.xlu0 %v5297_v59, %s5095_s5 }
 0x715   : > { %4575 = vmatprep.subr.msk.bf16.mxu0 %vm289_vm1, %v1490_v55 }
 0x718   : > { %1800 = vrot.lane.b32.xlu0 %v5289_v42, %s5095_s5 }
 0x71c   : > { %4348 = vmatpush3.bf16.xpose.msra.mxu0 %v1536_v2  ;;  %1798 = vrot.lane.b32.xlu0 %v5292_v48, %s5095_s5 }
 0x71d   : > { %4576 = vmatprep.subr.msk.bf16.mxu0 %vm289_vm1, %v1488_v61 }
 0x720   : > { %1796 = vrot.lane.b32.xlu0 %v5305_v6, %s5095_s5 }
 0x724   : > { %4350 = vmatpush3.bf16.xpose.msra.mxu0 %v1533_v17 }
 0x725   : > { %4577 = vmatprep.subr.msk.bf16.mxu0 %vm289_vm1, %v1486_v31 }
 0x72c   : > { %4352 = vmatpush3.bf16.xpose.msra.mxu0 %v1530_v56 }
 0x72d   : > { %4578 = vmatprep.subr.msk.bf16.mxu0 %vm289_vm1, %v1484_v20 }
 0x72e   : > { %v1281_v63 = vpop.xlane.xlu0 %1280 }
 0x732   : > { %v1279_v23 = vpop.xlane.xlu0 %1278 }
 0x733   : > { %4848 = vrcp.f32 %v1279_v23 }
 0x734   : > { %4354 = vmatpush3.bf16.xpose.msra.mxu0 %v1527_v13  ;;  %v1277_v57 = vpop.xlane.xlu1 %1276 }
 0x735   : > { %4850 = vrcp.f32 %v1277_v57 }
 0x736   : > { %4852 = vrcp.f32 %v1281_v63 }
 0x738   : > { %v1283_v32 = vpop.xlane.xlu1 %1282 }
 0x739   : > { %4854 = vrcp.f32 %v1283_v32 }
 0x73c   : > { %v1289_v50 = vpop.xlane.xlu1 %1288 }
 0x740   : > { %v1285_v11 = vpop.xlane.xlu1 %1284  ;;  %v4849_v26 = vpop.eup %4848 }
 0x741   : > { %v1321_v24 = vmul.f32 %v4849_v26, %v5775_v30 }
 0x742   : > { %v4851_v19 = vpop.eup %4850 }
 0x743   : > { %v1320_v36 = vmul.f32 %v4851_v19, %v5778_v15  ;;  %v4853_v12 = vpop.eup %4852 }
 0x744   : > { %v1291_v10 = vpop.xlane.xlu1 %1290  ;;  %v1322_v49 = vmul.f32 %v4853_v12, %v5770_v4 }
 0x745   : > { %v1334_v1 = vpack.c.bf16 %v1321_v24, %v1320_v36  ;;  %4856 = vrcp.f32 %v1291_v10 }
 0x746   : > { %v4855_v41 = vpop.eup %4854  ;;  %4858 = vrcp.f32 %v1285_v11 }
 0x747   : > { %4333 = vmatprep.mubr.bf16.mxu0 %v1334_v1  ;;  %v1323_v55 = vmul.f32 %v4855_v41, %v5786_v21  ;;  %4860 = vrcp.f32 %v1289_v50  ;;  %v1297_v21 = vpop.xlane.xlu0 %1296 }
 0x748   : > { %v1287_v2 = vpop.xlane.xlu1 %1286 }
 0x749   : > { %4862 = vrcp.f32 %v1287_v2  ;;  %v1335_v61 = vpack.c.bf16 %v1323_v55, %v1322_v49 }
 0x74b   : > { %4334 = vmatmul.mubr.bf16.gmra.mxu0 %v1335_v61  ;;  %v1293_v57 = vpop.xlane.xlu0 %1292 }
 0x752   : > { %v4857_v17 = vpop.eup %4856 }
 0x753   : > { %v4859_v15 = vpop.eup %4858  ;;  %v1327_v20 = vmul.f32 %v4857_v17, %v5801_v47 }
 0x754   : > { %v4861_v31 = vpop.eup %4860  ;;  %v1324_v56 = vmul.f32 %v4859_v15, %v5795_v45 }
 0x755   : > { %v1326_v23 = vmul.f32 %v4861_v31, %v5789_v34 }
 0x756   : > { %v4863_v30 = vpop.eup %4862 }
 0x757   : > { %v1325_v63 = vmul.f32 %v4863_v30, %v5804_v18  ;;  %v1337_v13 = vpack.c.bf16 %v1327_v20, %v1326_v23 }
 0x759   : > { %v1336_v4 = vpack.c.bf16 %v1325_v63, %v1324_v56 }
 0x75b   : > { %4337 = vmatprep.mubr.bf16.mxu0 %v1336_v4 }
 0x75c   : > { %4338 = vmatmul.mubr.bf16.gmra.mxu0 %v1337_v13 }
 0x76f   : > { %v1299_v32 = vpop.xlane.xlu0 %1298 }
 0x770   : > { %4864 = vrcp.f32 %v1299_v32 }
 0x771   : > { %4866 = vrcp.f32 %v1293_v57  ;;  %v5988_v57 = vld [vmem:[%s7208_s3 + $0x20] sm:$0xff] }
 0x772   : > { %4868 = vrcp.f32 %v1297_v21 }
 0x773   : > { %v1295_v50 = vpop.xlane.xlu1 %1294  ;;  %v1480_v11 = vpop.permute.xlu0 %1479 }
 0x774   : > { %4870 = vrcp.f32 %v1295_v50  ;;  %v1521_v1 = vsel %vm289_vm1, %v1480_v11, 0  ;;  %v5978_v50 = vld [vmem:[%s7208_s3 + $0x38] sm:$0xff] }
 0x777   : > { %v1482_v47 = vpop.permute.xlu1 %1481  ;;  %v1478_v26 = vpop.permute.xlu0 %1477 }
 0x778   : > { %4579 = vmatprep.subr.msk.bf16.mxu0 %vm289_vm1, %v1482_v47  ;;  %v1524_v45 = vsel %vm289_vm1, %v1482_v47, 0 }
 0x779   : > { %4356 = vmatpush3.bf16.xpose.msra.mxu0 %v1524_v45 }
 0x77a   : > { %4580 = vmatprep.subr.msk.bf16.mxu0 %vm289_vm1, %v1480_v11 }
 0x77b   : > { %v1462_v34 = vpop.permute.xlu1 %1461  ;;  %v1464_v18 = vpop.permute.xlu0 %1463 }
 0x77d   : > { %v4865_v19 = vpop.eup %4864 }
 0x77e   : > { %v4867_v36 = vpop.eup %4866  ;;  %v1331_v49 = vmul.f32 %v4865_v19, %v5809_v60  ;;  %v1518_v60 = vsel %vm289_vm1, %v1478_v26, 0 }
 0x77f   : > { %v1466_v24 = vpop.permute.xlu1 %1465  ;;  %v1468_v12 = vpop.permute.xlu0 %1467  ;;  %v1328_v55 = vmul.f32 %v4867_v36, %v5798_v43 }
 0x780   : > { %v4869_v10 = vpop.eup %4868 }
 0x781   : > { %v4871_v41 = vpop.eup %4870  ;;  %4358 = vmatpush3.bf16.xpose.msra.mxu0 %v1521_v1  ;;  %v1330_v15 = vmul.f32 %v4869_v10, %v5792_v40 }
 0x782   : > { %4581 = vmatprep.subr.msk.bf16.mxu0 %vm289_vm1, %v1478_v26  ;;  %v1329_v2 = vmul.f32 %v4871_v41, %v5812_v54 }
 0x783   : > { %v1470_v61 = vpop.permute.xlu1 %1469  ;;  %v1472_v17 = vpop.permute.xlu0 %1471  ;;  %v1339_v30 = vpack.c.bf16 %v1331_v49, %v1330_v15 }
 0x784   : > { %v1338_v31 = vpack.c.bf16 %v1329_v2, %v1328_v55 }
 0x786   : > { %4341 = vmatprep.mubr.bf16.mxu0 %v1338_v31  ;;  %v5930_v31 = vld [vmem:[%s7208_s3 + $0x10] sm:$0xff] }
 0x787   : > { %v1474_v20 = vpop.permute.xlu1 %1473  ;;  %4342 = vmatmul.mubr.bf16.gmra.mxu0 %v1339_v30  ;;  %v1476_v56 = vpop.permute.xlu0 %1475 }
 0x788   : > { %4361 = vmatprep.mubr.msk.bf16.mxu0 %vm289_vm1, %v1462_v34 }
 0x789   : > { %4360 = vmatpush3.bf16.xpose.msra.mxu0 %v1518_v60 }
 0x78b   : > { %v1805_v63 = vpop.permute.xlu0 %1804  ;;  %v1803_v43 = vpop.permute.xlu1 %1802 }
 0x78c   : > { %4377 = vmatprep.subr.bf16.mxu1 %v1805_v63 }
 0x78d   : > { %4378 = vmatpush3.bf16.msra.mxu1 %v1805_v63 }
 0x78e   : > { %4379 = vmatprep.subr.bf16.mxu1 %v1803_v43 }
 0x78f   : > { %v1801_v54 = vpop.permute.xlu0 %1800 }
 0x790   : > { %4362 = vmatmul.mubr.msk.bf16.vlgmr.msra.gmra.mxu0 %vm289_vm1, %v1464_v18 }
 0x791   : > { %4365 = vmatprep.mubr.msk.bf16.mxu0 %vm289_vm1, %v1466_v24  ;;  %4380 = vmatpush3.bf16.msra.mxu1 %v1803_v43 }
 0x792   : > { %4381 = vmatprep.subr.bf16.mxu1 %v1801_v54 }
 0x793   : > { %v1799_v40 = vpop.permute.xlu0 %1798 }
 0x795   : > { %4382 = vmatpush3.bf16.msra.mxu1 %v1801_v54  ;;  %v5948_v54 = vld [vmem:[%s7208_s3 + $0x18] sm:$0xff] }
 0x796   : > { %4383 = vmatprep.subr.bf16.mxu1 %v1799_v40 }
 0x797   : > { %v1797_v23 = vpop.permute.xlu0 %1796 }
 0x798   : > { %4366 = vmatmul.mubr.msk.bf16.gmra.mxu0 %vm289_vm1, %v1468_v12 }
 0x799   : > { %4369 = vmatprep.mubr.msk.bf16.mxu0 %vm289_vm1, %v1470_v61  ;;  %4384 = vmatpush3.bf16.msra.mxu1 %v1799_v40 }
 0x79a   : > { %4385 = vmatprep.subr.bf16.mxu1 %v1797_v23 }
 0x79d   : > { %4386 = vmatpush3.bf16.msra.mxu1 %v1797_v23  ;;  %v5956_v23 = vld [vmem:[%s7208_s3 + $0x8] sm:$0xff] }
 0x7a0   : > { %4370 = vmatmul.mubr.msk.bf16.gmra.mxu0 %vm289_vm1, %v1472_v17 }
 0x7a1   : > { %4373 = vmatprep.mubr.msk.bf16.mxu0 %vm289_vm1, %v1474_v20 }
 0x7a8   : > { %4374 = vmatmul.mubr.msk.bf16.gmra.mxu0 %vm289_vm1, %v1476_v56  ;;  %v5938_v56 = vld [vmem:[%s7208_s3] sm:$0xff] }
 0x7d3   : > { %v5879_v4 = vpop.f32.mrf.mxu0 }
 0x7d5   : > { %v5881_v13 = vpop.f32.mrf.mxu0 }
 0x7d7   : > { %v5883_v21 = vpop.f32.mrf.mxu0 }
 0x7d9   : > { %v5887_v32 = vpop.f32.mrf.mxu0 }
 0x80b   : > { %v5891_v11 = vpop.f32.mrf.mxu0 }
 0x80c   : > { %7265 = vst [vmem:[#allocation34_spill] sm:$0xff] %v5891_v11 }
 0x80d   : > { %v5893_v47 = vpop.f32.mrf.mxu0 }
 0x80f   : > { %v5895_v26 = vpop.f32.mrf.mxu0 }
 0x811   : > { %v5899_v34 = vpop.f32.mrf.mxu0 }
 0x81c   : > { %v5903_v19 = vpop.f32.mrf.mxu0 }
 0x81d   : > { %7266 = vst [vmem:[#allocation35_spill] sm:$0xff] %v5903_v19 }
 0x81e   : > { %v5905_v36 = vpop.f32.mrf.mxu0 }
 0x820   : > { %v5907_v24 = vpop.f32.mrf.mxu0 }
 0x821   : > { %7267 = vst [vmem:[#allocation36_spill] sm:$0xff] %v5907_v24 }
 0x822   : > { %v5911_v10 = vpop.f32.mrf.mxu0 }
 0x847   : > { %v5915_v41 = vpop.f32.mrf.mxu0 }
 0x848   : > { %7268 = vst [vmem:[#allocation37_spill] sm:$0xff] %v5915_v41 }
 0x849   : > { %v5917_v49 = vpop.f32.mrf.mxu0 }
 0x84a   : > { %7269 = vst [vmem:[#allocation38_spill] sm:$0xff] %v5917_v49 }
 0x84b   : > { %v5919_v55 = vpop.f32.mrf.mxu0 }
 0x84c   : > { %7270 = vst [vmem:[#allocation39_spill] sm:$0xff] %v5919_v55 }
 0x84d   : > { %v5923_v61 = vpop.f32.mrf.mxu0 }
 0x84e   : > { %7271 = vst [vmem:[#allocation40_spill] sm:$0xff] %v5923_v61 }
 0x850   : > { %v4363_v15 = vpop.f32.mrf.mxu0 }
 0x851   : > { %v5933_v30 = vadd.f32 %v5930_v31, %v4363_v15 }
 0x852   : > { %v1575_v20 = vpop.f32.mrf.mxu0 }
 0x853   : > { %v5941_v60 = vadd.f32 %v5938_v56, %v1575_v20  ;;  %1642 = vmax.xlane.f32.xlu0 %v5933_v30 }
 0x854   : > { %v4364_v63 = vpop.f32.mrf.mxu0 }
 0x855   : > { %1638 = vmax.xlane.f32.xlu1 %v5941_v60  ;;  %v5951_v40 = vadd.f32 %v5948_v54, %v4364_v63 }
 0x856   : > { %v1578_v43 = vpop.f32.mrf.mxu0 }
 0x857   : > { %v5959_v15 = vadd.f32 %v5956_v23, %v1578_v43  ;;  %v5970_v43 = vld [vmem:[%s7208_s3 + $0x30] sm:$0xff] }
 0x858   : > { %v4367_v20 = vpop.f32.mrf.mxu0 }
 0x859   : > { %1640 = vmax.xlane.f32.xlu0 %v5959_v15  ;;  %1644 = vmax.xlane.f32.xlu1 %v5951_v40  ;;  %v5973_v45 = vadd.f32 %v5970_v43, %v4367_v20 }
 0x85a   : > { %v1591_v63 = vpop.f32.mrf.mxu0 }
 0x85b   : > { %v5991_v20 = vadd.f32 %v5988_v57, %v1591_v63 }
 0x85c   : > { %v4368_v17 = vpop.f32.mrf.mxu0 }
 0x85d   : > { %v5981_v1 = vadd.f32 %v5978_v50, %v4368_v17 }
 0x85e   : > { %v1594_v2 = vpop.f32.mrf.mxu0 }
 0x85f   : > { %v5999_v17 = vadd.f32 %v5996_v53, %v1594_v2 }
 0x860   : > { %v4371_v12 = vpop.f32.mrf.mxu0 }
 0x861   : > { %v6009_v63 = vadd.f32 %v6006_v35, %v4371_v12 }
 0x862   : > { %v1607_v18 = vpop.f32.mrf.mxu0 }
 0x863   : > { %v6027_v12 = vadd.f32 %v6024_v16, %v1607_v18 }
 0x864   : > { %v4372_v38 = vpop.f32.mrf.mxu0 }
 0x865   : > { %v6017_v2 = vadd.f32 %v6014_v37, %v4372_v38 }
 0x866   : > { %v1610_v39 = vpop.f32.mrf.mxu0 }
 0x867   : > { %v6035_v38 = vadd.f32 %v6032_v29, %v1610_v39  ;;  %v6051_v39 = vld [vmem:[%s7208_s3 + $0x60] sm:$0xff] }
 0x868   : > { %v4375_v52 = vpop.f32.mrf.mxu0 }
 0x869   : > { %v6045_v18 = vadd.f32 %v6042_v3, %v4375_v52  ;;  %v6070_v52 = vld [vmem:[%s7208_s3 + $0x78] sm:$0xff] }
 0x86a   : > { %1792 = vrot.lane.b32.xlu1 %v5309_v8, %s5095_s5  ;;  %v1623_v33 = vpop.f32.mrf.mxu0 }
 0x86b   : > { %v6054_v62 = vadd.f32 %v6051_v39, %v1623_v33 }
 0x86c   : > { %v4376_v33 = vpop.f32.mrf.mxu0 }
 0x86d   : > { %v6073_v44 = vadd.f32 %v6070_v52, %v4376_v33 }
 0x86e   : > { %v1626_v7 = vpop.f32.mrf.mxu0 }
 0x86f   : > { %1794 = vrot.lane.b32.xlu0 %v5295_v58, %s5095_s5  ;;  %v6082_v22 = vadd.f32 %v6079_v9, %v1626_v7 }
 0x88e   : > { %1650 = vmax.xlane.f32.xlu0 %v5973_v45  ;;  %1652 = vmax.xlane.f32.xlu1 %v5981_v1 }
 0x892   : > { %1648 = vmax.xlane.f32.xlu1 %v5999_v17  ;;  %1646 = vmax.xlane.f32.xlu0 %v5991_v20 }
 0x896   : > { %1658 = vmax.xlane.f32.xlu0 %v6009_v63  ;;  %1660 = vmax.xlane.f32.xlu1 %v6017_v2 }
 0x89a   : > { %1656 = vmax.xlane.f32.xlu1 %v6035_v38  ;;  %1654 = vmax.xlane.f32.xlu0 %v6027_v12 }
 0x89e   : > { %1666 = vmax.xlane.f32.xlu0 %v6045_v18 }
 0x8a2   : > { %1662 = vmax.xlane.f32.xlu0 %v6054_v62 }
 0x8ab   : > { %1941 = vrot.lane.b32.xlu1 %v5297_v59, %s5096_s12 }
 0x8b8   : > { %1790 = vrot.lane.b32.xlu0 %v5285_v28, %s5095_s5 }
 0x8bc   : > { %1939 = vrot.lane.b32.xlu0 %v5301_v0, %s5096_s12 }
 0x8c0   : > { %1937 = vrot.lane.b32.xlu0 %v5289_v42, %s5096_s12 }
 0x8c4   : > { %1933 = vrot.lane.b32.xlu0 %v5305_v6, %s5096_s12 }
 0x8cf   : > { %1668 = vmax.xlane.f32.xlu1 %v6073_v44 }
 0x8d3   : > { %1664 = vmax.xlane.f32.xlu1 %v6082_v22 }
 0x8dc   : > { %v1643_v14 = vpop.xlane.xlu0 %1642 }
 0x8dd   : > { %v1672_v27 = vsub.f32 %v5933_v30, %v1643_v14 }
 0x8de   : > { %v1639_v25 = vpop.xlane.xlu1 %1638 }
 0x8df   : > { %v1690_v46 = vmul.f32 1.442695, %v1672_v27  ;;  %v1670_v33 = vsub.f32 %v5941_v60, %v1639_v25 }
 0x8e1   : > { %4872 = vpow2.f32 %v1690_v46  ;;  %v1686_v51 = vmul.f32 1.442695, %v1670_v33 }
 0x8e2   : > { %v1645_v5 = vpop.xlane.xlu1 %1644  ;;  %v1641_v49 = vpop.xlane.xlu0 %1640 }
 0x8e3   : > { %v1673_v61 = vsub.f32 %v5951_v40, %v1645_v5  ;;  %4874 = vpow2.f32 %v1686_v51  ;;  %v1671_v7 = vsub.f32 %v5959_v15, %v1641_v49 }
 0x8e5   : > { %v1692_v41 = vmul.f32 1.442695, %v1673_v61  ;;  %v1688_v14 = vmul.f32 1.442695, %v1671_v7 }
 0x8e6   : > { %v1795_v55 = vpop.permute.xlu0 %1794  ;;  %v1793_v19 = vpop.permute.xlu1 %1792 }
 0x8e7   : > { %4387 = vmatprep.subr.bf16.mxu1 %v1795_v55  ;;  %4876 = vpow2.f32 %v1692_v41 }
 0x8e8   : > { %4388 = vmatpush3.bf16.msra.mxu1 %v1795_v55  ;;  %4878 = vpow2.f32 %v1688_v14 }
 0x8e9   : > { %4389 = vmatprep.subr.bf16.mxu1 %v1793_v19 }
 0x8ec   : > { %4390 = vmatpush3.bf16.msra.mxu1 %v1793_v19 }
 0x8ee   : > { %v6089_v25 = vpop.eup %4872 }
 0x8ef   : > { %1722 = vadd.xlane.f32.xlu1 %v6089_v25 }
 0x8f0   : > { %v6092_v46 = vpop.eup %4874 }
 0x8f3   : > { %1718 = vadd.xlane.f32.xlu1 %v6092_v46 }
 0x8f4   : > { %v6095_v51 = vpop.eup %4876 }
 0x8f5   : > { %v6098_v5 = vpop.eup %4878 }
 0x8f7   : > { %1724 = vadd.xlane.f32.xlu1 %v6095_v51 }
 0x8fb   : > { %1720 = vadd.xlane.f32.xlu1 %v6098_v5 }
 0x90c   : > { %1935 = vrot.lane.b32.xlu1 %v5292_v48, %s5096_s12 }
 0x917   : > { %v1653_v27 = vpop.xlane.xlu1 %1652  ;;  %v1651_v19 = vpop.xlane.xlu0 %1650 }
 0x918   : > { %v1676_v41 = vsub.f32 %v5973_v45, %v1651_v19  ;;  %v1677_v40 = vsub.f32 %v5981_v1, %v1653_v27 }
 0x91a   : > { %v1698_v49 = vmul.f32 1.442695, %v1676_v41  ;;  %v1700_v14 = vmul.f32 1.442695, %v1677_v40 }
 0x91b   : > { %v1649_v55 = vpop.xlane.xlu1 %1648  ;;  %v1647_v61 = vpop.xlane.xlu0 %1646 }
 0x91c   : > { %v1675_v30 = vsub.f32 %v5999_v17, %v1649_v55  ;;  %v1674_v60 = vsub.f32 %v5991_v20, %v1647_v61  ;;  %4880 = vpow2.f32 %v1698_v49 }
 0x91e   : > { %v1696_v15 = vmul.f32 1.442695, %v1675_v30  ;;  %v1694_v33 = vmul.f32 1.442695, %v1674_v60 }
 0x91f   : > { %v1659_v7 = vpop.xlane.xlu0 %1658  ;;  %v1661_v45 = vpop.xlane.xlu1 %1660 }
 0x920   : > { %4882 = vpow2.f32 %v1696_v15  ;;  %v1680_v24 = vsub.f32 %v6009_v63, %v1659_v7  ;;  %v1681_v1 = vsub.f32 %v6017_v2, %v1661_v45 }
 0x921   : > { %4884 = vpow2.f32 %v1694_v33 }
 0x922   : > { %4886 = vpow2.f32 %v1700_v14  ;;  %v1706_v19 = vmul.f32 1.442695, %v1680_v24 }
 0x923   : > { %v1655_v11 = vpop.xlane.xlu0 %1654  ;;  %v1657_v61 = vpop.xlane.xlu1 %1656 }
 0x924   : > { %v1678_v41 = vsub.f32 %v6027_v12, %v1655_v11  ;;  %4888 = vpow2.f32 %v1706_v19  ;;  %v1708_v11 = vmul.f32 1.442695, %v1681_v1  ;;  %v1679_v12 = vsub.f32 %v6035_v38, %v1657_v61 }
 0x926   : > { %v1702_v27 = vmul.f32 1.442695, %v1678_v41 }
 0x927   : > { %v1667_v17 = vpop.xlane.xlu0 %1666  ;;  %v6122_v40 = vpop.permute.xlu1 %1941 }
 0x928   : > { %v1684_v20 = vsub.f32 %v6045_v18, %v1667_v17 }
 0x929   : > { %v6110_v49 = vpop.eup %4880 }
 0x92a   : > { %v1714_v55 = vmul.f32 1.442695, %v1684_v20  ;;  %1730 = vadd.xlane.f32.xlu0 %v6110_v49 }
 0x92b   : > { %v1663_v63 = vpop.xlane.xlu0 %1662 }
 0x92c   : > { %4890 = vpow2.f32 %v1714_v55  ;;  %v1682_v30 = vsub.f32 %v6054_v62, %v1663_v63  ;;  %v1704_v62 = vmul.f32 1.442695, %v1679_v12 }
 0x92d   : > { %v6115_v24 = vpop.eup %4882  ;;  %4892 = vpow2.f32 %v1702_v27 }
 0x92e   : > { %v1710_v18 = vmul.f32 1.442695, %v1682_v30  ;;  %v6118_v60 = vpop.eup %4884  ;;  %1728 = vadd.xlane.f32.xlu0 %v6115_v24 }
 0x92f   : > { %v1791_v2 = vpop.permute.xlu0 %1790  ;;  %v6126_v38 = vpop.eup %4886 }
 0x930   : > { %4894 = vpow2.f32 %v1710_v18  ;;  %1726 = vadd.xlane.f32.xlu1 %v6118_v60  ;;  %4391 = vmatprep.subr.bf16.mxu1 %v1791_v2 }
 0x931   : > { %4392 = vmatpush3.bf16.msra.mxu1 %v1791_v2  ;;  %4896 = vpow2.f32 %v1708_v11  ;;  %v6129_v15 = vpop.eup %4888 }
 0x932   : > { %4582 = vmatprep.subr.msk.bf16.mxu1 %vm289_vm1, %v6122_v40  ;;  %4898 = vpow2.f32 %v1704_v62 }
 0x934   : > { %1732 = vadd.xlane.f32.xlu1 %v6126_v38 }
 0x938   : > { %1738 = vadd.xlane.f32.xlu1 %v6129_v15 }
 0x939   : > { %v6132_v33 = vpop.eup %4890 }
 0x93a   : > { %1746 = vadd.xlane.f32.xlu0 %v6132_v33  ;;  %v6135_v7 = vpop.eup %4892 }
 0x93c   : > { %1734 = vadd.xlane.f32.xlu1 %v6135_v7 }
 0x93d   : > { %v6138_v14 = vpop.eup %4894 }
 0x93e   : > { %1742 = vadd.xlane.f32.xlu0 %v6138_v14  ;;  %v6141_v45 = vpop.eup %4896 }
 0x93f   : > { %v6144_v19 = vpop.eup %4898 }
 0x940   : > { %1740 = vadd.xlane.f32.xlu1 %v6141_v45 }
 0x944   : > { %1736 = vadd.xlane.f32.xlu1 %v6144_v19 }
 0x958   : > { %v1669_v41 = vpop.xlane.xlu1 %1668 }
 0x959   : > { %v1685_v17 = vsub.f32 %v6073_v44, %v1669_v41 }
 0x95b   : > { %v1716_v20 = vmul.f32 1.442695, %v1685_v17 }
 0x95c   : > { %v1665_v1 = vpop.xlane.xlu1 %1664 }
 0x95d   : > { %4900 = vpow2.f32 %v1716_v20  ;;  %v1683_v27 = vsub.f32 %v6082_v22, %v1665_v1 }
 0x95f   : > { %v1712_v55 = vmul.f32 1.442695, %v1683_v27 }
 0x961   : > { %4902 = vpow2.f32 %v1712_v55 }
 0x96a   : > { %v6149_v61 = vpop.eup %4900 }
 0x96b   : > { %1748 = vadd.xlane.f32.xlu0 %v6149_v61 }
 0x96e   : > { %v6152_v63 = vpop.eup %4902 }
 0x96f   : > { %1744 = vadd.xlane.f32.xlu1 %v6152_v63 }
 0x978   : > { %v1723_v30 = vpop.xlane.xlu1 %1722 }
 0x97c   : > { %v1719_v11 = vpop.xlane.xlu1 %1718 }
 0x980   : > { %v1725_v12 = vpop.xlane.xlu1 %1724  ;;  %1931 = vrot.lane.b32.xlu1 %v5295_v58, %s5096_s12 }
 0x981   : > { %1929 = vrot.lane.b32.xlu0 %v5309_v8, %s5096_s12  ;;  %4904 = vrcp.f32 %v1725_v12 }
 0x982   : > { %4906 = vrcp.f32 %v1719_v11 }
 0x983   : > { %4908 = vrcp.f32 %v1723_v30  ;;  %v1989_v30 = vsel %vm289_vm1, %v6122_v40, 0 }
 0x984   : > { %v1721_v22 = vpop.xlane.xlu1 %1720  ;;  %1911 = vrot.lane.b32.xlu1 %v5285_v28, %s5097_s18 }
 0x985   : > { %4910 = vrcp.f32 %v1721_v22  ;;  %1927 = vrot.lane.b32.xlu0 %v5285_v28, %s5096_s12 }
 0x988   : > { %1915 = vrot.lane.b32.xlu1 %v5295_v58, %s5097_s18 }
 0x989   : > { %1913 = vrot.lane.b32.xlu0 %v5309_v8, %s5097_s18 }
 0x98c   : > { %1919 = vrot.lane.b32.xlu1 %v5292_v48, %s5097_s18 }
 0x98d   : > { %1917 = vrot.lane.b32.xlu0 %v5305_v6, %s5097_s18 }
 0x98e   : > { %v4905_v44 = vpop.eup %4904 }
 0x98f   : > { %v4907_v18 = vpop.eup %4906  ;;  %v1769_v41 = vmul.f32 %v4905_v44, %v6095_v51  ;;  %v1940_v51 = vpop.permute.xlu0 %1939 }
 0x990   : > { %1923 = vrot.lane.b32.xlu1 %v5301_v0, %s5097_s18  ;;  %v4909_v2 = vpop.eup %4908  ;;  %v1766_v17 = vmul.f32 %v4907_v18, %v6092_v46 }
 0x991   : > { %1921 = vrot.lane.b32.xlu0 %v5289_v42, %s5097_s18  ;;  %v1768_v1 = vmul.f32 %v4909_v2, %v6089_v25 }
 0x992   : > { %v4911_v62 = vpop.eup %4910 }
 0x993   : > { %v1767_v20 = vmul.f32 %v4911_v62, %v6098_v5  ;;  %v1783_v55 = vpack.c.bf16 %v1769_v41, %v1768_v1  ;;  %v1938_v46 = vpop.permute.xlu0 %1937  ;;  %v1936_v5 = vpop.permute.xlu1 %1935 }
 0x994   : > { %2252 = vrot.lane.b32.xlu1 %v5301_v0, %s5098_s20  ;;  %v1986_v0 = vsel %vm289_vm1, %v1940_v51, 0  ;;  %v1983_v25 = vsel %vm289_vm1, %v1938_v46, 0  ;;  %v1980_v11 = vsel %vm289_vm1, %v1936_v5, 0 }
 0x995   : > { %1925 = vrot.lane.b32.xlu0 %v5297_v59, %s5097_s18  ;;  %v1782_v27 = vpack.c.bf16 %v1767_v20, %v1766_v17 }
 0x997   : > { %4393 = vmatprep.mubr.bf16.mxu1 %v1782_v27  ;;  %v1934_v40 = vpop.permute.xlu0 %1933 }
 0x998   : > { %4394 = vmatmul.mubr.bf16.vlgmr.msra.gmra.mxu1 %v1783_v55  ;;  %v1977_v22 = vsel %vm289_vm1, %v1934_v40, 0 }
 0x999   : > { %4410 = vmatpush3.bf16.xpose.msra.mxu1 %v1989_v30  ;;  %2254 = vrot.lane.b32.xlu0 %v5297_v59, %s5098_s20 }
 0x99a   : > { %4583 = vmatprep.subr.msk.bf16.mxu1 %vm289_vm1, %v1940_v51 }
 0x9a1   : > { %4412 = vmatpush3.bf16.xpose.msra.mxu1 %v1986_v0 }
 0x9a2   : > { %4584 = vmatprep.subr.msk.bf16.mxu1 %vm289_vm1, %v1938_v46 }
 0x9a9   : > { %4414 = vmatpush3.bf16.xpose.msra.mxu1 %v1983_v25 }
 0x9aa   : > { %4585 = vmatprep.subr.msk.bf16.mxu1 %vm289_vm1, %v1936_v5 }
 0x9b1   : > { %4416 = vmatpush3.bf16.xpose.msra.mxu1 %v1980_v11 }
 0x9b2   : > { %4586 = vmatprep.subr.msk.bf16.mxu1 %vm289_vm1, %v1934_v40 }
 0x9b3   : > { %v1731_v59 = vpop.xlane.xlu0 %1730 }
 0x9b7   : > { %v1729_v12 = vpop.xlane.xlu0 %1728 }
 0x9b8   : > { %4912 = vrcp.f32 %v1729_v12 }
 0x9b9   : > { %4418 = vmatpush3.bf16.xpose.msra.mxu1 %v1977_v22  ;;  %v1727_v44 = vpop.xlane.xlu1 %1726 }
 0x9ba   : > { %4914 = vrcp.f32 %v1727_v44 }
 0x9bb   : > { %4916 = vrcp.f32 %v1731_v59 }
 0x9bd   : > { %v1733_v18 = vpop.xlane.xlu1 %1732 }
 0x9be   : > { %4918 = vrcp.f32 %v1733_v18 }
 0x9c1   : > { %v1739_v2 = vpop.xlane.xlu1 %1738 }
 0x9c5   : > { %v1735_v62 = vpop.xlane.xlu1 %1734  ;;  %v4913_v41 = vpop.eup %4912 }
 0x9c6   : > { %v1771_v1 = vmul.f32 %v4913_v41, %v6115_v24 }
 0x9c7   : > { %v4915_v17 = vpop.eup %4914 }
 0x9c8   : > { %v1770_v20 = vmul.f32 %v4915_v17, %v6118_v60  ;;  %v4917_v27 = vpop.eup %4916 }
 0x9c9   : > { %v1741_v55 = vpop.xlane.xlu1 %1740  ;;  %v1772_v0 = vmul.f32 %v4917_v27, %v6110_v49 }
 0x9ca   : > { %v1784_v30 = vpack.c.bf16 %v1771_v1, %v1770_v20  ;;  %4920 = vrcp.f32 %v1741_v55 }
 0x9cb   : > { %v4919_v51 = vpop.eup %4918  ;;  %4922 = vrcp.f32 %v1735_v62 }
 0x9cc   : > { %4397 = vmatprep.mubr.bf16.mxu1 %v1784_v30  ;;  %v1773_v46 = vmul.f32 %v4919_v51, %v6126_v38  ;;  %4924 = vrcp.f32 %v1739_v2  ;;  %v1747_v38 = vpop.xlane.xlu0 %1746 }
 0x9cd   : > { %v1737_v25 = vpop.xlane.xlu1 %1736 }
 0x9ce   : > { %4926 = vrcp.f32 %v1737_v25  ;;  %v1785_v5 = vpack.c.bf16 %v1773_v46, %v1772_v0 }
 0x9d0   : > { %4398 = vmatmul.mubr.bf16.gmra.mxu1 %v1785_v5  ;;  %v1743_v2 = vpop.xlane.xlu0 %1742 }
 0x9d7   : > { %v4921_v40 = vpop.eup %4920 }
 0x9d8   : > { %v4923_v60 = vpop.eup %4922  ;;  %v1777_v59 = vmul.f32 %v4921_v40, %v6141_v45 }
 0x9d9   : > { %v4925_v11 = vpop.eup %4924  ;;  %v1774_v12 = vmul.f32 %v4923_v60, %v6135_v7 }
 0x9da   : > { %v1776_v44 = vmul.f32 %v4925_v11, %v6129_v15 }
 0x9db   : > { %v4927_v24 = vpop.eup %4926 }
 0x9dc   : > { %v1775_v22 = vmul.f32 %v4927_v24, %v6144_v19  ;;  %v1787_v18 = vpack.c.bf16 %v1777_v59, %v1776_v44 }
 0x9de   : > { %v1786_v49 = vpack.c.bf16 %v1775_v22, %v1774_v12 }
 0x9e0   : > { %4401 = vmatprep.mubr.bf16.mxu1 %v1786_v49 }
 0x9e1   : > { %4402 = vmatmul.mubr.bf16.gmra.mxu1 %v1787_v18 }
 0x9f4   : > { %v1749_v62 = vpop.xlane.xlu0 %1748 }
 0x9f5   : > { %4928 = vrcp.f32 %v1749_v62 }
 0x9f6   : > { %4930 = vrcp.f32 %v1743_v2 }
 0x9f7   : > { %4932 = vrcp.f32 %v1747_v38 }
 0x9f8   : > { %v1745_v41 = vpop.xlane.xlu1 %1744  ;;  %v1930_v17 = vpop.permute.xlu0 %1929 }
 0x9f9   : > { %4934 = vrcp.f32 %v1745_v41  ;;  %v1971_v0 = vsel %vm289_vm1, %v1930_v17, 0 }
 0x9fc   : > { %v1932_v45 = vpop.permute.xlu1 %1931  ;;  %v1928_v20 = vpop.permute.xlu0 %1927 }
 0x9fd   : > { %4587 = vmatprep.subr.msk.bf16.mxu1 %vm289_vm1, %v1932_v45  ;;  %v1974_v7 = vsel %vm289_vm1, %v1932_v45, 0 }
 0x9fe   : > { %4420 = vmatpush3.bf16.xpose.msra.mxu1 %v1974_v7 }
 0x9ff   : > { %4588 = vmatprep.subr.msk.bf16.mxu1 %vm289_vm1, %v1930_v17 }
 0xa00   : > { %v1912_v15 = vpop.permute.xlu1 %1911  ;;  %v1914_v19 = vpop.permute.xlu0 %1913 }
 0xa02   : > { %v4929_v1 = vpop.eup %4928 }
 0xa03   : > { %v4931_v27 = vpop.eup %4930  ;;  %v1781_v25 = vmul.f32 %v4929_v1, %v6149_v61  ;;  %v1968_v61 = vsel %vm289_vm1, %v1928_v20, 0 }
 0xa04   : > { %v1916_v55 = vpop.permute.xlu1 %1915  ;;  %v1918_v30 = vpop.permute.xlu0 %1917  ;;  %v1778_v5 = vmul.f32 %v4931_v27, %v6138_v14 }
 0xa05   : > { %v4933_v51 = vpop.eup %4932 }
 0xa06   : > { %v4935_v46 = vpop.eup %4934  ;;  %4422 = vmatpush3.bf16.xpose.msra.mxu1 %v1971_v0  ;;  %v1780_v24 = vmul.f32 %v4933_v51, %v6132_v33 }
 0xa07   : > { %4589 = vmatprep.subr.msk.bf16.mxu1 %vm289_vm1, %v1928_v20  ;;  %v1779_v40 = vmul.f32 %v4935_v46, %v6152_v63 }
 0xa08   : > { %v1920_v60 = vpop.permute.xlu1 %1919  ;;  %v1922_v11 = vpop.permute.xlu0 %1921  ;;  %v1789_v12 = vpack.c.bf16 %v1781_v25, %v1780_v24 }
 0xa09   : > { %v1788_v59 = vpack.c.bf16 %v1779_v40, %v1778_v5 }
 0xa0b   : > { %4405 = vmatprep.mubr.bf16.mxu1 %v1788_v59 }
 0xa0c   : > { %v1924_v22 = vpop.permute.xlu1 %1923  ;;  %4406 = vmatmul.mubr.bf16.gmra.mxu1 %v1789_v12  ;;  %v1926_v44 = vpop.permute.xlu0 %1925 }
 0xa0d   : > { %4425 = vmatprep.mubr.msk.bf16.mxu1 %vm289_vm1, %v1912_v15 }
 0xa0e   : > { %4424 = vmatpush3.bf16.xpose.msra.mxu1 %v1968_v61 }
 0xa10   : > { %v2255_v49 = vpop.permute.xlu0 %2254  ;;  %v2253_v14 = vpop.permute.xlu1 %2252 }
 0xa11   : > { %4441 = vmatprep.subr.bf16.mxu0 %v2255_v49 }
 0xa12   : > { %4442 = vmatpush3.bf16.msra.mxu0 %v2255_v49 }
 0xa13   : > { %4443 = vmatprep.subr.bf16.mxu0 %v2253_v14 }
 0xa15   : > { %4426 = vmatmul.mubr.msk.bf16.vlgmr.msra.gmra.mxu1 %vm289_vm1, %v1914_v19 }
 0xa16   : > { %4429 = vmatprep.mubr.msk.bf16.mxu1 %vm289_vm1, %v1916_v55  ;;  %4444 = vmatpush3.bf16.msra.mxu0 %v2253_v14 }
 0xa1d   : > { %4430 = vmatmul.mubr.msk.bf16.gmra.mxu1 %vm289_vm1, %v1918_v30 }
 0xa1e   : > { %4433 = vmatprep.mubr.msk.bf16.mxu1 %vm289_vm1, %v1920_v60 }
 0xa25   : > { %4434 = vmatmul.mubr.msk.bf16.gmra.mxu1 %vm289_vm1, %v1922_v11 }
 0xa26   : > { %4437 = vmatprep.mubr.msk.bf16.mxu1 %vm289_vm1, %v1924_v22 }
 0xa2d   : > { %4438 = vmatmul.mubr.msk.bf16.gmra.mxu1 %vm289_vm1, %v1926_v44 }
 0xa58   : > { %v6213_v33 = vpop.f32.mrf.mxu1 }
 0xa5a   : > { %v6215_v63 = vpop.f32.mrf.mxu1 }
 0xa5c   : > { %v6217_v18 = vpop.f32.mrf.mxu1 }
 0xa5d   : > { %v4627_v38 = vpack.i.bf16 %v6217_v18, %v6213_v33 }
 0xa5e   : > { %v6221_v2 = vpop.f32.mrf.mxu1 }
 0xa5f   : > { %v4622_v62 = vpack.i.bf16 %v6221_v2, %v6215_v63 }
 0xa90   : > { %v6225_v41 = vpop.f32.mrf.mxu1 }
 0xa92   : > { %v6227_v17 = vpop.f32.mrf.mxu1 }
 0xa94   : > { %v6229_v45 = vpop.f32.mrf.mxu1 }
 0xa95   : > { %v4647_v20 = vpack.i.bf16 %v6229_v45, %v6225_v41 }
 0xa96   : > { %v6233_v7 = vpop.f32.mrf.mxu1 }
 0xa97   : > { %v4642_v15 = vpack.i.bf16 %v6233_v7, %v6227_v17  ;;  %v7278_v17 = vld [vmem:[#allocation36_spill] sm:$0xff]  ;;  %v7279_v7 = vld [vmem:[#allocation35_spill] sm:$0xff] }
 0xaa1   : > { %v6237_v19 = vpop.f32.mrf.mxu1 }
 0xaa3   : > { %v6239_v1 = vpop.f32.mrf.mxu1 }
 0xaa5   : > { %v6241_v27 = vpop.f32.mrf.mxu1 }
 0xaa6   : > { %v4677_v55 = vpack.i.bf16 %v6241_v27, %v6237_v19 }
 0xaa7   : > { %v6245_v30 = vpop.f32.mrf.mxu1 }
 0xacc   : > { %v6249_v0 = vpop.f32.mrf.mxu1 }
 0xace   : > { %v6251_v46 = vpop.f32.mrf.mxu1 }
 0xad0   : > { %v6253_v25 = vpop.f32.mrf.mxu1 }
 0xad2   : > { %v6257_v40 = vpop.f32.mrf.mxu1 }
 0xad5   : > { %v4427_v11 = vpop.f32.mrf.mxu1 }
 0xad6   : > { %v2034_v24 = vadd.f32 %v5930_v31, %v4427_v11 }
 0xad7   : > { %v2025_v59 = vpop.f32.mrf.mxu1 }
 0xad8   : > { %v2026_v12 = vadd.f32 %v5938_v56, %v2025_v59  ;;  %2092 = vmax.xlane.f32.xlu0 %v2034_v24 }
 0xad9   : > { %v4428_v22 = vpop.f32.mrf.mxu1 }
 0xada   : > { %2088 = vmax.xlane.f32.xlu1 %v2026_v12  ;;  %v2037_v61 = vadd.f32 %v5948_v54, %v4428_v22 }
 0xadb   : > { %v2028_v44 = vpop.f32.mrf.mxu1 }
 0xadc   : > { %v2029_v49 = vadd.f32 %v5956_v23, %v2028_v44 }
 0xadd   : > { %v4431_v14 = vpop.f32.mrf.mxu1 }
 0xade   : > { %2090 = vmax.xlane.f32.xlu0 %v2029_v49  ;;  %2094 = vmax.xlane.f32.xlu1 %v2037_v61  ;;  %v2050_v60 = vadd.f32 %v5970_v43, %v4431_v14 }
 0xadf   : > { %v2041_v5 = vpop.f32.mrf.mxu1 }
 0xae0   : > { %v2042_v11 = vadd.f32 %v5988_v57, %v2041_v5 }
 0xae1   : > { %v4432_v51 = vpop.f32.mrf.mxu1 }
 0xae2   : > { %v6267_v31 = vadd.f32 %v5978_v50, %v4432_v51  ;;  %2100 = vmax.xlane.f32.xlu0 %v2050_v60 }
 0xae3   : > { %v2044_v56 = vpop.f32.mrf.mxu1 }
 0xae4   : > { %2102 = vmax.xlane.f32.xlu1 %v6267_v31  ;;  %v2045_v54 = vadd.f32 %v5996_v53, %v2044_v56 }
 0xae5   : > { %v4435_v59 = vpop.f32.mrf.mxu1 }
 0xae6   : > { %2096 = vmax.xlane.f32.xlu0 %v2042_v11  ;;  %v6273_v22 = vadd.f32 %v6006_v35, %v4435_v59 }
 0xae7   : > { %v2057_v23 = vpop.f32.mrf.mxu1 }
 0xae8   : > { %2098 = vmax.xlane.f32.xlu1 %v2045_v54  ;;  %v6280_v57 = vadd.f32 %v6024_v16, %v2057_v23 }
 0xae9   : > { %v4436_v43 = vpop.f32.mrf.mxu1 }
 0xaea   : > { %v6276_v44 = vadd.f32 %v6014_v37, %v4436_v43  ;;  %2108 = vmax.xlane.f32.xlu0 %v6273_v22 }
 0xaeb   : > { %v2060_v50 = vpop.f32.mrf.mxu1 }
 0xaec   : > { %2110 = vmax.xlane.f32.xlu1 %v6276_v44  ;;  %v6284_v53 = vadd.f32 %v6032_v29, %v2060_v50 }
 0xaed   : > { %v4439_v51 = vpop.f32.mrf.mxu1 }
 0xaee   : > { %2104 = vmax.xlane.f32.xlu0 %v6280_v57  ;;  %v6288_v35 = vadd.f32 %v6042_v3, %v4439_v51 }
 0xaef   : > { %v2073_v37 = vpop.f32.mrf.mxu1 }
 0xaf0   : > { %2106 = vmax.xlane.f32.xlu1 %v6284_v53  ;;  %v6293_v5 = vadd.f32 %v6051_v39, %v2073_v37 }
 0xaf1   : > { %v4440_v16 = vpop.f32.mrf.mxu1 }
 0xaf2   : > { %2116 = vmax.xlane.f32.xlu0 %v6288_v35  ;;  %v6305_v3 = vadd.f32 %v6070_v52, %v4440_v16 }
 0xaf3   : > { %v2076_v29 = vpop.f32.mrf.mxu1 }
 0xaf4   : > { %v6309_v39 = vadd.f32 %v6079_v9, %v2076_v29 }
 0xaf6   : > { %2112 = vmax.xlane.f32.xlu0 %v6293_v5 }
 0xb01   : > { %2246 = vrot.lane.b32.xlu1 %v5305_v6, %s5098_s20 }
 0xb0c   : > { %2250 = vrot.lane.b32.xlu0 %v5289_v42, %s5098_s20 }
 0xb10   : > { %2248 = vrot.lane.b32.xlu0 %v5292_v48, %s5098_s20 }
 0xb14   : > { %2242 = vrot.lane.b32.xlu0 %v5309_v8, %s5098_s20 }
 0xb25   : > { %2118 = vmax.xlane.f32.xlu1 %v6305_v3 }
 0xb29   : > { %2114 = vmax.xlane.f32.xlu1 %v6309_v39 }
 0xb3a   : > { %2244 = vrot.lane.b32.xlu1 %v5295_v58, %s5098_s20 }
 0xb61   : > { %v2093_v42 = vpop.xlane.xlu0 %2092 }
 0xb62   : > { %v2122_v48 = vsub.f32 %v2034_v24, %v2093_v42 }
 0xb63   : > { %v2089_v6 = vpop.xlane.xlu1 %2088 }
 0xb64   : > { %v2140_v14 = vmul.f32 1.442695, %v2122_v48  ;;  %v2120_v8 = vsub.f32 %v2026_v12, %v2089_v6 }
 0xb66   : > { %4936 = vpow2.f32 %v2140_v14  ;;  %v2136_v56 = vmul.f32 1.442695, %v2120_v8 }
 0xb67   : > { %v2095_v52 = vpop.xlane.xlu1 %2094  ;;  %v2091_v59 = vpop.xlane.xlu0 %2090 }
 0xb68   : > { %v2123_v23 = vsub.f32 %v2037_v61, %v2095_v52  ;;  %4938 = vpow2.f32 %v2136_v56  ;;  %v2121_v50 = vsub.f32 %v2029_v49, %v2091_v59 }
 0xb6a   : > { %v2142_v43 = vmul.f32 1.442695, %v2123_v23  ;;  %v2138_v16 = vmul.f32 1.442695, %v2121_v50 }
 0xb6b   : > { %v2101_v9 = vpop.xlane.xlu0 %2100 }
 0xb6c   : > { %v2126_v51 = vsub.f32 %v2050_v60, %v2101_v9  ;;  %4940 = vpow2.f32 %v2142_v43 }
 0xb6d   : > { %v2103_v37 = vpop.xlane.xlu1 %2102 }
 0xb6e   : > { %v2148_v29 = vmul.f32 1.442695, %v2126_v51  ;;  %v2127_v24 = vsub.f32 %v6267_v31, %v2103_v37 }
 0xb6f   : > { %v2097_v58 = vpop.xlane.xlu0 %2096 }
 0xb70   : > { %4942 = vpow2.f32 %v2148_v29  ;;  %v2124_v42 = vsub.f32 %v2042_v11, %v2097_v58  ;;  %v2150_v8 = vmul.f32 1.442695, %v2127_v24 }
 0xb71   : > { %v2099_v12 = vpop.xlane.xlu1 %2098  ;;  %4944 = vpow2.f32 %v2138_v16 }
 0xb72   : > { %v2144_v48 = vmul.f32 1.442695, %v2124_v42  ;;  %v2125_v6 = vsub.f32 %v2045_v54, %v2099_v12 }
 0xb73   : > { %v6315_v14 = vpop.eup %4936  ;;  %v2109_v61 = vpop.xlane.xlu0 %2108 }
 0xb74   : > { %4946 = vpow2.f32 %v2144_v48  ;;  %v2146_v49 = vmul.f32 1.442695, %v2125_v6  ;;  %v2130_v60 = vsub.f32 %v6273_v22, %v2109_v61  ;;  %2172 = vadd.xlane.f32.xlu1 %v6315_v14 }
 0xb75   : > { %v2111_v56 = vpop.xlane.xlu1 %2110  ;;  %v6319_v52 = vpop.eup %4938 }
 0xb76   : > { %4948 = vpow2.f32 %v2146_v49  ;;  %v2156_v11 = vmul.f32 1.442695, %v2130_v60  ;;  %v2131_v22 = vsub.f32 %v6276_v44, %v2111_v56 }
 0xb77   : > { %v2105_v31 = vpop.xlane.xlu0 %2104  ;;  %4950 = vpow2.f32 %v2150_v8 }
 0xb78   : > { %v2128_v59 = vsub.f32 %v6280_v57, %v2105_v31  ;;  %2168 = vadd.xlane.f32.xlu1 %v6319_v52  ;;  %4952 = vpow2.f32 %v2156_v11  ;;  %v2158_v58 = vmul.f32 1.442695, %v2131_v22  ;;  %v7272_v11 = vpack.i.bf16 %v5883_v21, %v5879_v4 }
 0xb79   : > { %v2107_v54 = vpop.xlane.xlu1 %2106  ;;  %v6324_v43 = vpop.eup %4940 }
 0xb7a   : > { %v2129_v23 = vsub.f32 %v6284_v53, %v2107_v54  ;;  %v2152_v9 = vmul.f32 1.442695, %v2128_v59  ;;  %v7273_v54 = vpack.i.bf16 %v5899_v34, %v5893_v47  ;;  %v7274_v47 = vpack.i.bf16 %v5911_v10, %v5905_v36  ;;  %v7276_v36 = vld [vmem:[#allocation34_spill] sm:$0xff] }
 0xb7b   : > { %v2117_v50 = vpop.xlane.xlu0 %2116  ;;  %v7277_v10 = vpack.i.bf16 %v5895_v26, %v7276_v36 }
 0xb7c   : > { %v2154_v51 = vmul.f32 1.442695, %v2129_v23  ;;  %v2134_v37 = vsub.f32 %v6288_v35, %v2117_v50  ;;  %2174 = vadd.xlane.f32.xlu1 %v6324_v43 }
 0xb7d   : > { %v6329_v16 = vpop.eup %4942  ;;  %v2247_v61 = vpop.permute.xlu1 %2246 }
 0xb7e   : > { %4954 = vpow2.f32 %v2154_v51  ;;  %v2164_v57 = vmul.f32 1.442695, %v2134_v37  ;;  %2180 = vadd.xlane.f32.xlu0 %v6329_v16  ;;  %v6332_v29 = vpop.eup %4944 }
 0xb7f   : > { %v2113_v53 = vpop.xlane.xlu0 %2112  ;;  %4956 = vpow2.f32 %v2152_v9 }
 0xb80   : > { %v2132_v44 = vsub.f32 %v6293_v5, %v2113_v53  ;;  %2170 = vadd.xlane.f32.xlu1 %v6332_v29  ;;  %4958 = vpow2.f32 %v2164_v57 }
 0xb81   : > { %v6336_v24 = vpop.eup %4946  ;;  %4960 = vpow2.f32 %v2158_v58 }
 0xb82   : > { %v2160_v35 = vmul.f32 1.442695, %v2132_v44  ;;  %2176 = vadd.xlane.f32.xlu0 %v6336_v24 }
 0xb83   : > { %v6339_v42 = vpop.eup %4948  ;;  %v2251_v12 = vpop.permute.xlu0 %2250 }
 0xb84   : > { %2178 = vadd.xlane.f32.xlu1 %v6339_v42  ;;  %4445 = vmatprep.subr.bf16.mxu0 %v2251_v12  ;;  %v6342_v48 = vpop.eup %4950  ;;  %4962 = vpow2.f32 %v2160_v35 }
 0xb85   : > { %4446 = vmatpush3.bf16.msra.mxu0 %v2251_v12  ;;  %v6345_v6 = vpop.eup %4952 }
 0xb86   : > { %2182 = vadd.xlane.f32.xlu0 %v6342_v48 }
 0xb87   : > { %v2249_v5 = vpop.permute.xlu0 %2248 }
 0xb88   : > { %4447 = vmatprep.subr.bf16.mxu0 %v2249_v5 }
 0xb89   : > { %4448 = vmatpush3.bf16.msra.mxu0 %v2249_v5 }
 0xb8a   : > { %2188 = vadd.xlane.f32.xlu0 %v6345_v6  ;;  %4449 = vmatprep.subr.bf16.mxu0 %v2247_v61 }
 0xb8b   : > { %v6348_v8 = vpop.eup %4954  ;;  %v2243_v63 = vpop.permute.xlu0 %2242 }
 0xb8c   : > { %2186 = vadd.xlane.f32.xlu1 %v6348_v8  ;;  %v6351_v49 = vpop.eup %4956 }
 0xb8d   : > { %4450 = vmatpush3.bf16.msra.mxu0 %v2247_v61  ;;  %v6354_v60 = vpop.eup %4958 }
 0xb8e   : > { %2184 = vadd.xlane.f32.xlu0 %v6351_v49  ;;  %v6357_v56 = vpop.eup %4960 }
 0xb90   : > { %2196 = vadd.xlane.f32.xlu1 %v6354_v60 }
 0xb91   : > { %v6360_v31 = vpop.eup %4962 }
 0xb92   : > { %2190 = vadd.xlane.f32.xlu0 %v6357_v56 }
 0xb94   : > { %2192 = vadd.xlane.f32.xlu1 %v6360_v31 }
 0xba5   : > { %2240 = vrot.lane.b32.xlu1 %v5285_v28, %s5098_s20 }
 0xba9   : > { %4618 = vrot.lane.b32.xlu1 %v7272_v11, %s5099_s21 }
 0xbad   : > { %4623 = vrot.lane.b32.xlu1 %v4622_v62, %s5100_s22  ;;  %v7275_v62 = vpack.i.bf16 %v5887_v32, %v5881_v13  ;;  %v7280_v13 = vpack.i.bf16 %v7278_v17, %v7279_v7 }
 0xbae   : > { %v2119_v59 = vpop.xlane.xlu1 %2118 }
 0xbaf   : > { %v2135_v28 = vsub.f32 %v6305_v3, %v2119_v59 }
 0xbb1   : > { %4633 = vrot.lane.b32.xlu1 %v7273_v54, %s5099_s21  ;;  %v2166_v21 = vmul.f32 1.442695, %v2135_v28 }
 0xbb2   : > { %v2115_v23 = vpop.xlane.xlu1 %2114 }
 0xbb3   : > { %v2133_v22 = vsub.f32 %v6309_v39, %v2115_v23 }
 0xbb5   : > { %v2162_v50 = vmul.f32 1.442695, %v2133_v22  ;;  %4643 = vrot.lane.b32.xlu1 %v4642_v15, %s5100_s22 }
 0xbb6   : > { %v2245_v4 = vpop.permute.xlu1 %2244 }
 0xbb7   : > { %4964 = vpow2.f32 %v2162_v50  ;;  %4451 = vmatprep.subr.bf16.mxu0 %v2245_v4 }
 0xbb8   : > { %4452 = vmatpush3.bf16.msra.mxu0 %v2245_v4  ;;  %4966 = vpow2.f32 %v2166_v21 }
 0xbb9   : > { %4653 = vrot.lane.b32.xlu1 %v7274_v47, %s5099_s21  ;;  %4453 = vmatprep.subr.bf16.mxu0 %v2243_v63 }
 0xbbc   : > { %4454 = vmatpush3.bf16.msra.mxu0 %v2243_v63 }
 0xbc4   : > { %v6387_v34 = vpop.eup %4964 }
 0xbc5   : > { %2194 = vadd.xlane.f32.xlu0 %v6387_v34  ;;  %v6390_v2 = vpop.eup %4966 }
 0xbc9   : > { %2198 = vadd.xlane.f32.xlu0 %v6390_v2 }
 0xbdf   : > { %4613 = vrot.lane.b32.xlu0 %v7275_v62, %s5099_s21 }
 0xbe3   : > { %4628 = vrot.lane.b32.xlu0 %v4627_v38, %s5100_s22 }
 0xbe7   : > { %4638 = vrot.lane.b32.xlu0 %v7277_v10, %s5099_s21 }
 0xbeb   : > { %4648 = vrot.lane.b32.xlu0 %v4647_v20, %s5100_s22 }
 0xbef   : > { %4658 = vrot.lane.b32.xlu0 %v7280_v13, %s5099_s21 }
 0xbfd   : > { %v2173_v32 = vpop.xlane.xlu1 %2172 }
 0xc01   : > { %v2169_v15 = vpop.xlane.xlu1 %2168 }
 0xc02   : > { %4968 = vrcp.f32 %v2169_v15 }
 0xc05   : > { %v2175_v3 = vpop.xlane.xlu1 %2174 }
 0xc07   : > { %v2181_v33 = vpop.xlane.xlu0 %2180 }
 0xc09   : > { %v2171_v18 = vpop.xlane.xlu1 %2170 }
 0xc0a   : > { %4970 = vrcp.f32 %v2171_v18 }
 0xc0b   : > { %v2177_v38 = vpop.xlane.xlu0 %2176  ;;  %4972 = vrcp.f32 %v2175_v3 }
 0xc0d   : > { %v2179_v26 = vpop.xlane.xlu1 %2178 }
 0xc0e   : > { %4974 = vrcp.f32 %v2179_v26  ;;  %v4734_v26 = vld [vmem:[%s7206_s1 + $0x20] sm:$0xff]  }
 0xc0f   : > { %v2183_v39 = vpop.xlane.xlu0 %2182  ;;  %4976 = vrcp.f32 %v2173_v32  ;;  %v4969_v45 = vpop.eup %4968 }
 0xc10   : > { %4978 = vrcp.f32 %v2177_v38  ;;  %v2216_v37 = vmul.f32 %v4969_v45, %v6319_v52 }
 0xc11   : > { %4980 = vrcp.f32 %v2183_v39 }
 0xc13   : > { %v2189_v41 = vpop.xlane.xlu0 %2188 }
 0xc15   : > { %v2187_v20 = vpop.xlane.xlu1 %2186 }
 0xc17   : > { %v4971_v9 = vpop.eup %4970  ;;  %v2185_v51 = vpop.xlane.xlu0 %2184 }
 0xc18   : > { %v2217_v57 = vmul.f32 %v4971_v9, %v6332_v29  ;;  %4982 = vrcp.f32 %v2185_v51  ;;  %v4973_v44 = vpop.eup %4972 }
 0xc19   : > { %v2197_v53 = vpop.xlane.xlu1 %2196  ;;  %4984 = vrcp.f32 %v2181_v33  ;;  %v2219_v59 = vmul.f32 %v4973_v44, %v6324_v43 }
 0xc1a   : > { %v2232_v58 = vpack.c.bf16 %v2217_v57, %v2216_v37  ;;  %4986 = vrcp.f32 %v2187_v20  ;;  %v7281_v57 = vpack.i.bf16 %v6245_v30, %v6239_v1 }
 0xc1b   : > { %v2191_v35 = vpop.xlane.xlu0 %2190  ;;  %v4975_v5 = vpop.eup %4974 }
 0xc1c   : > { %4457 = vmatprep.mubr.bf16.mxu0 %v2232_v58  ;;  %v4977_v61 = vpop.eup %4976  ;;  %4988 = vrcp.f32 %v2191_v35  ;;  %v2221_v52 = vmul.f32 %v4975_v5, %v6339_v42  ;;  %v7283_v5 = vld [vmem:[#allocation37_spill] sm:$0xff] }
 0xc1d   : > { %v2193_v12 = vpop.xlane.xlu1 %2192  ;;  %v4979_v11 = vpop.eup %4978  ;;  %4990 = vrcp.f32 %v2189_v41  ;;  %v2218_v29 = vmul.f32 %v4977_v61, %v6315_v14  ;;  %v7285_v61 = vld [vmem:[#allocation40_spill] sm:$0xff] }
 0xc1e   : > { %v2220_v23 = vmul.f32 %v4979_v11, %v6336_v24  ;;  %v4981_v22 = vpop.eup %4980  ;;  %4992 = vrcp.f32 %v2193_v12  ;;  %v7282_v12 = vld [vmem:[#allocation39_spill] sm:$0xff]  ;;  %v7286_v11 = vld [vmem:[#allocation38_spill] sm:$0xff] }
 0xc1f   : > { %v2233_v28 = vpack.c.bf16 %v2219_v59, %v2218_v29  ;;  %v2223_v43 = vmul.f32 %v4981_v22, %v6342_v48  ;;  %v7284_v19 = vpack.i.bf16 %v7282_v12, %v7283_v5  ;;  %v7287_v1 = vpack.i.bf16 %v7285_v61, %v7286_v11 }
 0xc20   : > { %v2234_v50 = vpack.c.bf16 %v2221_v52, %v2220_v23  ;;  %v7289_v52 = vpack.i.bf16 %v6257_v40, %v6251_v46 }
 0xc21   : > { %v2241_v54 = vpop.permute.xlu1 %2240 }
 0xc22   : > { %4455 = vmatprep.subr.bf16.mxu0 %v2241_v54 }
 0xc23   : > { %4456 = vmatpush3.bf16.msra.mxu0 %v2241_v54  ;;  %v7288_v54 = vpack.i.bf16 %v6253_v25, %v6249_v0 }
 0xc24   : > { %4473 = vmatprep.subr.bf16.mxu0 %v4734_v26 }
 0xc25   : > { %v4983_v4 = vpop.eup %4982 }
 0xc26   : > { %4458 = vmatmul.mubr.bf16.vlgmr.msra.gmra.mxu0 %v2233_v28  ;;  %v4985_v21 = vpop.eup %4984  ;;  %v2224_v47 = vmul.f32 %v4983_v4, %v6351_v49 }
 0xc27   : > { %4461 = vmatprep.mubr.bf16.mxu0 %v2234_v50  ;;  %v4987_v63 = vpop.eup %4986  ;;  %v2222_v42 = vmul.f32 %v4985_v21, %v6329_v16  ;;  %4474 = vmatpush3.bf16.msra.mxu0 %v4734_v26 }
 0xc28   : > { %v2225_v62 = vmul.f32 %v4987_v63, %v6348_v8  ;;  %v4619_v63 = vpop.permute.xlu1 %4618 }
 0xc29   : > { %v2235_v14 = vpack.c.bf16 %v2223_v43, %v2222_v42  ;;  %v4989_v36 = vpop.eup %4988 }
 0xc2a   : > { %v2236_v10 = vpack.c.bf16 %v2225_v62, %v2224_v47  ;;  %v4991_v24 = vpop.eup %4990  ;;  %v2227_v17 = vmul.f32 %v4989_v36, %v6357_v56  ;;  %v4621_v36 = vunpack.i.h.bf16 %v4619_v63 }
 0xc2b   : > { %v2226_v7 = vmul.f32 %v4991_v24, %v6345_v6  ;;  %v4993_v16 = vpop.eup %4992 }
 0xc2c   : > { %v2228_v32 = vmul.f32 %v4993_v16, %v6360_v31  ;;  %v4735_v31 = vld [vmem:[%s7206_s1 + $0x18] sm:$0xff]   ;;  %v4624_v0 = vpop.permute.xlu1 %4623  ;;  %v7291_v16 = vld [vmem:[#allocation19_spill] sm:$0xff] }
 0xc2d   : > { %v2237_v13 = vpack.c.bf16 %v2227_v17, %v2226_v7  ;;  %4475 = vmatprep.subr.bf16.mxu0 %v4735_v31 }
 0xc2e   : > { %4462 = vmatmul.mubr.bf16.gmra.mxu0 %v2235_v14 }
 0xc2f   : > { %4465 = vmatprep.mubr.bf16.mxu0 %v2236_v10  ;;  %4476 = vmatpush3.bf16.msra.mxu0 %v4735_v31  ;;  %v4620_v10 = vunpack.i.l.bf16 %v4619_v63 }
 0xc30   : > { %v4634_v47 = vpop.permute.xlu1 %4633 }
 0xc34   : > { %v4644_v62 = vpop.permute.xlu1 %4643 }
 0xc35   : > { %v4645_v61 = vunpack.i.l.bf16 %v4644_v62 }
 0xc36   : > { %4466 = vmatmul.mubr.bf16.gmra.mxu0 %v2237_v13  ;;  %v7290_v13 = vld [vmem:[#allocation21_spill] sm:$0xff] }
 0xc38   : > { %v6469_v24 = vpop.permute.xlu1 %4653 }
 0xc4e   : > { %v2195_v48 = vpop.xlane.xlu0 %2194 }
 0xc4f   : > { %4994 = vrcp.f32 %v2195_v48 }
 0xc50   : > { %4996 = vrcp.f32 %v2197_v53 }
 0xc52   : > { %v2199_v49 = vpop.xlane.xlu0 %2198 }
 0xc53   : > { %4998 = vrcp.f32 %v2199_v49 }
 0xc56   : > { %v4614_v21 = vpop.permute.xlu0 %4613 }
 0xc57   : > { %v4616_v46 = vunpack.i.h.bf16 %v4614_v21  ;;  %v4615_v14 = vunpack.i.l.bf16 %v4614_v21 }
 0xc59   : > { %v2554_v48 = vsel %vm289_vm1, %v7290_v13, %v4616_v46 }
 0xc5a   : > { %v4629_v43 = vpop.permute.xlu0 %4628 }
 0xc5b   : > { %v4631_v17 = vunpack.i.h.bf16 %v4629_v43  ;;  %v4630_v7 = vunpack.i.l.bf16 %v4629_v43 }
 0xc5c   : > { %v4995_v8 = vpop.eup %4994 }
 0xc5d   : > { %v2229_v15 = vmul.f32 %v4995_v8, %v6387_v34  ;;  %v4997_v3 = vpop.eup %4996  ;;  %v2553_v8 = vsel %vm289_vm1, %v7291_v16, %v4615_v14  ;;  %v4656_v14 = vunpack.i.h.bf16 %v6469_v24 }
 0xc5e   : > { %v2230_v6 = vmul.f32 %v4997_v3, %v6354_v60  ;;  %v4639_v25 = vpop.permute.xlu0 %4638  ;;  %v7292_v3 = vld [vmem:[#allocation20_spill] sm:$0xff] }
 0xc5f   : > { %v2238_v33 = vpack.c.bf16 %v2229_v15, %v2228_v32 }
 0xc60   : > { %v4999_v18 = vpop.eup %4998 }
 0xc61   : > { %4469 = vmatprep.mubr.bf16.mxu0 %v2238_v33  ;;  %v2231_v56 = vmul.f32 %v4999_v18, %v6390_v2  ;;  %v2556_v33 = vsel %vm289_vm1, %v7292_v3, %v4621_v36  ;;  %v7293_v18 = vld [vmem:[#allocation18_spill] sm:$0xff] }
 0xc62   : > { %v4649_v42 = vpop.permute.xlu0 %4648  ;;  %v2573_v31 = vsel %vm2569_vm3, %v2556_v33, %v4631_v17  ;;  %v4655_v17 = vunpack.i.l.bf16 %v6469_v24 }
 0xc63   : > { %v2239_v38 = vpack.c.bf16 %v2231_v56, %v2230_v6  ;;  %v2555_v6 = vsel %vm289_vm1, %v7293_v18, %v4620_v10  ;;  %v4626_v56 = vunpack.i.h.bf16 %v4624_v0  ;;  %v4651_v5 = vunpack.i.h.bf16 %v4649_v42 }
 0xc65   : > { %4470 = vmatmul.mubr.bf16.gmra.mxu0 %v2239_v38  ;;  %v4625_v38 = vunpack.i.l.bf16 %v4624_v0 }
 0xc66   : > { %v6467_v40 = vpop.permute.xlu0 %4658 }
 0xc67   : > { %v4660_v13 = vunpack.i.l.bf16 %v6467_v40 }
 0xce6   : > { %v4459_v34 = vpop.f32.mrf.mxu0 }
 0xce8   : > { %v2298_v39 = vpop.f32.mrf.mxu0 }
 0xcea   : > { %v4460_v41 = vpop.f32.mrf.mxu0 }
 0xceb   : > { %v4662_v60 = vpack.i.bf16 %v4460_v41, %v4459_v34  ;;  %v2572_v34 = vsel %vm2569_vm3, %v2555_v6, %v4630_v7  ;;  %v4661_v7 = vunpack.i.h.bf16 %v6467_v40 }
 0xcec   : > { %v2301_v45 = vpop.f32.mrf.mxu0 }
 0xced   : > { %v4667_v2 = vpack.i.bf16 %v2301_v45, %v2298_v39  ;;  %4663 = vrot.lane.b32.xlu0 %v4662_v60, %s5101_s28 }
 0xcee   : > { %v4463_v20 = vpop.f32.mrf.mxu0 }
 0xcef   : > { %4668 = vrot.lane.b32.xlu1 %v4667_v2, %s5101_s28  ;;  %v2570_v2 = vsel %vm2569_vm3, %v2553_v8, %v4625_v38  ;;  %v7299_v38 = vld [vmem:[#allocation27_spill] sm:$0xff] }
 0xcf0   : > { %v2314_v9 = vpop.f32.mrf.mxu0  ;;  %v2561_v40 = vsel %vm289_vm1, %v7299_v38, %v4655_v17 }
 0xcf1   : > { %4678 = vrot.lane.b32.xlu0 %v4677_v55, %s5100_s22 }
 0xcf2   : > { %v4464_v51 = vpop.f32.mrf.mxu0 }
 0xcf3   : > { %v4682_v37 = vpack.i.bf16 %v4464_v51, %v4463_v20  ;;  %4673 = vrot.lane.b32.xlu1 %v7281_v57, %s5100_s22  ;;  %v2571_v20 = vsel %vm2569_vm3, %v2554_v48, %v4626_v56  ;;  %v4636_v51 = vunpack.i.h.bf16 %v4634_v47  ;;  %v7298_v56 = vld [vmem:[#allocation29_spill] sm:$0xff] }
 0xcf4   : > { %v2317_v53 = vpop.f32.mrf.mxu0  ;;  %v2562_v24 = vsel %vm289_vm1, %v7298_v56, %v4656_v14 }
 0xcf5   : > { %v4687_v58 = vpack.i.bf16 %v2317_v53, %v2314_v9  ;;  %4683 = vrot.lane.b32.xlu0 %v4682_v37, %s5101_s28  ;;  %v4635_v53 = vunpack.i.l.bf16 %v4634_v47 }
 0xcf6   : > { %v4467_v44 = vpop.f32.mrf.mxu0 }
 0xcf7   : > { %4688 = vrot.lane.b32.xlu1 %v4687_v58, %s5101_s28  ;;  %v4641_v58 = vunpack.i.h.bf16 %v4639_v25 }
 0xcf8   : > { %v2330_v35 = vpop.f32.mrf.mxu0 }
 0xcf9   : > { %4698 = vrot.lane.b32.xlu0 %v7284_v19, %s5099_s21  ;;  %v4650_v19 = vunpack.i.l.bf16 %v4649_v42 }
 0xcfa   : > { %v4468_v27 = vpop.f32.mrf.mxu0 }
 0xcfb   : > { %v4702_v55 = vpack.i.bf16 %v4468_v27, %v4467_v44  ;;  %4693 = vrot.lane.b32.xlu1 %v7287_v1, %s5099_s21  ;;  %v4640_v44 = vunpack.i.l.bf16 %v4639_v25 }
 0xcfc   : > { %v2333_v30 = vpop.f32.mrf.mxu0 }
 0xcfd   : > { %v4707_v59 = vpack.i.bf16 %v2333_v30, %v2330_v35  ;;  %4703 = vrot.lane.b32.xlu0 %v4702_v55, %s5101_s28  ;;  %v4646_v55 = vunpack.i.h.bf16 %v4644_v62 }
 0xcff   : > { %4708 = vrot.lane.b32.xlu1 %v4707_v59, %s5101_s28  ;;  %v7294_v59 = vld [vmem:[#allocation25_spill] sm:$0xff] }
 0xd01   : > { %4718 = vrot.lane.b32.xlu0 %v7288_v54, %s5100_s22  ;;  %v2558_v54 = vsel %vm289_vm1, %v7294_v59, %v4636_v51 }
 0xd02   : > { %v2575_v47 = vsel %vm2569_vm3, %v2558_v54, %v4646_v55 }
 0xd03   : > { %4713 = vrot.lane.b32.xlu1 %v7289_v52, %s5100_s22  ;;  %v7295_v52 = vld [vmem:[#allocation23_spill] sm:$0xff] }
 0xd25   : > { %v4471_v29 = vpop.f32.mrf.mxu0 }
 0xd27   : > { %v2346_v23 = vpop.f32.mrf.mxu0 }
 0xd29   : > { %v4472_v28 = vpop.f32.mrf.mxu0 }
 0xd2a   : > { %v4727_v22 = vpack.i.bf16 %v4472_v28, %v4471_v29  ;;  %v2557_v29 = vsel %vm289_vm1, %v7295_v52, %v4635_v53  ;;  %v7302_v52 = vld [vmem:[#allocation32_spill] sm:$0xff] }
 0xd2b   : > { %v2349_v50 = vpop.f32.mrf.mxu0  ;;  %v2574_v25 = vsel %vm2569_vm3, %v2557_v29, %v4645_v61 }
 0xd2c   : > { %v4722_v4 = vpack.i.bf16 %v2349_v50, %v2346_v23  ;;  %4728 = vrot.lane.b32.xlu0 %v4727_v22, %s5101_s28  ;;  %v7296_v23 = vld [vmem:[#allocation24_spill] sm:$0xff]  ;;  %v7297_v22 = vld [vmem:[#allocation22_spill] sm:$0xff] }
 0xd2d   : > { %v2560_v28 = vsel %vm289_vm1, %v7296_v23, %v4641_v58  ;;  %v2559_v50 = vsel %vm289_vm1, %v7297_v22, %v4640_v44  ;;  %v7303_v23 = vld [vmem:[#allocation30_spill] sm:$0xff] }
 0xd2e   : > { %4723 = vrot.lane.b32.xlu1 %v4722_v4, %s5101_s28  ;;  %v2576_v21 = vsel %vm2569_vm3, %v2559_v50, %v4650_v19  ;;  %v2577_v63 = vsel %vm2569_vm3, %v2560_v28, %v4651_v5 }
 0xd5f   : > { %v4664_v49 = vpop.permute.xlu0 %4663 }
 0xd60   : > { %v4666_v32 = vunpack.i.h.bf16 %v4664_v49  ;;  %v4665_v15 = vunpack.i.l.bf16 %v4664_v49 }
 0xd61   : > { %v4669_v26 = vpop.permute.xlu1 %4668 }
 0xd62   : > { %v4671_v39 = vunpack.i.h.bf16 %v4669_v26  ;;  %v4670_v41 = vunpack.i.l.bf16 %v4669_v26  ;;  %v2589_v60 = vsel %vm2586_vm4, %v2572_v34, %v4665_v15  ;;  %v2590_v45 = vsel %vm2586_vm4, %v2573_v31, %v4666_v32  ;;  %v7300_v26 = vld [vmem:[#allocation28_spill] sm:$0xff]  ;;  %v7301_v34 = vld [vmem:[#allocation26_spill] sm:$0xff] }
 0xd63   : > { %v4679_v9 = vpop.permute.xlu0 %4678  ;;  %v2604_v27 = vpack.c.bf16 %v2590_v45, %v2589_v60  ;;  %v2564_v31 = vsel %vm289_vm1, %v7300_v26, %v4661_v7 }
 0xd64   : > { %v2587_v37 = vsel %vm2586_vm4, %v2570_v2, %v4670_v41  ;;  %v2588_v57 = vsel %vm2586_vm4, %v2571_v20, %v4671_v39  ;;  %v4681_v16 = vunpack.i.h.bf16 %v4679_v9  ;;  %v4680_v8 = vunpack.i.l.bf16 %v4679_v9 }
 0xd65   : > { %v2603_v35 = vpack.c.bf16 %v2588_v57, %v2587_v37  ;;  %v4674_v12 = vpop.permute.xlu1 %4673  ;;  %v2563_v39 = vsel %vm289_vm1, %v7301_v34, %v4660_v13 }
 0xd66   : > { %v4676_v15 = vunpack.i.h.bf16 %v4674_v12  ;;  %v4675_v3 = vunpack.i.l.bf16 %v4674_v12  ;;  %v2580_v60 = vsel %vm2569_vm3, %v2563_v39, %v4680_v8  ;;  %v2581_v45 = vsel %vm2569_vm3, %v2564_v31, %v4681_v16  ;;  %v7308_v31 = vld [vmem:[#allocation2_spill] sm:$0xff] }
 0xd67   : > { %v4684_v11 = vpop.permute.xlu0 %4683  ;;  %4477 = vmatprep.mubr.msk.bf16.mxu0 %vm439_vm2, %v2603_v35 }
 0xd68   : > { %v4686_v1 = vunpack.i.h.bf16 %v4684_v11  ;;  %v4685_v30 = vunpack.i.l.bf16 %v4684_v11  ;;  %4478 = vmatmul.mubr.msk.bf16.vlgmr.msra.gmra.mxu0 %vm439_vm2, %v2604_v27  ;;  %v2579_v9 = vsel %vm2569_vm3, %v2562_v24, %v4676_v15  ;;  %v2578_v51 = vsel %vm2569_vm3, %v2561_v40, %v4675_v3  ;;  %v7306_v15 = vld [vmem:[#allocation5_spill] sm:$0xff] }
 0xd69   : > { %v4689_v4 = vpop.permute.xlu1 %4688 }
 0xd6a   : > { %v4691_v43 = vunpack.i.h.bf16 %v4689_v4  ;;  %v4690_v0 = vunpack.i.l.bf16 %v4689_v4  ;;  %v2593_v42 = vsel %vm2586_vm4, %v2576_v21, %v4685_v30  ;;  %v2594_v62 = vsel %vm2586_vm4, %v2577_v63, %v4686_v1  ;;  %v7304_v4 = vld [vmem:[#allocation33_spill] sm:$0xff]  ;;  %v7305_v63 = vld [vmem:[#allocation31_spill] sm:$0xff] }
 0xd6b   : > { %v4699_v46 = vpop.permute.xlu0 %4698  ;;  %v2606_v32 = vpack.c.bf16 %v2594_v62, %v2593_v42 }
 0xd6c   : > { %v2592_v36 = vsel %vm2586_vm4, %v2575_v47, %v4691_v43  ;;  %v2591_v10 = vsel %vm2586_vm4, %v2574_v25, %v4690_v0  ;;  %v4701_v5 = vunpack.i.h.bf16 %v4699_v46  ;;  %v4700_v19 = vunpack.i.l.bf16 %v4699_v46 }
 0xd6d   : > { %v2605_v48 = vpack.c.bf16 %v2592_v36, %v2591_v10  ;;  %v4694_v49 = vpop.permute.xlu1 %4693 }
 0xd6e   : > { %v4696_v55 = vunpack.i.h.bf16 %v4694_v49  ;;  %v4695_v61 = vunpack.i.l.bf16 %v4694_v49  ;;  %v2568_v29 = vsel %vm289_vm1, %v7302_v52, %v4701_v5  ;;  %v2567_v28 = vsel %vm289_vm1, %v7303_v23, %v4700_v19  ;;  %v6550_v49 = vld [vmem:[%s7207_s2 + $0x81] ss:$0 sm:$0xff] }
 0xd6f   : > { %v4704_v33 = vpop.permute.xlu0 %4703  ;;  %4481 = vmatprep.mubr.msk.bf16.mxu0 %vm439_vm2, %v2605_v48 }
 0xd70   : > { %v4706_v18 = vunpack.i.h.bf16 %v4704_v33  ;;  %v4705_v6 = vunpack.i.l.bf16 %v4704_v33  ;;  %4482 = vmatmul.mubr.msk.bf16.gmra.mxu0 %vm439_vm2, %v2606_v32  ;;  %v2566_v21 = vsel %vm289_vm1, %v7304_v4, %v4696_v55  ;;  %v2565_v43 = vsel %vm289_vm1, %v7305_v63, %v4695_v61 }
 0xd71   : > { %v4709_v41 = vpop.permute.xlu1 %4708 }
 0xd72   : > { %v4711_v2 = vunpack.i.h.bf16 %v4709_v41  ;;  %v4710_v20 = vunpack.i.l.bf16 %v4709_v41  ;;  %v2597_v37 = vsel %vm2586_vm4, %v2580_v60, %v4705_v6  ;;  %v2598_v57 = vsel %vm2586_vm4, %v2581_v45, %v4706_v18  ;;  %v7307_v6 = vld [vmem:[#allocation3_spill] sm:$0xff] }
 0xd73   : > { %v2608_v35 = vpack.c.bf16 %v2598_v57, %v2597_v37  ;;  %v4719_v12 = vpop.permute.xlu0 %4718 }
 0xd74   : > { %v2596_v53 = vsel %vm2586_vm4, %v2579_v9, %v4711_v2  ;;  %v2595_v58 = vsel %vm2586_vm4, %v2578_v51, %v4710_v20  ;;  %v4721_v11 = vunpack.i.h.bf16 %v4719_v12  ;;  %v4720_v1 = vunpack.i.l.bf16 %v4719_v12  ;;  %v7309_v9 = vld [vmem:[#allocation4_spill] sm:$0xff] }
 0xd75   : > { %v2607_v44 = vpack.c.bf16 %v2596_v53, %v2595_v58  ;;  %v4714_v27 = vpop.permute.xlu1 %4713 }
 0xd76   : > { %v4716_v30 = vunpack.i.h.bf16 %v4714_v27  ;;  %v4715_v59 = vunpack.i.l.bf16 %v4714_v27  ;;  %v2584_v0 = vsel %vm2569_vm3, %v2567_v28, %v4720_v1  ;;  %v2585_v25 = vsel %vm2569_vm3, %v2568_v29, %v4721_v11  ;;  %v7310_v27 = vld [vmem:[#allocation9_spill] sm:$0xff]  ;;  %v7311_v1 = vld [vmem:[#allocation6_spill] sm:$0xff]  ;;  %v7312_v29 = vld [vmem:[#allocation7_spill] sm:$0xff] }
 0xd77   : > { %4485 = vmatprep.mubr.msk.bf16.mxu0 %vm439_vm2, %v2607_v44 }
 0xd78   : > { %4486 = vmatmul.mubr.msk.bf16.gmra.mxu0 %vm439_vm2, %v2608_v35  ;;  %v2583_v36 = vsel %vm2569_vm3, %v2566_v21, %v4716_v30  ;;  %v2582_v10 = vsel %vm2569_vm3, %v2565_v43, %v4715_v59 }
 0xd9e   : > { %v4729_v54 = vpop.permute.xlu0 %4728 }
 0xd9f   : > { %v4731_v22 = vunpack.i.h.bf16 %v4729_v54  ;;  %v4730_v50 = vunpack.i.l.bf16 %v4729_v54 }
 0xda0   : > { %v4724_v47 = vpop.permute.xlu1 %4723 }
 0xda1   : > { %v2601_v42 = vsel %vm2586_vm4, %v2584_v0, %v4730_v50  ;;  %v2602_v62 = vsel %vm2586_vm4, %v2585_v25, %v4731_v22  ;;  %v4726_v46 = vunpack.i.h.bf16 %v4724_v47  ;;  %v4725_v14 = vunpack.i.l.bf16 %v4724_v47  ;;  %v7313_v22 = vld [vmem:[#allocation8_spill] sm:$0xff] }
 0xda2   : > { %v2610_v17 = vpack.c.bf16 %v2602_v62, %v2601_v42 }
 0xda3   : > { %v2600_v7 = vsel %vm2586_vm4, %v2583_v36, %v4726_v46  ;;  %v2599_v13 = vsel %vm2586_vm4, %v2582_v10, %v4725_v14 }
 0xda4   : > { %v2609_v48 = vpack.c.bf16 %v2600_v7, %v2599_v13  ;;  %v7314_v7 = vld [vmem:[#allocation13_spill] sm:$0xff] }
 0xda6   : > { %4489 = vmatprep.mubr.msk.bf16.mxu0 %vm439_vm2, %v2609_v48 }
 0xda7   : > { %4490 = vmatmul.mubr.msk.bf16.gmra.mxu0 %vm439_vm2, %v2610_v17 }
 0xe28   : > { %v4479_v16 = vpop.f32.mrf.mxu0 }
 0xe29   : > { %v2694_v8 = vadd.f32 %v4479_v16, %v6550_v49 }
 0xe2a   : > { %v2685_v32 = vpop.f32.mrf.mxu0 }
 0xe2b   : > { %v6554_v3 = vadd.f32 %v2694_v8, %v7306_v15  ;;  %v2686_v33 = vadd.f32 %v6550_v49, %v2685_v32  ;;  %v7315_v8 = vld [vmem:[#allocation10_spill] sm:$0xff] }
 0xe2c   : > { %v4480_v18 = vpop.f32.mrf.mxu0 }
 0xe2d   : > { %v6558_v56 = vadd.f32 %v2686_v33, %v7307_v6  ;;  %v2697_v24 = vadd.f32 %v4480_v18, %v6550_v49  ;;  %v2770_v38 = vsel %vm439_vm2, %v6554_v3, 0.0  ;;  %v2831_v40 = vmul.f32 %v6554_v3, %v6554_v3  ;;  %v7316_v18 = vld [vmem:[#allocation11_spill] sm:$0xff] }
 0xe2e   : > { %2771 = vadd.xlane.f32.xlu0 %v2770_v38  ;;  %v2688_v26 = vpop.f32.mrf.mxu0  ;;  %v7317_v38 = vld [vmem:[#allocation12_spill] sm:$0xff] }
 0xe2f   : > { %v6566_v34 = vadd.f32 %v2697_v24, %v7308_v31  ;;  %v2689_v39 = vadd.f32 %v6550_v49, %v2688_v26  ;;  %v2764_v41 = vsel %vm439_vm2, %v6558_v56, 0.0  ;;  %v2851_v45 = vsel %vm439_vm2, %v2831_v40, 0.0 }
 0xe30   : > { %v4483_v60 = vpop.f32.mrf.mxu0  ;;  %2765 = vadd.xlane.f32.xlu1 %v2764_v41  ;;  %v2829_v2 = vmul.f32 %v6558_v56, %v6558_v56 }
 0xe31   : > { %v6575_v51 = vadd.f32 %v2689_v39, %v7309_v9  ;;  %v2773_v37 = vsel %vm439_vm2, %v6566_v34, 0.0  ;;  %v2832_v57 = vmul.f32 %v6566_v34, %v6566_v34  ;;  %v2710_v58 = vadd.f32 %v4483_v60, %v6550_v49 }
 0xe32   : > { %2852 = vadd.xlane.f32.xlu0 %v2851_v45  ;;  %v2701_v20 = vpop.f32.mrf.mxu0  ;;  %v2845_v44 = vsel %vm439_vm2, %v2829_v2, 0.0 }
 0xe33   : > { %v2854_v12 = vsel %vm439_vm2, %v2832_v57, 0.0  ;;  %v2830_v5 = vmul.f32 %v6575_v51, %v6575_v51  ;;  %v6588_v55 = vadd.f32 %v2710_v58, %v7310_v27  ;;  %v2702_v61 = vadd.f32 %v6550_v49, %v2701_v20  ;;  %v4737_v58 = vld [vmem:[%s7206_s1 + $0x28] sm:$0xff]  }
 0xe34   : > { %v4484_v53 = vpop.f32.mrf.mxu0  ;;  %2774 = vadd.xlane.f32.xlu1 %v2773_v37  ;;  %v2767_v11 = vsel %vm439_vm2, %v6575_v51, 0.0  ;;  %v4736_v37 = vld [vmem:[%s7206_s1 + $0x30] sm:$0xff]  }
 0xe35   : > { %v2713_v35 = vadd.f32 %v4484_v53, %v6550_v49  ;;  %v2848_v54 = vsel %vm439_vm2, %v2830_v5, 0.0  ;;  %v6599_v23 = vadd.f32 %v2702_v61, %v7312_v29  ;;  %v2782_v28 = vsel %vm439_vm2, %v6588_v55, 0.0  ;;  %4493 = vmatprep.subr.bf16.mxu1 %v4736_v37  ;;  %v7318_v5 = vld [vmem:[#allocation17_spill] sm:$0xff]  ;;  %v7320_v29 = vld [vmem:[#allocation14_spill] sm:$0xff] }
 0xe36   : > { %2846 = vadd.xlane.f32.xlu0 %v2845_v44  ;;  %v2704_v19 = vpop.f32.mrf.mxu0  ;;  %v2835_v43 = vmul.f32 %v6588_v55, %v6588_v55  ;;  %4494 = vmatpush3.bf16.msra.mxu1 %v4736_v37 }
 0xe37   : > { %v6594_v30 = vadd.f32 %v2713_v35, %v7311_v1  ;;  %v2705_v59 = vadd.f32 %v6550_v49, %v2704_v19  ;;  %v2776_v63 = vsel %vm439_vm2, %v6599_v23, 0.0  ;;  %v2833_v46 = vmul.f32 %v6599_v23, %v6599_v23  ;;  %4495 = vmatprep.subr.bf16.mxu1 %v4737_v58 }
 0xe38   : > { %2855 = vadd.xlane.f32.xlu1 %v2854_v12  ;;  %v4487_v52 = vpop.f32.mrf.mxu0  ;;  %v2863_v62 = vsel %vm439_vm2, %v2835_v43, 0.0 }
 0xe39   : > { %v6604_v50 = vadd.f32 %v2705_v59, %v7313_v22  ;;  %v2785_v4 = vsel %vm439_vm2, %v6594_v30, 0.0  ;;  %v2836_v25 = vmul.f32 %v6594_v30, %v6594_v30  ;;  %v2726_v42 = vadd.f32 %v4487_v52, %v6550_v49 }
 0xe3a   : > { %2768 = vadd.xlane.f32.xlu0 %v2767_v11  ;;  %v2717_v21 = vpop.f32.mrf.mxu0  ;;  %v2857_v16 = vsel %vm439_vm2, %v2833_v46, 0.0  ;;  %4496 = vmatpush3.bf16.msra.mxu1 %v4737_v58  ;;  %v7319_v11 = vld [vmem:[#allocation15_spill] sm:$0xff] }
 0xe3b   : > { %v2779_v0 = vsel %vm439_vm2, %v6604_v50, 0.0  ;;  %v2866_v36 = vsel %vm439_vm2, %v2836_v25, 0.0  ;;  %v2834_v10 = vmul.f32 %v6604_v50, %v6604_v50  ;;  %v6625_v13 = vadd.f32 %v2726_v42, %v7314_v7 }
 0xe3c   : > { %2849 = vadd.xlane.f32.xlu1 %v2848_v54  ;;  %v4488_v47 = vpop.f32.mrf.mxu0  ;;  %v2718_v48 = vadd.f32 %v6550_v49, %v2717_v21 }
 0xe3d   : > { %v2729_v14 = vadd.f32 %v4488_v47, %v6550_v49  ;;  %v2860_v33 = vsel %vm439_vm2, %v2834_v10, 0.0  ;;  %v2794_v24 = vsel %vm439_vm2, %v6625_v13, 0.0  ;;  %v2839_v39 = vmul.f32 %v6625_v13, %v6625_v13  ;;  %v4738_v10 = vld [vmem:[%s7206_s1 + $0x50] sm:$0xff]  }
 0xe3e   : > { %2783 = vadd.xlane.f32.xlu0 %v2782_v28  ;;  %v2720_v17 = vpop.f32.mrf.mxu0  ;;  %v6635_v6 = vadd.f32 %v2718_v48, %v7316_v18  ;;  %4513 = vmatprep.subr.bf16.mxu0 %v4738_v10 }
 0xe3f   : > { %v6630_v32 = vadd.f32 %v2729_v14, %v7315_v8  ;;  %v2721_v15 = vadd.f32 %v6550_v49, %v2720_v17  ;;  %v2875_v45 = vsel %vm439_vm2, %v2839_v39, 0.0  ;;  %4514 = vmatpush3.bf16.msra.mxu0 %v4738_v10 }
 0xe40   : > { %2786 = vadd.xlane.f32.xlu1 %v2785_v4  ;;  %v2788_v31 = vsel %vm439_vm2, %v6635_v6, 0.0  ;;  %v2837_v2 = vmul.f32 %v6635_v6, %v6635_v6  ;;  %v7321_v4 = vld [vmem:[#allocation16_spill] sm:$0xff] }
 0xe41   : > { %v6640_v40 = vadd.f32 %v2721_v15, %v7317_v38  ;;  %v2797_v26 = vsel %vm439_vm2, %v6630_v32, 0.0  ;;  %v2840_v60 = vmul.f32 %v6630_v32, %v6630_v32 }
 0xe42   : > { %2777 = vadd.xlane.f32.xlu0 %v2776_v63  ;;  %v2869_v57 = vsel %vm439_vm2, %v2837_v2, 0.0 }
 0xe43   : > { %v2791_v41 = vsel %vm439_vm2, %v6640_v40, 0.0  ;;  %v2878_v20 = vsel %vm439_vm2, %v2840_v60, 0.0  ;;  %v2838_v9 = vmul.f32 %v6640_v40, %v6640_v40 }
 0xe44   : > { %2780 = vadd.xlane.f32.xlu1 %v2779_v0 }
 0xe45   : > { %v2872_v53 = vsel %vm439_vm2, %v2838_v9, 0.0 }
 0xe46   : > { %2864 = vadd.xlane.f32.xlu0 %v2863_v62 }
 0xe48   : > { %2867 = vadd.xlane.f32.xlu1 %v2866_v36 }
 0xe4a   : > { %2858 = vadd.xlane.f32.xlu0 %v2857_v16 }
 0xe4c   : > { %2861 = vadd.xlane.f32.xlu1 %v2860_v33 }
 0xe4e   : > { %2795 = vadd.xlane.f32.xlu0 %v2794_v24 }
 0xe50   : > { %2798 = vadd.xlane.f32.xlu1 %v2797_v26 }
 0xe52   : > { %2789 = vadd.xlane.f32.xlu0 %v2788_v31 }
 0xe54   : > { %2792 = vadd.xlane.f32.xlu1 %v2791_v41 }
 0xe56   : > { %2876 = vadd.xlane.f32.xlu0 %v2875_v45 }
 0xe58   : > { %2879 = vadd.xlane.f32.xlu1 %v2878_v20 }
 0xe5a   : > { %2870 = vadd.xlane.f32.xlu0 %v2869_v57 }
 0xe5c   : > { %2873 = vadd.xlane.f32.xlu1 %v2872_v53 }
 0xe67   : > { %v4491_v44 = vpop.f32.mrf.mxu0 }
 0xe68   : > { %v2742_v35 = vadd.f32 %v4491_v44, %v6550_v49 }
 0xe69   : > { %v2733_v12 = vpop.f32.mrf.mxu0 }
 0xe6a   : > { %v6668_v19 = vadd.f32 %v2742_v35, %v7318_v5  ;;  %v2734_v27 = vadd.f32 %v6550_v49, %v2733_v12 }
 0xe6b   : > { %v4492_v61 = vpop.f32.mrf.mxu0 }
 0xe6c   : > { %v6672_v1 = vadd.f32 %v2734_v27, %v7319_v11  ;;  %v2745_v59 = vadd.f32 %v4492_v61, %v6550_v49  ;;  %v2806_v54 = vsel %vm439_vm2, %v6668_v19, 0.0 }
 0xe6d   : > { %v2736_v52 = vpop.f32.mrf.mxu0  ;;  %2807 = vadd.xlane.f32.xlu0 %v2806_v54 }
 0xe6e   : > { %v6678_v28 = vadd.f32 %v2745_v59, %v7320_v29  ;;  %v2737_v22 = vadd.f32 %v6550_v49, %v2736_v52  ;;  %v2800_v63 = vsel %vm439_vm2, %v6672_v1, 0.0  ;;  %v2841_v0 = vmul.f32 %v6672_v1, %v6672_v1 }
 0xe6f   : > { %v2843_v49 = vmul.f32 %v6668_v19, %v6668_v19 }
 0xe70   : > { %v6682_v21 = vadd.f32 %v2737_v22, %v7321_v4  ;;  %v2809_v43 = vsel %vm439_vm2, %v6678_v28, 0.0  ;;  %v2881_v25 = vsel %vm439_vm2, %v2841_v0, 0.0  ;;  %v2844_v14 = vmul.f32 %v6678_v28, %v6678_v28 }
 0xe71   : > { %2801 = vadd.xlane.f32.xlu0 %v2800_v63  ;;  %2810 = vadd.xlane.f32.xlu1 %v2809_v43  ;;  %v2887_v62 = vsel %vm439_vm2, %v2843_v49, 0.0 }
 0xe72   : > { %v2803_v47 = vsel %vm439_vm2, %v6682_v21, 0.0  ;;  %v2842_v42 = vmul.f32 %v6682_v21, %v6682_v21  ;;  %v2890_v36 = vsel %vm439_vm2, %v2844_v14, 0.0 }
 0xe74   : > { %v2884_v46 = vsel %vm439_vm2, %v2842_v42, 0.0 }
 0xe75   : > { %2882 = vadd.xlane.f32.xlu0 %v2881_v25  ;;  %2804 = vadd.xlane.f32.xlu1 %v2803_v47 }
 0xe79   : > { %2888 = vadd.xlane.f32.xlu0 %v2887_v62  ;;  %2885 = vadd.xlane.f32.xlu1 %v2884_v46 }
 0xe7d   : > { %2891 = vadd.xlane.f32.xlu1 %v2890_v36 }
 0xeb7   : > { %v2772_v17 = vpop.xlane.xlu0 %2771 }
 0xeb8   : > { %v6705_v7 = vmul.f32 0.03125, %v2772_v17 }
 0xeb9   : > { %v2766_v48 = vpop.xlane.xlu1 %2765 }
 0xeba   : > { %v2927_v8 = vmul.f32 %v6705_v7, %v6705_v7  ;;  %v2813_v15 = vmul.f32 0.03125, %v2766_v48 }
 0xebb   : > { %v2853_v16 = vpop.xlane.xlu0 %2852 }
 0xebc   : > { %v2895_v33 = vmul.f32 0.03125, %v2853_v16  ;;  %v2925_v31 = vmul.f32 %v2813_v15, %v2813_v15 }
 0xebd   : > { %v2775_v18 = vpop.xlane.xlu1 %2774 }
 0xebe   : > { %v2943_v24 = vsub.f32 %v2895_v33, %v2927_v8  ;;  %v2816_v38 = vmul.f32 0.03125, %v2775_v18  ;;  %v2909_v33 = vsub.f32 %v6558_v56, %v2813_v15  ;;  %v6732_v56 = vld [vmem:[%s7207_s2 + $0x82] ss:$0 sm:$0xff] }
 0xebf   : > { %v2847_v26 = vpop.xlane.xlu0 %2846 }
 0xec0   : > { %v2893_v39 = vmul.f32 0.03125, %v2847_v26  ;;  %v2959_v60 = vadd.f32 1e-05, %v2943_v24  ;;  %v2928_v45 = vmul.f32 %v2816_v38, %v2816_v38  ;;  %v2912_v62 = vsub.f32 %v6566_v34, %v2816_v38 }
 0xec1   : > { %v2856_v41 = vpop.xlane.xlu1 %2855  ;;  %v2911_v24 = vsub.f32 %v6554_v3, %v6705_v7 }
 0xec2   : > { %v2941_v2 = vsub.f32 %v2893_v39, %v2925_v31  ;;  %v2896_v20 = vmul.f32 0.03125, %v2856_v41  ;;  %5000 = vrsqrt.f32 %v2959_v60 }
 0xec3   : > { %v2769_v9 = vpop.xlane.xlu0 %2768 }
 0xec4   : > { %v2957_v37 = vadd.f32 1e-05, %v2941_v2  ;;  %v2944_v57 = vsub.f32 %v2896_v20, %v2928_v45  ;;  %v2814_v53 = vmul.f32 0.03125, %v2769_v9 }
 0xec5   : > { %v2850_v58 = vpop.xlane.xlu1 %2849 }
 0xec6   : > { %v2960_v44 = vadd.f32 1e-05, %v2944_v57  ;;  %v2926_v35 = vmul.f32 %v2814_v53, %v2814_v53  ;;  %5002 = vrsqrt.f32 %v2957_v37  ;;  %v2894_v12 = vmul.f32 0.03125, %v2850_v58 }
 0xec7   : > { %v2784_v5 = vpop.xlane.xlu0 %2783  ;;  %v2910_v3 = vsub.f32 %v6575_v51, %v2814_v53  ;;  %v6745_v51 = vld [vmem:[%s7207_s2 + $0x83] ss:$0 sm:$0xff] }
 0xec8   : > { %5004 = vrsqrt.f32 %v2960_v44  ;;  %v2942_v27 = vsub.f32 %v2894_v12, %v2926_v35  ;;  %v6709_v54 = vmul.f32 0.03125, %v2784_v5 }
 0xec9   : > { %v2787_v61 = vpop.xlane.xlu1 %2786 }
 0xeca   : > { %v2958_v11 = vadd.f32 1e-05, %v2942_v27  ;;  %v6711_v29 = vmul.f32 0.03125, %v2787_v61  ;;  %v2931_v4 = vmul.f32 %v6709_v54, %v6709_v54 }
 0xecb   : > { %v2778_v59 = vpop.xlane.xlu0 %2777 }
 0xecc   : > { %5006 = vrsqrt.f32 %v2958_v11  ;;  %v6715_v63 = vmul.f32 0.03125, %v2778_v59  ;;  %v2932_v25 = vmul.f32 %v6711_v29, %v6711_v29 }
 0xecd   : > { %v2781_v52 = vpop.xlane.xlu1 %2780 }
 0xece   : > { %v6720_v46 = vmul.f32 0.03125, %v2781_v52  ;;  %v2929_v10 = vmul.f32 %v6715_v63, %v6715_v63 }
 0xecf   : > { %v2865_v22 = vpop.xlane.xlu0 %2864  ;;  %v5001_v42 = vpop.eup %5000 }
 0xed0   : > { %v2899_v43 = vmul.f32 0.03125, %v2865_v22  ;;  %v2930_v38 = vmul.f32 %v6720_v46, %v6720_v46  ;;  %v2991_v45 = vmul.f32 %v5001_v42, %v2911_v24  ;;  %v2915_v24 = vsub.f32 %v6588_v55, %v6709_v54 }
 0xed1   : > { %v2868_v0 = vpop.xlane.xlu1 %2867 }
 0xed2   : > { %v2947_v47 = vsub.f32 %v2899_v43, %v2931_v4  ;;  %v2900_v49 = vmul.f32 0.03125, %v2868_v0  ;;  %v3011_v35 = vmul.f32 %v6732_v56, %v2991_v45 }
 0xed3   : > { %v2859_v14 = vpop.xlane.xlu0 %2858  ;;  %v5003_v36 = vpop.eup %5002 }
 0xed4   : > { %v2963_v17 = vadd.f32 1e-05, %v2947_v47  ;;  %v2948_v48 = vsub.f32 %v2900_v49, %v2932_v25  ;;  %v2897_v16 = vmul.f32 0.03125, %v2859_v14  ;;  %v2989_v60 = vmul.f32 %v5003_v36, %v2909_v33 }
 0xed5   : > { %v5005_v8 = vpop.eup %5004  ;;  %v2862_v18 = vpop.xlane.xlu1 %2861  ;;  %v6762_v0 = vadd.f32 %v6745_v51, %v3011_v35 }
 0xed6   : > { %v2992_v26 = vmul.f32 %v5005_v8, %v2912_v62  ;;  %v2964_v31 = vadd.f32 1e-05, %v2948_v48  ;;  %v2945_v34 = vsub.f32 %v2897_v16, %v2929_v10  ;;  %5008 = vrsqrt.f32 %v2963_v17 }
 0xed7   : > { %v2898_v39 = vmul.f32 0.03125, %v2862_v18  ;;  %v2796_v41 = vpop.xlane.xlu0 %2795  ;;  %v3009_v44 = vmul.f32 %v6732_v56, %v2989_v60 }
 0xed8   : > { %5010 = vrsqrt.f32 %v2964_v31  ;;  %v2961_v2 = vadd.f32 1e-05, %v2945_v34  ;;  %v3012_v9 = vmul.f32 %v6732_v56, %v2992_v26  ;;  %v6738_v12 = vmul.f32 0.03125, %v2796_v41 }
 0xed9   : > { %v2946_v7 = vsub.f32 %v2898_v39, %v2930_v38  ;;  %v2799_v15 = vpop.xlane.xlu1 %2798  ;;  %v5007_v20 = vpop.eup %5006  ;;  %v6752_v59 = vadd.f32 %v6745_v51, %v3009_v44  ;;  %v2916_v26 = vsub.f32 %v6594_v30, %v6711_v29  ;;  %v2913_v31 = vsub.f32 %v6599_v23, %v6715_v63 }
 0xeda   : > { %5012 = vrsqrt.f32 %v2961_v2  ;;  %v2990_v58 = vmul.f32 %v5007_v20, %v2910_v3  ;;  %v6740_v5 = vmul.f32 0.03125, %v2799_v15  ;;  %v6749_v61 = vadd.f32 %v6745_v51, %v3012_v9 }
 0xedb   : > { %v2962_v37 = vadd.f32 1e-05, %v2946_v7  ;;  %v2790_v57 = vpop.xlane.xlu0 %2789  ;;  %v2935_v22 = vmul.f32 %v6738_v12, %v6738_v12  ;;  %v2914_v30 = vsub.f32 %v6604_v50, %v6720_v46 }
 0xedc   : > { %v3010_v53 = vmul.f32 %v6732_v56, %v2990_v58  ;;  %v6759_v4 = vmul.f32 0.03125, %v2790_v57  ;;  %v2936_v25 = vmul.f32 %v6740_v5, %v6740_v5  ;;  %v3046_v36 = vpack.c.bf16 %v6749_v61, %v6762_v0 }
 0xedd   : > { %5014 = vrsqrt.f32 %v2962_v37  ;;  %v2793_v27 = vpop.xlane.xlu1 %2792 }
 0xede   : > { %v6755_v52 = vadd.f32 %v6745_v51, %v3010_v53  ;;  %v6768_v42 = vmul.f32 0.03125, %v2793_v27  ;;  %v2933_v48 = vmul.f32 %v6759_v4, %v6759_v4  ;;  %v2920_v53 = vsub.f32 %v6630_v32, %v6740_v5 }
 0xedf   : > { %v2877_v11 = vpop.xlane.xlu0 %2876 }
 0xee0   : > { %v2903_v43 = vmul.f32 0.03125, %v2877_v11  ;;  %v3045_v49 = vpack.c.bf16 %v6755_v52, %v6752_v59  ;;  %v2934_v38 = vmul.f32 %v6768_v42, %v6768_v42 }
 0xee1   : > { %v2880_v47 = vpop.xlane.xlu1 %2879 }
 0xee2   : > { %v2951_v62 = vsub.f32 %v2903_v43, %v2935_v22  ;;  %v2904_v14 = vmul.f32 0.03125, %v2880_v47  ;;  %4497 = vmatprep.mubr.msk.bf16.mxu1 %vm439_vm2, %v3045_v49  ;;  %v2919_v22 = vsub.f32 %v6625_v13, %v6738_v12  ;;  %v2917_v43 = vsub.f32 %v6635_v6, %v6759_v4 }
 0xee3   : > { %v2871_v10 = vpop.xlane.xlu0 %2870  ;;  %v5009_v17 = vpop.eup %5008  ;;  %4498 = vmatmul.mubr.msk.bf16.vlgmr.msra.gmra.mxu1 %vm439_vm2, %v3046_v36 }
 0xee4   : > { %v2967_v16 = vadd.f32 1e-05, %v2951_v62  ;;  %v2952_v8 = vsub.f32 %v2904_v14, %v2936_v25  ;;  %v2901_v33 = vmul.f32 0.03125, %v2871_v10  ;;  %v2995_v2 = vmul.f32 %v5009_v17, %v2915_v24 }
 0xee5   : > { %v5011_v18 = vpop.eup %5010  ;;  %v2874_v34 = vpop.xlane.xlu1 %2873  ;;  %v2918_v14 = vsub.f32 %v6640_v40, %v6768_v42 }
 0xee6   : > { %v2968_v39 = vadd.f32 1e-05, %v2952_v8  ;;  %v2949_v41 = vsub.f32 %v2901_v33, %v2933_v48  ;;  %v2902_v60 = vmul.f32 0.03125, %v2874_v34  ;;  %5016 = vrsqrt.f32 %v2967_v16 }
 0xee7   : > { %v5013_v45 = vpop.eup %5012  ;;  %v2996_v3 = vmul.f32 %v5011_v18, %v2916_v26  ;;  %v3015_v9 = vmul.f32 %v6732_v56, %v2995_v2 }
 0xee8   : > { %5018 = vrsqrt.f32 %v2968_v39  ;;  %v2965_v7 = vadd.f32 1e-05, %v2949_v41  ;;  %v2950_v55 = vsub.f32 %v2902_v60, %v2934_v38  ;;  %v2993_v54 = vmul.f32 %v5013_v45, %v2913_v31 }
 0xee9   : > { %v3016_v63 = vmul.f32 %v6732_v56, %v2996_v3  ;;  %v6800_v46 = vadd.f32 %v6745_v51, %v3015_v9 }
 0xeea   : > { %v5015_v29 = vpop.eup %5014  ;;  %5020 = vrsqrt.f32 %v2965_v7  ;;  %v2966_v23 = vadd.f32 1e-05, %v2950_v55  ;;  %v3013_v20 = vmul.f32 %v6732_v56, %v2993_v54 }
 0xeeb   : > { %v2994_v15 = vmul.f32 %v5015_v29, %v2914_v30  ;;  %v6791_v57 = vadd.f32 %v6745_v51, %v3016_v63 }
 0xeec   : > { %5022 = vrsqrt.f32 %v2966_v23  ;;  %v6794_v58 = vadd.f32 %v6745_v51, %v3013_v20 }
 0xeed   : > { %v3014_v37 = vmul.f32 %v6732_v56, %v2994_v15  ;;  %v3048_v35 = vpack.c.bf16 %v6791_v57, %v6800_v46 }
 0xeef   : > { %v6797_v50 = vadd.f32 %v6745_v51, %v3014_v37 }
 0xef1   : > { %v3047_v44 = vpack.c.bf16 %v6797_v50, %v6794_v58 }
 0xef3   : > { %4501 = vmatprep.mubr.msk.bf16.mxu1 %vm439_vm2, %v3047_v44  ;;  %v5017_v27 = vpop.eup %5016 }
 0xef4   : > { %4502 = vmatmul.mubr.msk.bf16.gmra.mxu1 %vm439_vm2, %v3048_v35  ;;  %v2999_v62 = vmul.f32 %v5017_v27, %v2919_v22 }
 0xef5   : > { %v5019_v11 = vpop.eup %5018 }
 0xef6   : > { %v2808_v25 = vpop.xlane.xlu0 %2807  ;;  %v3000_v47 = vmul.f32 %v5019_v11, %v2920_v53  ;;  %v3019_v12 = vmul.f32 %v6732_v56, %v2999_v62 }
 0xef7   : > { %v5021_v49 = vpop.eup %5020  ;;  %v2827_v8 = vmul.f32 0.03125, %v2808_v25 }
 0xef8   : > { %v2997_v36 = vmul.f32 %v5021_v49, %v2917_v43  ;;  %v3020_v32 = vmul.f32 %v6732_v56, %v3000_v47  ;;  %v6830_v34 = vadd.f32 %v6745_v51, %v3019_v12  ;;  %v4739_v12 = vld [vmem:[%s7206_s1 + $0x48] sm:$0xff]  }
 0xef9   : > { %v5023_v10 = vpop.eup %5022  ;;  %v2939_v60 = vmul.f32 %v2827_v8, %v2827_v8  ;;  %v2923_v22 = vsub.f32 %v6668_v19, %v2827_v8  ;;  %4515 = vmatprep.subr.bf16.mxu0 %v4739_v12 }
 0xefa   : > { %v2802_v5 = vpop.xlane.xlu0 %2801  ;;  %v2811_v17 = vpop.xlane.xlu1 %2810  ;;  %v2998_v48 = vmul.f32 %v5023_v10, %v2918_v14  ;;  %v3017_v16 = vmul.f32 %v6732_v56, %v2997_v36  ;;  %v6821_v4 = vadd.f32 %v6745_v51, %v3020_v32  ;;  %4516 = vmatpush3.bf16.msra.mxu0 %v4739_v12 }
 0xefb   : > { %v2825_v13 = vmul.f32 0.03125, %v2802_v5  ;;  %v2828_v45 = vmul.f32 0.03125, %v2811_v17 }
 0xefc   : > { %v3018_v6 = vmul.f32 %v6732_v56, %v2998_v48  ;;  %v6824_v42 = vadd.f32 %v6745_v51, %v3017_v16  ;;  %v3050_v41 = vpack.c.bf16 %v6821_v4, %v6830_v34 }
 0xefd   : > { %v2937_v24 = vmul.f32 %v2825_v13, %v2825_v13  ;;  %v2940_v15 = vmul.f32 %v2828_v45, %v2828_v45  ;;  %v2921_v53 = vsub.f32 %v6672_v1, %v2825_v13  ;;  %v2924_v36 = vsub.f32 %v6678_v28, %v2828_v45 }
 0xefe   : > { %v2883_v33 = vpop.xlane.xlu0 %2882  ;;  %v2805_v40 = vpop.xlane.xlu1 %2804  ;;  %v6827_v18 = vadd.f32 %v6745_v51, %v3018_v6 }
 0xeff   : > { %v2905_v26 = vmul.f32 0.03125, %v2883_v33  ;;  %v2826_v31 = vmul.f32 0.03125, %v2805_v40  ;;  %v3949_v33 = vld [vmem:[%s7207_s2 + $0x84] ss:$0 sm:$0xff] }
 0xf00   : > { %v3049_v38 = vpack.c.bf16 %v6827_v18, %v6824_v42 }
 0xf01   : > { %v2953_v39 = vsub.f32 %v2905_v26, %v2937_v24  ;;  %v2938_v55 = vmul.f32 %v2826_v31, %v2826_v31  ;;  %v2922_v25 = vsub.f32 %v6682_v21, %v2826_v31 }
 0xf02   : > { %v2889_v2 = vpop.xlane.xlu0 %2888  ;;  %4505 = vmatprep.mubr.msk.bf16.mxu1 %vm439_vm2, %v3049_v38  ;;  %v2886_v3 = vpop.xlane.xlu1 %2885 }
 0xf03   : > { %v2969_v7 = vadd.f32 1e-05, %v2953_v39  ;;  %v2907_v54 = vmul.f32 0.03125, %v2889_v2  ;;  %v2906_v30 = vmul.f32 0.03125, %v2886_v3  ;;  %4506 = vmatmul.mubr.msk.bf16.gmra.mxu1 %vm439_vm2, %v3050_v41 }
 0xf05   : > { %5024 = vrsqrt.f32 %v2969_v7  ;;  %v2955_v29 = vsub.f32 %v2907_v54, %v2939_v60  ;;  %v2954_v23 = vsub.f32 %v2906_v30, %v2938_v55 }
 0xf06   : > { %v2892_v63 = vpop.xlane.xlu1 %2891 }
 0xf07   : > { %v2971_v20 = vadd.f32 1e-05, %v2955_v29  ;;  %v2970_v9 = vadd.f32 1e-05, %v2954_v23  ;;  %v2908_v37 = vmul.f32 0.03125, %v2892_v63 }
 0xf09   : > { %5026 = vrsqrt.f32 %v2971_v20  ;;  %v2956_v44 = vsub.f32 %v2908_v37, %v2940_v15 }
 0xf0a   : > { %5028 = vrsqrt.f32 %v2970_v9 }
 0xf0b   : > { %v2972_v35 = vadd.f32 1e-05, %v2956_v44 }
 0xf0d   : > { %5030 = vrsqrt.f32 %v2972_v35 }
 0xf12   : > { %v5025_v27 = vpop.eup %5024 }
 0xf13   : > { %v3001_v11 = vmul.f32 %v5025_v27, %v2921_v53 }
 0xf15   : > { %v3021_v14 = vmul.f32 %v6732_v56, %v3001_v11 }
 0xf16   : > { %v5027_v43 = vpop.eup %5026 }
 0xf17   : > { %v5029_v47 = vpop.eup %5028  ;;  %v3003_v49 = vmul.f32 %v5027_v43, %v2923_v22  ;;  %v6849_v19 = vadd.f32 %v6745_v51, %v3021_v14 }
 0xf18   : > { %v3002_v62 = vmul.f32 %v5029_v47, %v2922_v25 }
 0xf19   : > { %v3023_v10 = vmul.f32 %v6732_v56, %v3003_v49 }
 0xf1a   : > { %v5031_v32 = vpop.eup %5030  ;;  %v3022_v5 = vmul.f32 %v6732_v56, %v3002_v62 }
 0xf1b   : > { %v3004_v17 = vmul.f32 %v5031_v32, %v2924_v36  ;;  %v6846_v1 = vadd.f32 %v6745_v51, %v3023_v10 }
 0xf1c   : > { %v6852_v21 = vadd.f32 %v6745_v51, %v3022_v5 }
 0xf1d   : > { %v3024_v48 = vmul.f32 %v6732_v56, %v3004_v17  ;;  %v4740_v56 = vld [vmem:[%s7206_s1 + $0x40] sm:$0xff]  }
 0xf1e   : > { %v3051_v28 = vpack.c.bf16 %v6852_v21, %v6849_v19  ;;  %4517 = vmatprep.subr.bf16.mxu0 %v4740_v56 }
 0xf1f   : > { %v6858_v16 = vadd.f32 %v6745_v51, %v3024_v48  ;;  %4518 = vmatpush3.bf16.msra.mxu0 %v4740_v56  ;;  %v4741_v51 = vld [vmem:[%s7206_s1 + $0x38] sm:$0xff]  }
 0xf20   : > { %4509 = vmatprep.mubr.msk.bf16.mxu1 %vm439_vm2, %v3051_v28  ;;  %4519 = vmatprep.subr.bf16.mxu0 %v4741_v51 }
 0xf21   : > { %v3052_v13 = vpack.c.bf16 %v6858_v16, %v6846_v1 }
 0xf23   : > { %4510 = vmatmul.mubr.msk.bf16.gmra.mxu1 %vm439_vm2, %v3052_v13  ;;  %4520 = vmatpush3.bf16.msra.mxu0 %v4741_v51 }
 0xfa3   : > { %v4499_v6 = vpop.f32.mrf.mxu1 }
 0xfa4   : > { %v3136_v31 = vadd.f32 %v4499_v6, %v3949_v33 }
 0xfa5   : > { %v3127_v8 = vpop.f32.mrf.mxu1 }
 0xfa6   : > { %v3128_v24 = vadd.f32 %v3949_v33, %v3127_v8  ;;  %v3192_v2 = vmax.f32 %v3136_v31, 0.0 }
 0xfa7   : > { %v4500_v40 = vpop.f32.mrf.mxu1 }
 0xfa8   : > { %v3139_v26 = vadd.f32 %v4500_v40, %v3949_v33  ;;  %v3190_v60 = vmax.f32 %v3128_v24, 0.0 }
 0xfa9   : > { %v3130_v38 = vpop.f32.mrf.mxu1 }
 0xfaa   : > { %v3131_v39 = vadd.f32 %v3949_v33, %v3130_v38  ;;  %v3193_v41 = vmax.f32 %v3139_v26, 0.0 }
 0xfac   : > { %v3191_v45 = vmax.f32 %v3131_v39, 0.0  ;;  %v3207_v7 = vpack.c.bf16 %v3193_v41, %v3192_v2 }
 0xfae   : > { %v3206_v3 = vpack.c.bf16 %v3191_v45, %v3190_v60  ;;  %v6887_v60 = vld [vmem:[%s7207_s2 + $0x85] ss:$0 sm:$0xff] }
 0xfb0   : > { %4521 = vmatprep.mubr.msk.bf16.mxu0 %vm3242_vm5, %v3206_v3 }
 0xfb1   : > { %4522 = vmatmul.mubr.msk.bf16.vlgmr.msra.gmra.mxu0 %vm3242_vm5, %v3207_v7 }
 0xfb4   : > { %v4503_v55 = vpop.f32.mrf.mxu1 }
 0xfb5   : > { %v3152_v63 = vadd.f32 %v4503_v55, %v3949_v33 }
 0xfb6   : > { %v3143_v54 = vpop.f32.mrf.mxu1 }
 0xfb7   : > { %v3144_v29 = vadd.f32 %v3949_v33, %v3143_v54  ;;  %v3196_v35 = vmax.f32 %v3152_v63, 0.0 }
 0xfb8   : > { %v4504_v30 = vpop.f32.mrf.mxu1 }
 0xfb9   : > { %v3155_v23 = vadd.f32 %v4504_v30, %v3949_v33  ;;  %v3194_v37 = vmax.f32 %v3144_v29, 0.0 }
 0xfba   : > { %v3146_v15 = vpop.f32.mrf.mxu1 }
 0xfbb   : > { %v3147_v20 = vadd.f32 %v3949_v33, %v3146_v15  ;;  %v3197_v9 = vmax.f32 %v3155_v23, 0.0 }
 0xfbd   : > { %v3195_v44 = vmax.f32 %v3147_v20, 0.0  ;;  %v3209_v53 = vpack.c.bf16 %v3197_v9, %v3196_v35 }
 0xfbf   : > { %v3208_v27 = vpack.c.bf16 %v3195_v44, %v3194_v37 }
 0xfc1   : > { %4525 = vmatprep.mubr.msk.bf16.mxu0 %vm3242_vm5, %v3208_v27 }
 0xfc2   : > { %4526 = vmatmul.mubr.msk.bf16.gmra.mxu0 %vm3242_vm5, %v3209_v53 }
 0xfc3   : > { %v4507_v11 = vpop.f32.mrf.mxu1 }
 0xfc4   : > { %v3168_v49 = vadd.f32 %v4507_v11, %v3949_v33 }
 0xfc5   : > { %v3159_v22 = vpop.f32.mrf.mxu1 }
 0xfc6   : > { %v3160_v25 = vadd.f32 %v3949_v33, %v3159_v22  ;;  %v3200_v5 = vmax.f32 %v3168_v49, 0.0 }
 0xfc7   : > { %v4508_v43 = vpop.f32.mrf.mxu1 }
 0xfc8   : > { %v3171_v47 = vadd.f32 %v4508_v43, %v3949_v33  ;;  %v3198_v10 = vmax.f32 %v3160_v25, 0.0 }
 0xfc9   : > { %v3162_v62 = vpop.f32.mrf.mxu1 }
 0xfca   : > { %v3163_v14 = vadd.f32 %v3949_v33, %v3162_v62  ;;  %v3201_v36 = vmax.f32 %v3171_v47, 0.0 }
 0xfcc   : > { %v3199_v32 = vmax.f32 %v3163_v14, 0.0  ;;  %v3211_v48 = vpack.c.bf16 %v3201_v36, %v3200_v5 }
 0xfce   : > { %v3210_v17 = vpack.c.bf16 %v3199_v32, %v3198_v10 }
 0xfd0   : > { %4529 = vmatprep.mubr.msk.bf16.mxu0 %vm3242_vm5, %v3210_v17 }
 0xfd1   : > { %4530 = vmatmul.mubr.msk.bf16.gmra.mxu0 %vm3242_vm5, %v3211_v48 }
 0xfe3   : > { %v4511_v28 = vpop.f32.mrf.mxu1 }
 0xfe4   : > { %v3184_v6 = vadd.f32 %v4511_v28, %v3949_v33 }
 0xfe5   : > { %v3175_v13 = vpop.f32.mrf.mxu1 }
 0xfe6   : > { %v3176_v56 = vadd.f32 %v3949_v33, %v3175_v13  ;;  %v3204_v38 = vmax.f32 %v3184_v6, 0.0 }
 0xfe7   : > { %v4512_v12 = vpop.f32.mrf.mxu1 }
 0xfe8   : > { %v3187_v51 = vadd.f32 %v4512_v12, %v3949_v33  ;;  %v3202_v26 = vmax.f32 %v3176_v56, 0.0 }
 0xfe9   : > { %v3178_v8 = vpop.f32.mrf.mxu1 }
 0xfea   : > { %v3179_v40 = vadd.f32 %v3949_v33, %v3178_v8  ;;  %v3205_v24 = vmax.f32 %v3187_v51, 0.0 }
 0xfec   : > { %v3203_v31 = vmax.f32 %v3179_v40, 0.0  ;;  %v3213_v41 = vpack.c.bf16 %v3205_v24, %v3204_v38 }
 0xfee   : > { %v3212_v39 = vpack.c.bf16 %v3203_v31, %v3202_v26 }
 0xff0   : > { %4533 = vmatprep.mubr.msk.bf16.mxu0 %vm3242_vm5, %v3212_v39 }
 0xff1   : > { %4534 = vmatmul.mubr.msk.bf16.gmra.mxu0 %vm3242_vm5, %v3213_v41 }
0x1071   : > { %v4523_v45 = vpop.f32.mrf.mxu0 }
0x1072   : > { %v3310_v2 = vadd.f32 %v4523_v45, %v6887_v60 }
0x1073   : > { %v3301_v3 = vpop.f32.mrf.mxu0 }
0x1074   : > { %v6891_v33 = vadd.f32 %v3310_v2, %v6762_v0  ;;  %v3302_v7 = vadd.f32 %v6887_v60, %v3301_v3 }
0x1075   : > { %v4524_v55 = vpop.f32.mrf.mxu0 }
0x1076   : > { %v6895_v54 = vadd.f32 %v3302_v7, %v6752_v59  ;;  %v3313_v30 = vadd.f32 %v4524_v55, %v6887_v60  ;;  %v3386_v29 = vsel %vm439_vm2, %v6891_v33, 0.0  ;;  %v3446_v9 = vmul.f32 %v6891_v33, %v6891_v33 }
0x1077   : > { %3387 = vadd.xlane.f32.xlu0 %v3386_v29  ;;  %v3304_v23 = vpop.f32.mrf.mxu0 }
0x1078   : > { %v6901_v63 = vadd.f32 %v3313_v30, %v6749_v61  ;;  %v3305_v15 = vadd.f32 %v6887_v60, %v3304_v23  ;;  %v3380_v59 = vsel %vm439_vm2, %v6895_v54, 0.0  ;;  %v3466_v37 = vsel %vm439_vm2, %v3446_v9, 0.0 }
0x1079   : > { %v3444_v44 = vmul.f32 %v6895_v54, %v6895_v54 }
0x107a   : > { %v6905_v0 = vadd.f32 %v3305_v15, %v6755_v52  ;;  %v3389_v20 = vsel %vm439_vm2, %v6901_v63, 0.0  ;;  %v3447_v52 = vmul.f32 %v6901_v63, %v6901_v63 }
0x107b   : > { %3390 = vadd.xlane.f32.xlu1 %v3389_v20  ;;  %3381 = vadd.xlane.f32.xlu0 %v3380_v59  ;;  %v3460_v11 = vsel %vm439_vm2, %v3444_v44, 0.0 }
0x107c   : > { %v3383_v61 = vsel %vm439_vm2, %v6905_v0, 0.0  ;;  %v3469_v53 = vsel %vm439_vm2, %v3447_v52, 0.0  ;;  %v3445_v22 = vmul.f32 %v6905_v0, %v6905_v0  ;;  %v4743_v52 = vld [vmem:[%s7206_s1 + $0x58] sm:$0xff]  }
0x107e   : > { %v3463_v36 = vsel %vm439_vm2, %v3445_v22, 0.0 }
0x107f   : > { %3384 = vadd.xlane.f32.xlu1 %v3383_v61  ;;  %3467 = vadd.xlane.f32.xlu0 %v3466_v37  ;;  %v4742_v61 = vld [vmem:[%s7206_s1 + $0x60] sm:$0xff]  }
0x1080   : > { %4537 = vmatprep.subr.bf16.mxu1 %v4742_v61 }
0x1081   : > { %4538 = vmatpush3.bf16.msra.mxu1 %v4742_v61 }
0x1082   : > { %v4527_v35 = vpop.f32.mrf.mxu0  ;;  %4539 = vmatprep.subr.bf16.mxu1 %v4743_v52 }
0x1083   : > { %v3326_v27 = vadd.f32 %v4527_v35, %v6887_v60  ;;  %3470 = vadd.xlane.f32.xlu1 %v3469_v53  ;;  %3461 = vadd.xlane.f32.xlu0 %v3460_v11 }
0x1084   : > { %v3317_v43 = vpop.f32.mrf.mxu0 }
0x1085   : > { %v6926_v25 = vadd.f32 %v3326_v27, %v6800_v46  ;;  %v3318_v47 = vadd.f32 %v6887_v60, %v3317_v43  ;;  %4540 = vmatpush3.bf16.msra.mxu1 %v4743_v52 }
0x1086   : > { %v4528_v49 = vpop.f32.mrf.mxu0 }
0x1087   : > { %v6930_v62 = vadd.f32 %v3318_v47, %v6794_v58  ;;  %v3329_v14 = vadd.f32 %v4528_v49, %v6887_v60  ;;  %v3398_v10 = vsel %vm439_vm2, %v6926_v25, 0.0  ;;  %3464 = vadd.xlane.f32.xlu1 %v3463_v36  ;;  %v3450_v28 = vmul.f32 %v6926_v25, %v6926_v25 }
0x1088   : > { %3399 = vadd.xlane.f32.xlu0 %v3398_v10  ;;  %v3320_v32 = vpop.f32.mrf.mxu0 }
0x1089   : > { %v6937_v5 = vadd.f32 %v3329_v14, %v6791_v57  ;;  %v3321_v46 = vadd.f32 %v6887_v60, %v3320_v32  ;;  %v3392_v48 = vsel %vm439_vm2, %v6930_v62, 0.0  ;;  %v3478_v13 = vsel %vm439_vm2, %v3450_v28, 0.0 }
0x108a   : > { %v3448_v12 = vmul.f32 %v6930_v62, %v6930_v62 }
0x108b   : > { %v6941_v17 = vadd.f32 %v3321_v46, %v6797_v50  ;;  %v3401_v58 = vsel %vm439_vm2, %v6937_v5, 0.0  ;;  %v3451_v50 = vmul.f32 %v6937_v5, %v6937_v5 }
0x108c   : > { %3402 = vadd.xlane.f32.xlu1 %v3401_v58  ;;  %3393 = vadd.xlane.f32.xlu0 %v3392_v48  ;;  %v3472_v8 = vsel %vm439_vm2, %v3448_v12, 0.0 }
0x108d   : > { %v3395_v57 = vsel %vm439_vm2, %v6941_v17, 0.0  ;;  %v3481_v6 = vsel %vm439_vm2, %v3451_v50, 0.0  ;;  %v3449_v24 = vmul.f32 %v6941_v17, %v6941_v17 }
0x108f   : > { %v3475_v2 = vsel %vm439_vm2, %v3449_v24, 0.0 }
0x1090   : > { %3396 = vadd.xlane.f32.xlu1 %v3395_v57  ;;  %3479 = vadd.xlane.f32.xlu0 %v3478_v13 }
0x1091   : > { %v4531_v56 = vpop.f32.mrf.mxu0 }
0x1092   : > { %v3342_v51 = vadd.f32 %v4531_v56, %v6887_v60 }
0x1093   : > { %v3333_v40 = vpop.f32.mrf.mxu0 }
0x1094   : > { %v6962_v26 = vadd.f32 %v3342_v51, %v6830_v34  ;;  %3482 = vadd.xlane.f32.xlu1 %v3481_v6  ;;  %3473 = vadd.xlane.f32.xlu0 %v3472_v8  ;;  %v3334_v31 = vadd.f32 %v6887_v60, %v3333_v40 }
0x1095   : > { %v4532_v38 = vpop.f32.mrf.mxu0 }
0x1096   : > { %v3345_v39 = vadd.f32 %v4532_v38, %v6887_v60  ;;  %v3410_v41 = vsel %vm439_vm2, %v6962_v26, 0.0  ;;  %v6969_v45 = vadd.f32 %v3334_v31, %v6824_v42  ;;  %v3454_v29 = vmul.f32 %v6962_v26, %v6962_v26 }
0x1097   : > { %v3336_v3 = vpop.f32.mrf.mxu0 }
0x1098   : > { %v6973_v7 = vadd.f32 %v3345_v39, %v6821_v4  ;;  %3476 = vadd.xlane.f32.xlu1 %v3475_v2  ;;  %3411 = vadd.xlane.f32.xlu0 %v3410_v41  ;;  %v3337_v34 = vadd.f32 %v6887_v60, %v3336_v3  ;;  %v3404_v42 = vsel %vm439_vm2, %v6969_v45, 0.0  ;;  %v3490_v23 = vsel %vm439_vm2, %v3454_v29, 0.0 }
0x109a   : > { %v3413_v55 = vsel %vm439_vm2, %v6973_v7, 0.0  ;;  %v6979_v30 = vadd.f32 %v3337_v34, %v6827_v18  ;;  %v3455_v15 = vmul.f32 %v6973_v7, %v6973_v7  ;;  %v3452_v18 = vmul.f32 %v6969_v45, %v6969_v45 }
0x109c   : > { %3414 = vadd.xlane.f32.xlu1 %v3413_v55  ;;  %3405 = vadd.xlane.f32.xlu0 %v3404_v42  ;;  %v3407_v4 = vsel %vm439_vm2, %v6979_v30, 0.0  ;;  %v3493_v20 = vsel %vm439_vm2, %v3455_v15, 0.0  ;;  %v3484_v59 = vsel %vm439_vm2, %v3452_v18, 0.0  ;;  %v3453_v9 = vmul.f32 %v6979_v30, %v6979_v30 }
0x109e   : > { %v3487_v37 = vsel %vm439_vm2, %v3453_v9, 0.0 }
0x10a0   : > { %3408 = vadd.xlane.f32.xlu1 %v3407_v4  ;;  %3491 = vadd.xlane.f32.xlu0 %v3490_v23 }
0x10a4   : > { %3494 = vadd.xlane.f32.xlu1 %v3493_v20  ;;  %3485 = vadd.xlane.f32.xlu0 %v3484_v59 }
0x10a8   : > { %3488 = vadd.xlane.f32.xlu1 %v3487_v37 }
0x10b1   : > { %v4535_v44 = vpop.f32.mrf.mxu0 }
0x10b2   : > { %v3358_v35 = vadd.f32 %v4535_v44, %v6887_v60 }
0x10b3   : > { %v3349_v27 = vpop.f32.mrf.mxu0 }
0x10b4   : > { %v7005_v53 = vadd.f32 %v3358_v35, %v6846_v1  ;;  %v3350_v11 = vadd.f32 %v6887_v60, %v3349_v27 }
0x10b5   : > { %v4536_v22 = vpop.f32.mrf.mxu0 }
0x10b6   : > { %v7009_v43 = vadd.f32 %v3350_v11, %v6849_v19  ;;  %v3361_v47 = vadd.f32 %v4536_v22, %v6887_v60  ;;  %v3422_v49 = vsel %vm439_vm2, %v7005_v53, 0.0 }
0x10b7   : > { %3423 = vadd.xlane.f32.xlu0 %v3422_v49  ;;  %v3352_v14 = vpop.f32.mrf.mxu0 }
0x10b8   : > { %v7015_v36 = vadd.f32 %v3361_v47, %v6858_v16  ;;  %v3353_v10 = vadd.f32 %v6887_v60, %v3352_v14  ;;  %v3416_v19 = vsel %vm439_vm2, %v7009_v43, 0.0  ;;  %v3456_v46 = vmul.f32 %v7009_v43, %v7009_v43 }
0x10b9   : > { %v3458_v60 = vmul.f32 %v7005_v53, %v7005_v53 }
0x10ba   : > { %v7019_v1 = vadd.f32 %v3353_v10, %v6852_v21  ;;  %v3425_v32 = vsel %vm439_vm2, %v7015_v36, 0.0  ;;  %v3496_v58 = vsel %vm439_vm2, %v3456_v46, 0.0  ;;  %v3459_v57 = vmul.f32 %v7015_v36, %v7015_v36 }
0x10bb   : > { %3426 = vadd.xlane.f32.xlu1 %v3425_v32  ;;  %3417 = vadd.xlane.f32.xlu0 %v3416_v19  ;;  %v3502_v28 = vsel %vm439_vm2, %v3458_v60, 0.0 }
0x10bc   : > { %v3419_v16 = vsel %vm439_vm2, %v7019_v1, 0.0  ;;  %v3457_v21 = vmul.f32 %v7019_v1, %v7019_v1  ;;  %v3505_v13 = vsel %vm439_vm2, %v3459_v57, 0.0 }
0x10be   : > { %v3499_v48 = vsel %vm439_vm2, %v3457_v21, 0.0 }
0x10bf   : > { %3420 = vadd.xlane.f32.xlu1 %v3419_v16  ;;  %3497 = vadd.xlane.f32.xlu0 %v3496_v58 }
0x10c3   : > { %3500 = vadd.xlane.f32.xlu1 %v3499_v48  ;;  %3503 = vadd.xlane.f32.xlu0 %v3502_v28 }
0x10c7   : > { %3506 = vadd.xlane.f32.xlu1 %v3505_v13 }
0x1100   : > { %v3388_v50 = vpop.xlane.xlu0 %3387 }
0x1101   : > { %v7039_v51 = vmul.f32 0.03125, %v3388_v50 }
0x1103   : > { %v3542_v24 = vmul.f32 %v7039_v51, %v7039_v51 }
0x1104   : > { %v3382_v12 = vpop.xlane.xlu0 %3381  ;;  %v3391_v56 = vpop.xlane.xlu1 %3390 }
0x1105   : > { %v7041_v6 = vmul.f32 0.03125, %v3382_v12  ;;  %v3431_v31 = vmul.f32 0.03125, %v3391_v56 }
0x1107   : > { %v3540_v41 = vmul.f32 %v7041_v6, %v7041_v6  ;;  %v3543_v34 = vmul.f32 %v3431_v31, %v3431_v31 }
0x1108   : > { %v3468_v8 = vpop.xlane.xlu0 %3467  ;;  %v3385_v40 = vpop.xlane.xlu1 %3384 }
0x1109   : > { %v3510_v38 = vmul.f32 0.03125, %v3468_v8  ;;  %v7047_v55 = vmul.f32 0.03125, %v3385_v40  ;;  %v3526_v8 = vsub.f32 %v6891_v33, %v7039_v51  ;;  %v3524_v40 = vsub.f32 %v6895_v54, %v7041_v6 }
0x110b   : > { %v3558_v39 = vsub.f32 %v3510_v38, %v3542_v24  ;;  %v3541_v59 = vmul.f32 %v7047_v55, %v7047_v55  ;;  %v3527_v24 = vsub.f32 %v6901_v63, %v3431_v31  ;;  %v3525_v33 = vsub.f32 %v6905_v0, %v7047_v55  ;;  %v7077_v63 = vld [vmem:[%s7207_s2 + $0x86] ss:$0 sm:$0xff] }
0x110c   : > { %v3462_v2 = vpop.xlane.xlu0 %3461  ;;  %v3471_v3 = vpop.xlane.xlu1 %3470 }
0x110d   : > { %v3508_v42 = vmul.f32 0.03125, %v3462_v2  ;;  %v3511_v29 = vmul.f32 0.03125, %v3471_v3  ;;  %v3574_v4 = vadd.f32 1e-05, %v3558_v39 }
0x110f   : > { %v3556_v23 = vsub.f32 %v3508_v42, %v3540_v41  ;;  %v3559_v15 = vsub.f32 %v3511_v29, %v3543_v34  ;;  %5032 = vrsqrt.f32 %v3574_v4 }
0x1110   : > { %v3465_v20 = vpop.xlane.xlu1 %3464 }
0x1111   : > { %v3400_v18 = vpop.xlane.xlu0 %3399  ;;  %v3572_v9 = vadd.f32 1e-05, %v3556_v23  ;;  %v3575_v61 = vadd.f32 1e-05, %v3559_v15  ;;  %v3509_v37 = vmul.f32 0.03125, %v3465_v20 }
0x1112   : > { %v7051_v27 = vmul.f32 0.03125, %v3400_v18 }
0x1113   : > { %5034 = vrsqrt.f32 %v3572_v9  ;;  %v3557_v52 = vsub.f32 %v3509_v37, %v3541_v59 }
0x1114   : > { %5036 = vrsqrt.f32 %v3575_v61  ;;  %v3546_v14 = vmul.f32 %v7051_v27, %v7051_v27 }
0x1115   : > { %v3394_v44 = vpop.xlane.xlu0 %3393  ;;  %v3403_v35 = vpop.xlane.xlu1 %3402  ;;  %v3573_v11 = vadd.f32 1e-05, %v3557_v52 }
0x1116   : > { %v7053_v22 = vmul.f32 0.03125, %v3394_v44  ;;  %v7057_v10 = vmul.f32 0.03125, %v3403_v35  ;;  %v7091_v44 = vld [vmem:[%s7207_s2 + $0x87] ss:$0 sm:$0xff] }
0x1117   : > { %5038 = vrsqrt.f32 %v3573_v11 }
0x1118   : > { %v3544_v46 = vmul.f32 %v7053_v22, %v7053_v22  ;;  %v3547_v21 = vmul.f32 %v7057_v10, %v7057_v10 }
0x1119   : > { %v3480_v47 = vpop.xlane.xlu0 %3479  ;;  %v3397_v49 = vpop.xlane.xlu1 %3396 }
0x111a   : > { %v3514_v32 = vmul.f32 0.03125, %v3480_v47  ;;  %v7063_v60 = vmul.f32 0.03125, %v3397_v49 }
0x111c   : > { %v3562_v19 = vsub.f32 %v3514_v32, %v3546_v14  ;;  %v5033_v13 = vpop.eup %5032  ;;  %v3545_v2 = vmul.f32 %v7063_v60, %v7063_v60 }
0x111d   : > { %v3474_v16 = vpop.xlane.xlu0 %3473  ;;  %v3483_v58 = vpop.xlane.xlu1 %3482  ;;  %v3606_v23 = vmul.f32 %v5033_v13, %v3526_v8 }
0x111e   : > { %v3512_v48 = vmul.f32 0.03125, %v3474_v16  ;;  %v3515_v28 = vmul.f32 0.03125, %v3483_v58  ;;  %v3578_v57 = vadd.f32 1e-05, %v3562_v19 }
0x111f   : > { %v3626_v0 = vmul.f32 %v7077_v63, %v3606_v23 }
0x1120   : > { %v3560_v50 = vsub.f32 %v3512_v48, %v3544_v46  ;;  %v3563_v12 = vsub.f32 %v3515_v28, %v3547_v21  ;;  %v5035_v56 = vpop.eup %5034  ;;  %5040 = vrsqrt.f32 %v3578_v57 }
0x1121   : > { %v3412_v38 = vpop.xlane.xlu0 %3411  ;;  %v3477_v39 = vpop.xlane.xlu1 %3476  ;;  %v3604_v4 = vmul.f32 %v5035_v56, %v3524_v40  ;;  %v3646_v46 = vadd.f32 %v7091_v44, %v3626_v0  ;;  %v3528_v40 = vsub.f32 %v6930_v62, %v7053_v22 }
0x1122   : > { %v5037_v41 = vpop.eup %5036  ;;  %v3576_v3 = vadd.f32 1e-05, %v3560_v50  ;;  %v3579_v34 = vadd.f32 1e-05, %v3563_v12  ;;  %v3513_v42 = vmul.f32 0.03125, %v3477_v39  ;;  %v7080_v18 = vmul.f32 0.03125, %v3412_v38 }
0x1123   : > { %v3607_v29 = vmul.f32 %v5037_v41, %v3527_v24  ;;  %v3624_v9 = vmul.f32 %v7077_v63, %v3604_v4  ;;  %v3530_v41 = vsub.f32 %v6926_v25, %v7051_v27 }
0x1124   : > { %5042 = vrsqrt.f32 %v3576_v3  ;;  %v3561_v54 = vsub.f32 %v3513_v42, %v3545_v2  ;;  %v5039_v51 = vpop.eup %5038  ;;  %v3550_v11 = vmul.f32 %v7080_v18, %v7080_v18  ;;  %v3531_v2 = vsub.f32 %v6937_v5, %v7057_v10 }
0x1125   : > { %5044 = vrsqrt.f32 %v3579_v34  ;;  %v3406_v6 = vpop.xlane.xlu0 %3405  ;;  %v3415_v31 = vpop.xlane.xlu1 %3414  ;;  %v3627_v15 = vmul.f32 %v7077_v63, %v3607_v29  ;;  %v3605_v59 = vmul.f32 %v5039_v51, %v3525_v33  ;;  %v3644_v14 = vadd.f32 %v7091_v44, %v3624_v9 }
0x1126   : > { %v3577_v20 = vadd.f32 1e-05, %v3561_v54  ;;  %v7084_v55 = vmul.f32 0.03125, %v3406_v6  ;;  %v7086_v61 = vmul.f32 0.03125, %v3415_v31  ;;  %v3529_v54 = vsub.f32 %v6941_v17, %v7063_v60 }
0x1127   : > { %v3625_v35 = vmul.f32 %v7077_v63, %v3605_v59  ;;  %v3647_v49 = vadd.f32 %v7091_v44, %v3627_v15 }
0x1128   : > { %5046 = vrsqrt.f32 %v3577_v20  ;;  %v3548_v16 = vmul.f32 %v7084_v55, %v7084_v55  ;;  %v3551_v58 = vmul.f32 %v7086_v61, %v7086_v61 }
0x1129   : > { %v3492_v37 = vpop.xlane.xlu0 %3491  ;;  %v3409_v52 = vpop.xlane.xlu1 %3408  ;;  %v3645_v32 = vadd.f32 %v7091_v44, %v3625_v35  ;;  %v3661_v56 = vpack.c.bf16 %v3647_v49, %v3646_v46  ;;  %v3532_v35 = vsub.f32 %v6969_v45, %v7084_v55  ;;  %v3535_v49 = vsub.f32 %v6973_v7, %v7086_v61 }
0x112a   : > { %v3518_v47 = vmul.f32 0.03125, %v3492_v37  ;;  %v7104_v21 = vmul.f32 0.03125, %v3409_v52  ;;  %v3534_v52 = vsub.f32 %v6962_v26, %v7080_v18 }
0x112b   : > { %v3660_v57 = vpack.c.bf16 %v3645_v32, %v3644_v14 }
0x112c   : > { %v3566_v19 = vsub.f32 %v3518_v47, %v3550_v11  ;;  %v3549_v3 = vmul.f32 %v7104_v21, %v7104_v21 }
0x112d   : > { %v3486_v48 = vpop.xlane.xlu0 %3485  ;;  %v3495_v28 = vpop.xlane.xlu1 %3494  ;;  %4541 = vmatprep.mubr.msk.bf16.mxu1 %vm439_vm2, %v3660_v57 }
0x112e   : > { %v3582_v13 = vadd.f32 1e-05, %v3566_v19  ;;  %v3516_v50 = vmul.f32 0.03125, %v3486_v48  ;;  %v3519_v12 = vmul.f32 0.03125, %v3495_v28  ;;  %v5041_v8 = vpop.eup %5040  ;;  %4542 = vmatmul.mubr.msk.bf16.vlgmr.msra.gmra.mxu1 %vm439_vm2, %v3661_v56 }
0x112f   : > { %v3610_v23 = vmul.f32 %v5041_v8, %v3530_v41 }
0x1130   : > { %v3564_v24 = vsub.f32 %v3516_v50, %v3548_v16  ;;  %v3567_v38 = vsub.f32 %v3519_v12, %v3551_v58  ;;  %5048 = vrsqrt.f32 %v3582_v13  ;;  %v3533_v16 = vsub.f32 %v6979_v30, %v7104_v21 }
0x1131   : > { %v5043_v39 = vpop.eup %5042  ;;  %v3489_v34 = vpop.xlane.xlu1 %3488  ;;  %v3630_v31 = vmul.f32 %v7077_v63, %v3610_v23 }
0x1132   : > { %v5045_v42 = vpop.eup %5044  ;;  %v3580_v29 = vadd.f32 1e-05, %v3564_v24  ;;  %v3583_v4 = vadd.f32 1e-05, %v3567_v38  ;;  %v3517_v62 = vmul.f32 0.03125, %v3489_v34  ;;  %v3608_v22 = vmul.f32 %v5043_v39, %v3528_v40 }
0x1133   : > { %v3611_v33 = vmul.f32 %v5045_v42, %v3531_v2  ;;  %v3650_v60 = vadd.f32 %v7091_v44, %v3630_v31 }
0x1134   : > { %5050 = vrsqrt.f32 %v3580_v29  ;;  %v3565_v25 = vsub.f32 %v3517_v62, %v3549_v3  ;;  %v3628_v6 = vmul.f32 %v7077_v63, %v3608_v22 }
0x1135   : > { %v5047_v27 = vpop.eup %5046  ;;  %5052 = vrsqrt.f32 %v3583_v4  ;;  %v3631_v5 = vmul.f32 %v7077_v63, %v3611_v33 }
0x1136   : > { %v3581_v10 = vadd.f32 1e-05, %v3565_v25  ;;  %v3609_v51 = vmul.f32 %v5047_v27, %v3529_v54  ;;  %v3648_v59 = vadd.f32 %v7091_v44, %v3628_v6 }
0x1137   : > { %v3651_v20 = vadd.f32 %v7091_v44, %v3631_v5 }
0x1138   : > { %5054 = vrsqrt.f32 %v3581_v10  ;;  %v3629_v15 = vmul.f32 %v7077_v63, %v3609_v51 }
0x1139   : > { %v3663_v0 = vpack.c.bf16 %v3651_v20, %v3650_v60 }
0x113a   : > { %v3649_v17 = vadd.f32 %v7091_v44, %v3629_v15 }
0x113c   : > { %v3662_v9 = vpack.c.bf16 %v3649_v17, %v3648_v59 }
0x113d   : > { %v5049_v37 = vpop.eup %5048 }
0x113e   : > { %4545 = vmatprep.mubr.msk.bf16.mxu1 %vm439_vm2, %v3662_v9  ;;  %v3614_v19 = vmul.f32 %v5049_v37, %v3534_v52 }
0x113f   : > { %4546 = vmatmul.mubr.msk.bf16.gmra.mxu1 %vm439_vm2, %v3663_v0 }
0x1140   : > { %v3424_v11 = vpop.xlane.xlu0 %3423  ;;  %v3634_v55 = vmul.f32 %v7077_v63, %v3614_v19 }
0x1141   : > { %v5051_v47 = vpop.eup %5050  ;;  %v3442_v13 = vmul.f32 0.03125, %v3424_v11 }
0x1142   : > { %v5053_v14 = vpop.eup %5052  ;;  %v3612_v32 = vmul.f32 %v5051_v47, %v3532_v35  ;;  %v3654_v24 = vadd.f32 %v7091_v44, %v3634_v55 }
0x1143   : > { %v3615_v46 = vmul.f32 %v5053_v14, %v3535_v49  ;;  %v3554_v39 = vmul.f32 %v3442_v13, %v3442_v13  ;;  %v3538_v59 = vsub.f32 %v7005_v53, %v3442_v13 }
0x1144   : > { %v3418_v58 = vpop.xlane.xlu0 %3417  ;;  %v3427_v48 = vpop.xlane.xlu1 %3426  ;;  %v3632_v45 = vmul.f32 %v7077_v63, %v3612_v32 }
0x1145   : > { %v5055_v28 = vpop.eup %5054  ;;  %v3440_v57 = vmul.f32 0.03125, %v3418_v58  ;;  %v3635_v26 = vmul.f32 %v7077_v63, %v3615_v46  ;;  %v3443_v41 = vmul.f32 0.03125, %v3427_v48 }
0x1146   : > { %v3613_v18 = vmul.f32 %v5055_v28, %v3533_v16  ;;  %v3652_v8 = vadd.f32 %v7091_v44, %v3632_v45  ;;  %v3975_v16 = vld [vmem:[%s7207_s2 + $0x88] ss:$0 sm:$0xff] }
0x1147   : > { %v3655_v12 = vadd.f32 %v7091_v44, %v3635_v26  ;;  %v3552_v56 = vmul.f32 %v3440_v57, %v3440_v57  ;;  %v3555_v25 = vmul.f32 %v3443_v41, %v3443_v41  ;;  %v3536_v15 = vsub.f32 %v7009_v43, %v3440_v57 }
0x1148   : > { %v3498_v7 = vpop.xlane.xlu0 %3497  ;;  %v3421_v61 = vpop.xlane.xlu1 %3420  ;;  %v3633_v50 = vmul.f32 %v7077_v63, %v3613_v18  ;;  %v3539_v35 = vsub.f32 %v7015_v36, %v3443_v41 }
0x1149   : > { %v3520_v30 = vmul.f32 0.03125, %v3498_v7  ;;  %v3441_v21 = vmul.f32 0.03125, %v3421_v61  ;;  %v3665_v42 = vpack.c.bf16 %v3655_v12, %v3654_v24 }
0x114a   : > { %v3653_v40 = vadd.f32 %v7091_v44, %v3633_v50 }
0x114b   : > { %v3568_v38 = vsub.f32 %v3520_v30, %v3552_v56  ;;  %v3553_v4 = vmul.f32 %v3441_v21, %v3441_v21  ;;  %v3537_v60 = vsub.f32 %v7019_v1, %v3441_v21 }
0x114c   : > { %v3504_v2 = vpop.xlane.xlu0 %3503  ;;  %v3501_v3 = vpop.xlane.xlu1 %3500  ;;  %v3664_v34 = vpack.c.bf16 %v3653_v40, %v3652_v8 }
0x114d   : > { %v3584_v29 = vadd.f32 1e-05, %v3568_v38  ;;  %v3522_v62 = vmul.f32 0.03125, %v3504_v2  ;;  %v3521_v22 = vmul.f32 0.03125, %v3501_v3 }
0x114e   : > { %4549 = vmatprep.mubr.msk.bf16.mxu1 %vm439_vm2, %v3664_v34 }
0x114f   : > { %5056 = vrsqrt.f32 %v3584_v29  ;;  %v3570_v23 = vsub.f32 %v3522_v62, %v3554_v39  ;;  %v3569_v33 = vsub.f32 %v3521_v22, %v3553_v4  ;;  %4550 = vmatmul.mubr.msk.bf16.gmra.mxu1 %vm439_vm2, %v3665_v42 }
0x1150   : > { %v3507_v54 = vpop.xlane.xlu1 %3506 }
0x1151   : > { %v3586_v27 = vadd.f32 1e-05, %v3570_v23  ;;  %v3585_v5 = vadd.f32 1e-05, %v3569_v33  ;;  %v3523_v10 = vmul.f32 0.03125, %v3507_v54 }
0x1153   : > { %5058 = vrsqrt.f32 %v3586_v27  ;;  %v3571_v51 = vsub.f32 %v3523_v10, %v3555_v25 }
0x1154   : > { %5060 = vrsqrt.f32 %v3585_v5 }
0x1155   : > { %v3587_v6 = vadd.f32 1e-05, %v3571_v51 }
0x1157   : > { %5062 = vrsqrt.f32 %v3587_v6 }
0x115c   : > { %v5057_v31 = vpop.eup %5056 }
0x115d   : > { %v3616_v20 = vmul.f32 %v5057_v31, %v3536_v15 }
0x115f   : > { %v3636_v52 = vmul.f32 %v7077_v63, %v3616_v20 }
0x1160   : > { %v5059_v17 = vpop.eup %5058 }
0x1161   : > { %v5061_v9 = vpop.eup %5060  ;;  %v3618_v0 = vmul.f32 %v5059_v17, %v3538_v59  ;;  %v3656_v14 = vadd.f32 %v7091_v44, %v3636_v52 }
0x1162   : > { %v3617_v37 = vmul.f32 %v5061_v9, %v3537_v60 }
0x1163   : > { %v3638_v43 = vmul.f32 %v7077_v63, %v3618_v0 }
0x1164   : > { %v5063_v11 = vpop.eup %5062  ;;  %v3637_v47 = vmul.f32 %v7077_v63, %v3617_v37 }
0x1165   : > { %v3619_v49 = vmul.f32 %v5063_v11, %v3539_v35  ;;  %v3658_v19 = vadd.f32 %v7091_v44, %v3638_v43 }
0x1166   : > { %v3657_v53 = vadd.f32 %v7091_v44, %v3637_v47 }
0x1167   : > { %v3639_v1 = vmul.f32 %v7077_v63, %v3619_v49 }
0x1168   : > { %v3666_v32 = vpack.c.bf16 %v3657_v53, %v3656_v14 }
0x1169   : > { %v3659_v46 = vadd.f32 %v7091_v44, %v3639_v1 }
0x116a   : > { %4553 = vmatprep.mubr.msk.bf16.mxu1 %vm439_vm2, %v3666_v32 }
0x116b   : > { %v3667_v36 = vpack.c.bf16 %v3659_v46, %v3658_v19 }
0x116d   : > { %4554 = vmatmul.mubr.msk.bf16.gmra.mxu1 %vm439_vm2, %v3667_v36 }
0x11ee   : > { %v4543_v63 = vpop.f32.mrf.mxu1 }
0x11ef   : > { %v3751_v44 = vadd.f32 %v4543_v63, %v3975_v16 }
0x11f0   : > { %v3742_v58 = vpop.f32.mrf.mxu1 }
0x11f1   : > { %3807 = vst.msk [vmem:[%s7168_s14 + $0x10] sm:$0xff] %vm289_vm1, %v3751_v44  ;;  %v3743_v48 = vadd.f32 %v3975_v16, %v3742_v58 }
0x11f2   : > { %v4544_v28 = vpop.f32.mrf.mxu1 }
0x11f3   : > { %3805 = vst.msk [vmem:[%s7168_s14] sm:$0xff] %vm289_vm1, %v3743_v48  ;;  %v3754_v57 = vadd.f32 %v4544_v28, %v3975_v16 }
0x11f4   : > { %v3745_v26 = vpop.f32.mrf.mxu1 }
0x11f5   : > { %3808 = vst.msk [vmem:[%s7168_s14 + $0x18] sm:$0xff] %vm289_vm1, %v3754_v57  ;;  %v3746_v18 = vadd.f32 %v3975_v16, %v3745_v26 }
0x11f7   : > { %3806 = vst.msk [vmem:[%s7168_s14 + $0x8] sm:$0xff] %vm289_vm1, %v3746_v18 }
0x11ff   : > { %v4547_v45 = vpop.f32.mrf.mxu1 }
0x1200   : > { %v3767_v55 = vadd.f32 %v4547_v45, %v3975_v16 }
0x1201   : > { %v3758_v13 = vpop.f32.mrf.mxu1 }
0x1202   : > { %3811 = vst.msk [vmem:[%s7168_s14 + $0x30] sm:$0xff] %vm289_vm1, %v3767_v55  ;;  %v3759_v7 = vadd.f32 %v3975_v16, %v3758_v13 }
0x1203   : > { %v4548_v61 = vpop.f32.mrf.mxu1 }
0x1204   : > { %3809 = vst.msk [vmem:[%s7168_s14 + $0x20] sm:$0xff] %vm289_vm1, %v3759_v7  ;;  %v3770_v50 = vadd.f32 %v4548_v61, %v3975_v16 }
0x1205   : > { %v3761_v12 = vpop.f32.mrf.mxu1 }
0x1206   : > { %3812 = vst.msk [vmem:[%s7168_s14 + $0x38] sm:$0xff] %vm289_vm1, %v3770_v50  ;;  %v3762_v56 = vadd.f32 %v3975_v16, %v3761_v12 }
0x1208   : > { %3810 = vst.msk [vmem:[%s7168_s14 + $0x28] sm:$0xff] %vm289_vm1, %v3762_v56 }
0x120f   : > { %v4551_v30 = vpop.f32.mrf.mxu1 }
0x1210   : > { %v3783_v21 = vadd.f32 %v4551_v30, %v3975_v16 }
0x1211   : > { %v3774_v8 = vpop.f32.mrf.mxu1 }
0x1212   : > { %3815 = vst.msk [vmem:[%s7168_s14 + $0x50] sm:$0xff] %vm289_vm1, %v3783_v21  ;;  %v3775_v40 = vadd.f32 %v3975_v16, %v3774_v8 }
0x1213   : > { %v4552_v24 = vpop.f32.mrf.mxu1 }
0x1214   : > { %3813 = vst.msk [vmem:[%s7168_s14 + $0x40] sm:$0xff] %vm289_vm1, %v3775_v40  ;;  %v3786_v38 = vadd.f32 %v4552_v24, %v3975_v16 }
0x1215   : > { %v3777_v39 = vpop.f32.mrf.mxu1 }
0x1216   : > { %3816 = vst.msk [vmem:[%s7168_s14 + $0x58] sm:$0xff] %vm289_vm1, %v3786_v38  ;;  %v3778_v41 = vadd.f32 %v3975_v16, %v3777_v39 }
0x1218   : > { %3814 = vst.msk [vmem:[%s7168_s14 + $0x48] sm:$0xff] %vm289_vm1, %v3778_v41 }
0x122d   : > { %v4555_v2 = vpop.f32.mrf.mxu1 }
0x122e   : > { %v3799_v3 = vadd.f32 %v4555_v2, %v3975_v16 }
0x122f   : > { %v3790_v34 = vpop.f32.mrf.mxu1 }
0x1230   : > { %3819 = vst.msk [vmem:[%s7168_s14 + $0x70] sm:$0xff] %vm289_vm1, %v3799_v3  ;;  %v3791_v42 = vadd.f32 %v3975_v16, %v3790_v34 }
0x1231   : > { %v4556_v29 = vpop.f32.mrf.mxu1 }
0x1232   : > { %3817 = vst.msk [vmem:[%s7168_s14 + $0x60] sm:$0xff] %vm289_vm1, %v3791_v42  ;;  %v3802_v4 = vadd.f32 %v4556_v29, %v3975_v16 }
0x1233   : > { %v3793_v62 = vpop.f32.mrf.mxu1 }
0x1234   : > { %3820 = vst.msk [vmem:[%s7168_s14 + $0x78] sm:$0xff] %vm289_vm1, %v3802_v4  ;;  %v3794_v22 = vadd.f32 %v3975_v16, %v3793_v62 }
0x1236   : > { %3818 = vst.msk [vmem:[%s7168_s14 + $0x68] sm:$0xff] %vm289_vm1, %v3794_v22 }
0x1237 PF: > { %s14_s15 = sadd.s32 1, %s5086_s15  }
0x1238   : > { %p11_p4 = scmp.ge.s32.totalorder %s14_s15, 4  }
0x123a   :  { %13 = sbr.rel (!%p11_p4) target bundleno = 1 (0x1), region = 66 }

</bundles_post_ra>
